<compile_context>
chip_gen: v6e
topology: v6e:2x2x1
jax: 0.10.0
libtpu: 0.0.40
codegen_flags: <defaults>
</compile_context>

<pallas_src>
import numpy as np
import jax
import jax.numpy as jnp
from jax import lax
from jax.experimental import pallas as pl
from jax.experimental.pallas import tpu as pltpu

BN_EPS = 1e-3
LANE = 128
SUB = 16  # bf16 sublane packing (second-minor alignment)


def _round_up(x, m):
    return ((x + m - 1) // m) * m


def _vmem_limit_bytes():
    # Generation-aware VMEM budget (v5e/v6e: 128 MiB, v7x: 64 MiB); leave ~15%
    # headroom for Mosaic internal scratch.
    try:
        cap = int(pltpu.get_tpu_info().vmem_capacity_bytes)
    except Exception:
        cap = 64 * 1024 * 1024  # v7x-safe fallback
    return int(0.85 * cap)


def _preferred_tn():
    # v5e MXUs are 128x128 -> tn=256 only adds accumulator vreg pressure there.
    try:
        kind = jax.devices()[0].device_kind.lower()
    except Exception:
        kind = ""
    return 128 if ("v5e" in kind or "v5 lite" in kind) else 256


# ----------------------------------------------------------------------------
# Pallas kernel: sum of ky-tap matmuls + fused BN affine + ReLU
# ----------------------------------------------------------------------------
def _tap_body(a_refs, w_ref, sb_ref, o_ref):
    acc = jnp.dot(a_refs[0][...], w_ref[0], preferred_element_type=jnp.float32)
    for t in range(1, len(a_refs)):
        acc = acc + jnp.dot(a_refs[t][...], w_ref[t],
                            preferred_element_type=jnp.float32)
    out = jnp.maximum(acc * sb_ref[0:1, :] + sb_ref[1:2, :], 0.0)
    o_ref[...] = out.astype(o_ref.dtype)


def _make_tap_kernel(n_tap):
    if n_tap == 1:
        def kernel(a0, w_ref, sb_ref, o_ref):
            _tap_body((a0,), w_ref, sb_ref, o_ref)
    elif n_tap == 3:
        def kernel(a0, a1, a2, w_ref, sb_ref, o_ref):
            _tap_body((a0, a1, a2), w_ref, sb_ref, o_ref)
    else:
        raise NotImplementedError(n_tap)
    return kernel


def _tap_matmul(a, w, sb, *, row_stride, n_tap, rows_out):
    """o[n, i] = relu((sum_t a[n, row_stride*i + t] @ w[t]) * scale + bias).

    a : (N, Ra, Wp, Kp) bf16   (Wp mult of 16, Kp mult of 128)
    w : (n_tap, Kp, Np) bf16
    sb: (2, Np)         f32    (row0 = scale, row1 = bias)
    returns (N, rows_out, Wp, Np) bf16
    """
    N, Ra, Wp, Kp = a.shape
    assert w.shape[0] == n_tap and w.shape[1] == Kp
    Np = w.shape[2]
    tn = 256 if (_preferred_tn() >= 256 and Np % 256 == 0) else 128
    grid_n = Np // tn
    # Weight block index only varies on the slowest axis -> weights stay
    # resident across the whole (batch, rows) sweep.
    grid = (grid_n, N, rows_out)

    a_specs = [
        pl.BlockSpec((None, None, Wp, Kp),
                     lambda j, n, i, t=t: (n, row_stride * i + t, 0, 0))
        for t in range(n_tap)
    ]
    w_spec = pl.BlockSpec((n_tap, Kp, tn), lambda j, n, i: (0, 0, j))
    sb_spec = pl.BlockSpec((2, tn), lambda j, n, i: (0, j))
    out_spec = pl.BlockSpec((None, None, Wp, tn), lambda j, n, i: (n, i, 0, j))

    flops = 2 * N * rows_out * Wp * Kp * Np * n_tap
    bytes_accessed = (grid_n * n_tap * N * rows_out * Wp * Kp * 2
                      + n_tap * Kp * Np * 2 + 2 * Np * 4
                      + N * rows_out * Wp * Np * 2)

    return pl.pallas_call(
        _make_tap_kernel(n_tap),
        grid=grid,
        in_specs=a_specs + [w_spec, sb_spec],
        out_specs=out_spec,
        out_shape=jax.ShapeDtypeStruct((N, rows_out, Wp, Np), jnp.bfloat16),
        compiler_params=pltpu.CompilerParams(
            dimension_semantics=("arbitrary", "parallel", "parallel"),
            vmem_limit_bytes=_vmem_limit_bytes()),
        cost_estimate=pl.CostEstimate(flops=flops, transcendentals=0,
                                      bytes_accessed=bytes_accessed),
    )(*([a] * n_tap), w, sb)


# ----------------------------------------------------------------------------
# Conv / ConvTranspose wrappers (thin XLA glue around the tap-matmul kernel)
# ----------------------------------------------------------------------------
def conv3x3_bn_relu(x, w, sb, stride, cout):
    """Conv3x3(stride, pad=1) + folded BN + ReLU.
    x: (N,H,W,C) bf16 (real channels).  w: (3, Kp, cout_p) bf16 with rows
    ordered (kx, cin) -- kx taps packed into K.  sb: (2, cout_p) f32."""
    N, H, W, C = x.shape
    s = stride
    Ho = (H - 1) // s + 1
    Wo = (W - 1) // s + 1
    Kp = w.shape[1]
    xp = jnp.pad(x, ((0, 0), (1, 1), (1, 1), (0, 0)))
    # kx pre-shift: pack the 3 kx taps into the channel/K dim so only the 3 ky
    # taps remain in-kernel (3 MXU dots, no zero multiplies, and every in-kernel
    # row offset is a whole 16-aligned image row).
    cols = [xp[:, :, kx: kx + s * (Wo - 1) + 1: s, :] for kx in range(3)]
    a = jnp.concatenate(cols, axis=-1)                      # (N, H+2, Wo, 3C)
    Wp = _round_up(Wo, SUB)
    a = jnp.pad(a, ((0, 0), (0, 0), (0, Wp - Wo), (0, Kp - 3 * C)))
    o = _tap_matmul(a, w, sb, row_stride=s, n_tap=3, rows_out=Ho)
    return o[:, :, :Wo, :cout]


def deconv_bn_relu(x, w, sb, s, cout_p, cout):
    """ConvTranspose2d(kernel=s, stride=s) + folded BN + ReLU.
    x: (N,H,W,C) bf16.  w: (1, Cp, s*s*cout_p) bf16, columns ordered (dy,dx,co)."""
    N, H, W, C = x.shape
    Cp = w.shape[1]
    Wp = _round_up(W, SUB)
    a = jnp.pad(x, ((0, 0), (0, 0), (0, Wp - W), (0, Cp - C)))
    o = _tap_matmul(a, w, sb, row_stride=1, n_tap=1, rows_out=H)
    o = o[:, :, :W, :].reshape(N, H, W, s, s, cout_p)
    # channels stay minor -> depth-to-space is a sublane-only shuffle
    o = jnp.transpose(o, (0, 1, 3, 2, 4, 5)).reshape(N, H * s, W * s, cout_p)
    return o[..., :cout]


# ----------------------------------------------------------------------------
# Parameter construction (deterministic, synthetic) + static config
# ----------------------------------------------------------------------------
def make_model(key, num_input_features, num_filters, layer_nums, layer_strides,
               num_upsample_filters, upsample_strides):
    in_filters = [num_input_features, *num_filters[:-1]]
    kit = iter(jax.random.split(key, 512))

    def fold_bn(k, cout):
        k1, k2, k3, k4 = jax.random.split(k, 4)
        gamma = 1.0 + 0.1 * jax.random.normal(k1, (cout,), jnp.float32)
        beta = 0.1 * jax.random.normal(k2, (cout,), jnp.float32)
        mean = 0.1 * jax.random.normal(k3, (cout,), jnp.float32)
        var = 1.0 + 0.1 * jax.random.uniform(k4, (cout,), jnp.float32)
        scale = gamma / jnp.sqrt(var + BN_EPS)
        bias = beta - mean * scale
        return scale, bias

    def conv_layer(cin, cout, stride):
        w = 0.05 * jax.random.normal(next(kit), (3, 3, cin, cout), jnp.float32)
        scale, bias = fold_bn(next(kit), cout)
        Kp = _round_up(3 * cin, LANE)
        cout_p = _round_up(cout, LANE)
        wf = w.reshape(3, 3 * cin, cout)              # (ky, kx*cin + c, cout)
        wf = jnp.pad(wf, ((0, 0), (0, Kp - 3 * cin), (0, cout_p - cout)))
        wf = wf.astype(jnp.bfloat16)
        sb = jnp.stack([jnp.pad(scale, (0, cout_p - cout)),
                        jnp.pad(bias, (0, cout_p - cout))], axis=0)
        p = dict(w=wf, sb=sb)
        r = dict(w=w, scale=scale, bias=bias)
        c = dict(stride=stride, cin=cin, cout=cout, cout_p=cout_p)
        return p, r, c

    def deconv_layer(cin, cout, s):
        w = 0.05 * jax.random.normal(next(kit), (cin, cout, s, s), jnp.float32)
        scale, bias = fold_bn(next(kit), cout)
        Cp = _round_up(cin, LANE)
        cout_p = _round_up(cout, LANE)
        wt = jnp.transpose(w, (0, 2, 3, 1))           # (cin, dy, dx, cout)
        wt = jnp.pad(wt, ((0, Cp - cin), (0, 0), (0, 0), (0, cout_p - cout)))
        wt = wt.reshape(1, Cp, s * s * cout_p).astype(jnp.bfloat16)
        sb = jnp.stack([jnp.tile(jnp.pad(scale, (0, cout_p - cout)), s * s),
                        jnp.tile(jnp.pad(bias, (0, cout_p - cout)), s * s)],
                       axis=0)
        p = dict(w=wt, sb=sb)
        r = dict(w=w, scale=scale, bias=bias)
        c = dict(stride=s, cin=cin, cout=cout, cout_p=cout_p)
        return p, r, c

    def make_branch():
        bp, br, bc, dp, dr, dc = [], [], [], [], [], []
        for i, layer_num in enumerate(layer_nums):
            lp, lr, lc = [], [], []
            p, r, c = conv_layer(in_filters[i], num_filters[i], layer_strides[i])
            lp.append(p); lr.append(r); lc.append(c)
            for _ in range(layer_num):
                p, r, c = conv_layer(num_filters[i], num_filters[i], 1)
                lp.append(p); lr.append(r); lc.append(c)
            bp.append(lp); br.append(lr); bc.append(lc)
            # TODO(synk): upsample_strides < 1 (strided Conv2d deblock) is not
            # implemented; this config only uses ConvTranspose2d deblocks.
            s = int(round(upsample_strides[i]))
            p, r, c = deconv_layer(num_filters[i], num_upsample_filters[i], s)
            dp.append(p); dr.append(r); dc.append(c)
        return (bp, br, bc), (dp, dr, dc)

    (bp, br, bc), (dp, dr, dc) = make_branch()
    (rbp, rbr, rbc), (rdp, rdr, rdc) = make_branch()

    params = dict(blocks=bp, deblocks=dp, radar_blocks=rbp, radar_deblocks=rdp)
    raw = dict(blocks=br, deblocks=dr, radar_blocks=rbr, radar_deblocks=rdr)
    cfg = dict(blocks=bc, deblocks=dc, radar_blocks=rbc, radar_deblocks=rdc,
               num_input_features=num_input_features,
               upsample_start_idx=len(layer_nums) - len(upsample_strides))
    return params, raw, cfg


# ----------------------------------------------------------------------------
# Forward pass (mirrors RPNNoHeadBase.forward); cfg is static, params arrays-only
# ----------------------------------------------------------------------------
def build_forward(cfg):
    n_blocks = len(cfg["blocks"])
    usi = cfg["upsample_start_idx"]

    def apply_block(x, layer_params, layer_cfgs):
        for p, c in zip(layer_params, layer_cfgs):
            x = conv3x3_bn_relu(x, p["w"], p["sb"], c["stride"], c["cout"])
        return x

    def apply_deblock(x, p, c):
        return deconv_bn_relu(x, p["w"], p["sb"], c["stride"], c["cout_p"],
                              c["cout"])

    def forward(x_nchw, params):
        x_all = jnp.transpose(x_nchw, (0, 2, 3, 1)).astype(jnp.bfloat16)
        if x_all.shape[0] == 6:
            x, x_radar = x_all[:3], x_all[3:]
        elif x_all.shape[0] == 2:
            x, x_radar = x_all[:1], x_all[1:]
        else:
            raise ValueError("batch must be 2 or 6 (lidar+radar streams)")

        # TODO(synk): run the lidar/radar branches on the two v7x TensorCores
        # via core_map; they are independent until the final add.
        ups, radar_ups, stages = [], [], []
        for i in range(n_blocks):
            x = apply_block(x, params["blocks"][i], cfg["blocks"][i])
            stages.append(x)
            if i - usi >= 0:
                ups.append(apply_deblock(x, params["deblocks"][i - usi],
                                         cfg["deblocks"][i - usi]))
        for i in range(n_blocks):
            x_radar = apply_block(x_radar, params["radar_blocks"][i],
                                  cfg["radar_blocks"][i])
            stages.append(x_radar)
            if i - usi >= 0:
                radar_ups.append(apply_deblock(
                    x_radar, params["radar_deblocks"][i - usi],
                    cfg["radar_deblocks"][i - usi]))

        xc = jnp.concatenate(ups, axis=-1).astype(jnp.float32)
        xrc = jnp.concatenate(radar_ups, axis=-1).astype(jnp.float32)
        out = xrc + xc

        res = {}
        for i, u in enumerate(ups):
            res[f"up{i}"] = jnp.transpose(u.astype(jnp.float32), (0, 3, 1, 2))
        for i, s_ in enumerate(stages):
            res[f"stage{i}"] = jnp.transpose(s_.astype(jnp.float32), (0, 3, 1, 2))
        res["out"] = jnp.transpose(out, (0, 3, 1, 2))
        return res

    return forward


# ----------------------------------------------------------------------------
# Pure-JAX reference (same bf16 activation storage as the Pallas pipeline)
# ----------------------------------------------------------------------------
def reference_forward(x_nchw, raw, cfg):
    f32 = jnp.float32

    def bf(v):
        return v.astype(jnp.bfloat16).astype(f32)

    def conv(x, lr, lc):
        y = lax.conv_general_dilated(
            bf(x), bf(lr["w"]), (lc["stride"], lc["stride"]), ((1, 1), (1, 1)),
            dimension_numbers=("NHWC", "HWIO", "NHWC"),
            precision=lax.Precision.HIGHEST)
        y = jnp.maximum(y * lr["scale"] + lr["bias"], 0.0)
        return y.astype(jnp.bfloat16).astype(f32)   # pipeline stores bf16

    def deconv(x, lr, lc):
        s = lc["stride"]
        xb, wb = bf(x), bf(lr["w"])
        N, H, W, _ = xb.shape
        t = jnp.einsum("nhwc,cofg->nhfwgo", xb, wb)
        y = t.reshape(N, H * s, W * s, lc["cout"])
        y = jnp.maximum(y * lr["scale"] + lr["bias"], 0.0)
        return y.astype(jnp.bfloat16).astype(f32)

    def apply_block(x, lrs, lcs):
        for lr, lc in zip(lrs, lcs):
            x = conv(x, lr, lc)
        return x

    x_all = jnp.transpose(x_nchw, (0, 2, 3, 1))
    if x_all.shape[0] == 6:
        x, x_radar = x_all[:3], x_all[3:]
    elif x_all.shape[0] == 2:
        x, x_radar = x_all[:1], x_all[1:]
    usi = cfg["upsample_start_idx"]
    ups, radar_ups, stages = [], [], []
    for i in range(len(raw["blocks"])):
        x = apply_block(x, raw["blocks"][i], cfg["blocks"][i])
        stages.append(x)
        if i - usi >= 0:
            ups.append(deconv(x, raw["deblocks"][i - usi],
                              cfg["deblocks"][i - usi]))
    for i in range(len(raw["radar_blocks"])):
        x_radar = apply_block(x_radar, raw["radar_blocks"][i],
                              cfg["radar_blocks"][i])
        stages.append(x_radar)
        if i - usi >= 0:
            radar_ups.append(deconv(x_radar, raw["radar_deblocks"][i - usi],
                                    cfg["radar_deblocks"][i - usi]))
    out = jnp.concatenate(radar_ups, axis=-1) + jnp.concatenate(ups, axis=-1)
    res = {f"up{i}": jnp.transpose(u, (0, 3, 1, 2)) for i, u in enumerate(ups)}
    for i, s_ in enumerate(stages):
        res[f"stage{i}"] = jnp.transpose(s_, (0, 3, 1, 2))
    res["out"] = jnp.transpose(out, (0, 3, 1, 2))
    return res


# ----------------------------------------------------------------------------
# Main
# ----------------------------------------------------------------------------
if __name__ == "__main__":
    # Small synthetic config consistent with the module's constraints:
    #   upsample_strides[i] / prod(layer_strides[:i+1]) is constant (0.5).
    num_input_features = 32
    layer_nums = (1, 1, 1)
    layer_strides = (2, 2, 2)
    num_filters = (32, 32, 64)
    upsample_strides = (1, 2, 4)
    num_upsample_filters = (64, 64, 64)

    key = jax.random.PRNGKey(0)
    kx, kp = jax.random.split(key)
    # batch 2 -> forward splits into lidar (1) and radar (1) streams.
    x = jax.random.normal(kx, (2, num_input_features, 16, 16), jnp.float32)

    params, raw, cfg = make_model(kp, num_input_features, num_filters,
                                  layer_nums, layer_strides,
                                  num_upsample_filters, upsample_strides)

    fwd = jax.jit(build_forward(cfg))   # cfg static (closure), params = arrays
    res = fwd(x, params)
    jax.block_until_ready(res)

    # shape sanity checks
    assert res["out"].shape == (1, sum(num_upsample_filters), 8, 8)
    assert res["stage0"].shape == (1, num_filters[0], 8, 8)
    assert res["stage5"].shape == (1, num_filters[2], 2, 2)
    assert all(bool(jnp.isfinite(v).all()) for v in res.values())

    # numerical check against a pure-JAX reference (same bf16 rounding points)
    ref = jax.jit(lambda xx: reference_forward(xx, raw, cfg))(x)
    jax.block_until_ready(ref)
    for k in res:
        np.testing.assert_allclose(np.asarray(res[k]), np.asarray(ref[k]),
                                   rtol=2e-2, atol=2e-2)

    print("KERNEL_OK")
</pallas_src>

<mosaic_0001>
module attributes {stable_mosaic.version = 11 : i64} {
  func.func @kernel(%arg0: i32, %arg1: i32, %arg2: i32, %arg3: memref<1x1x16x128xbf16, #tpu.memory_space<vmem>>, %arg4: memref<1x1x16x128xbf16, #tpu.memory_space<vmem>>, %arg5: memref<1x1x16x128xbf16, #tpu.memory_space<vmem>>, %arg6: memref<3x128x128xbf16, #tpu.memory_space<vmem>>, %arg7: memref<2x128xf32, #tpu.memory_space<vmem>>, %arg8: memref<1x1x16x128xbf16, #tpu.memory_space<vmem>>) attributes {dimension_semantics = [#tpu.dimension_semantics<arbitrary>, #tpu.dimension_semantics<parallel>, #tpu.dimension_semantics<parallel>], iteration_bounds = array<i64: 1, 1, 8>, scalar_prefetch = 0 : i64, scratch_operands = 0 : i64, tpu.core_type = #tpu.core_type<tc>, window_params = [{transform_indices = @transform_0, window_bounds = array<i64: 1, 1, 16, 128>}, {transform_indices = @transform_1, window_bounds = array<i64: 1, 1, 16, 128>}, {transform_indices = @transform_2, window_bounds = array<i64: 1, 1, 16, 128>}, {transform_indices = @transform_3, window_bounds = array<i64: 3, 128, 128>}, {transform_indices = @transform_4, window_bounds = array<i64: 2, 128>}, {transform_indices = @transform_5, window_bounds = array<i64: 1, 1, 16, 128>}]} {
    %c0 = arith.constant 0 : index
    %c0_0 = arith.constant 0 : index
    %c0_1 = arith.constant 0 : index
    %c0_2 = arith.constant 0 : index
    %0 = vector.load %arg3[%c0, %c0_0, %c0_1, %c0_2] : memref<1x1x16x128xbf16, #tpu.memory_space<vmem>>, vector<1x1x16x128xbf16>
    %1 = vector.shape_cast %0 : vector<1x1x16x128xbf16> to vector<16x128xbf16>
    %c0_3 = arith.constant 0 : index
    %c0_4 = arith.constant 0 : index
    %c0_5 = arith.constant 0 : index
    %2 = vector.load %arg6[%c0_3, %c0_4, %c0_5] : memref<3x128x128xbf16, #tpu.memory_space<vmem>>, vector<1x128x128xbf16>
    %3 = vector.shape_cast %2 : vector<1x128x128xbf16> to vector<128x128xbf16>
    %cst = arith.constant dense<0.000000e+00> : vector<16x128xf32>
    %4 = tpu.matmul %1, %3, %cst {dimension_numbers = #tpu.dot_dimension_numbers<[1], [0], [0], [1], [0, 0, 1, 1], [], []>} : vector<16x128xbf16>, vector<128x128xbf16>, vector<16x128xf32> -> vector<16x128xf32>
    %c0_6 = arith.constant 0 : index
    %c0_7 = arith.constant 0 : index
    %c0_8 = arith.constant 0 : index
    %c0_9 = arith.constant 0 : index
    %5 = vector.load %arg4[%c0_6, %c0_7, %c0_8, %c0_9] : memref<1x1x16x128xbf16, #tpu.memory_space<vmem>>, vector<1x1x16x128xbf16>
    %6 = vector.shape_cast %5 : vector<1x1x16x128xbf16> to vector<16x128xbf16>
    %c1 = arith.constant 1 : index
    %c0_10 = arith.constant 0 : index
    %c0_11 = arith.constant 0 : index
    %7 = vector.load %arg6[%c1, %c0_10, %c0_11] : memref<3x128x128xbf16, #tpu.memory_space<vmem>>, vector<1x128x128xbf16>
    %8 = vector.shape_cast %7 : vector<1x128x128xbf16> to vector<128x128xbf16>
    %cst_12 = arith.constant dense<0.000000e+00> : vector<16x128xf32>
    %9 = tpu.matmul %6, %8, %cst_12 {dimension_numbers = #tpu.dot_dimension_numbers<[1], [0], [0], [1], [0, 0, 1, 1], [], []>} : vector<16x128xbf16>, vector<128x128xbf16>, vector<16x128xf32> -> vector<16x128xf32>
    %10 = arith.addf %4, %9 : vector<16x128xf32>
    %c0_13 = arith.constant 0 : index
    %c0_14 = arith.constant 0 : index
    %c0_15 = arith.constant 0 : index
    %c0_16 = arith.constant 0 : index
    %11 = vector.load %arg5[%c0_13, %c0_14, %c0_15, %c0_16] : memref<1x1x16x128xbf16, #tpu.memory_space<vmem>>, vector<1x1x16x128xbf16>
    %12 = vector.shape_cast %11 : vector<1x1x16x128xbf16> to vector<16x128xbf16>
    %c2 = arith.constant 2 : index
    %c0_17 = arith.constant 0 : index
    %c0_18 = arith.constant 0 : index
    %13 = vector.load %arg6[%c2, %c0_17, %c0_18] : memref<3x128x128xbf16, #tpu.memory_space<vmem>>, vector<1x128x128xbf16>
    %14 = vector.shape_cast %13 : vector<1x128x128xbf16> to vector<128x128xbf16>
    %cst_19 = arith.constant dense<0.000000e+00> : vector<16x128xf32>
    %15 = tpu.matmul %12, %14, %cst_19 {dimension_numbers = #tpu.dot_dimension_numbers<[1], [0], [0], [1], [0, 0, 1, 1], [], []>} : vector<16x128xbf16>, vector<128x128xbf16>, vector<16x128xf32> -> vector<16x128xf32>
    %16 = arith.addf %10, %15 : vector<16x128xf32>
    %c0_20 = arith.constant 0 : index
    %c0_21 = arith.constant 0 : index
    %17 = vector.load %arg7[%c0_20, %c0_21] : memref<2x128xf32, #tpu.memory_space<vmem>>, vector<1x128xf32>
    %18 = vector.broadcast %17 : vector<1x128xf32> to vector<16x128xf32>
    %19 = arith.mulf %16, %18 : vector<16x128xf32>
    %c1_22 = arith.constant 1 : index
    %c0_23 = arith.constant 0 : index
    %20 = vector.load %arg7[%c1_22, %c0_23] : memref<2x128xf32, #tpu.memory_space<vmem>>, vector<1x128xf32>
    %21 = vector.broadcast %20 : vector<1x128xf32> to vector<16x128xf32>
    %22 = arith.addf %19, %21 : vector<16x128xf32>
    %cst_24 = arith.constant 0.000000e+00 : f32
    %23 = vector.broadcast %cst_24 : f32 to vector<16x128xf32>
    %24 = arith.maximumf %22, %23 : vector<16x128xf32>
    %25 = arith.truncf %24 : vector<16x128xf32> to vector<16x128xbf16>
    %c0_25 = arith.constant 0 : index
    %c0_26 = arith.constant 0 : index
    %c0_27 = arith.constant 0 : index
    %c0_28 = arith.constant 0 : index
    %26 = vector.load %arg8[%c0_25, %c0_26, %c0_27, %c0_28] : memref<1x1x16x128xbf16, #tpu.memory_space<vmem>>, vector<1x1x16x128xbf16>
    %27 = vector.shape_cast %26 : vector<1x1x16x128xbf16> to vector<16x128xbf16>
    %28 = vector.shape_cast %25 : vector<16x128xbf16> to vector<1x1x16x128xbf16>
    tpu.vector_store %arg8[%c0_25, %c0_26, %c0_27, %c0_28], %28 {strides = array<i32>} : memref<1x1x16x128xbf16, #tpu.memory_space<vmem>>, vector<1x1x16x128xbf16>,
    return
  }
  func.func @transform_0(%arg0: i32, %arg1: i32, %arg2: i32) -> (i32, i32, i32, i32) {
    %c2_i32 = arith.constant 2 : i32
    %0 = arith.muli %c2_i32, %arg2 : i32
    %c0_i32 = arith.constant 0 : i32
    %1 = arith.addi %0, %c0_i32 : i32
    %c0_i32_0 = arith.constant 0 : i32
    %c0_i32_1 = arith.constant 0 : i32
    %c0_i32_2 = arith.constant 0 : i32
    return %arg1, %1, %c0_i32_0, %c0_i32_1 : i32, i32, i32, i32
  }
  func.func @transform_1(%arg0: i32, %arg1: i32, %arg2: i32) -> (i32, i32, i32, i32) {
    %c2_i32 = arith.constant 2 : i32
    %0 = arith.muli %c2_i32, %arg2 : i32
    %c1_i32 = arith.constant 1 : i32
    %1 = arith.addi %0, %c1_i32 : i32
    %c0_i32 = arith.constant 0 : i32
    %c0_i32_0 = arith.constant 0 : i32
    %c0_i32_1 = arith.constant 0 : i32
    return %arg1, %1, %c0_i32, %c0_i32_0 : i32, i32, i32, i32
  }
  func.func @transform_2(%arg0: i32, %arg1: i32, %arg2: i32) -> (i32, i32, i32, i32) {
    %c2_i32 = arith.constant 2 : i32
    %0 = arith.muli %c2_i32, %arg2 : i32
    %c2_i32_0 = arith.constant 2 : i32
    %1 = arith.addi %0, %c2_i32_0 : i32
    %c0_i32 = arith.constant 0 : i32
    %c0_i32_1 = arith.constant 0 : i32
    %c0_i32_2 = arith.constant 0 : i32
    return %arg1, %1, %c0_i32, %c0_i32_1 : i32, i32, i32, i32
  }
  func.func @transform_3(%arg0: i32, %arg1: i32, %arg2: i32) -> (i32, i32, i32) {
    %c0_i32 = arith.constant 0 : i32
    %c0_i32_0 = arith.constant 0 : i32
    %c0_i32_1 = arith.constant 0 : i32
    return %c0_i32, %c0_i32_0, %arg0 : i32, i32, i32
  }
  func.func @transform_4(%arg0: i32, %arg1: i32, %arg2: i32) -> (i32, i32) {
    %c0_i32 = arith.constant 0 : i32
    %c0_i32_0 = arith.constant 0 : i32
    return %c0_i32, %arg0 : i32, i32
  }
  func.func @transform_5(%arg0: i32, %arg1: i32, %arg2: i32) -> (i32, i32, i32, i32) {
    %c0_i32 = arith.constant 0 : i32
    %c0_i32_0 = arith.constant 0 : i32
    return %arg1, %arg2, %c0_i32, %arg0 : i32, i32, i32, i32
  }
}

module attributes {stable_mosaic.version = 11 : i64} {
  func.func @kernel(%arg0: i32, %arg1: i32, %arg2: i32, %arg3: memref<1x1x16x128xbf16, #tpu.memory_space<vmem>>, %arg4: memref<1x1x16x128xbf16, #tpu.memory_space<vmem>>, %arg5: memref<1x1x16x128xbf16, #tpu.memory_space<vmem>>, %arg6: memref<3x128x128xbf16, #tpu.memory_space<vmem>>, %arg7: memref<2x128xf32, #tpu.memory_space<vmem>>, %arg8: memref<1x1x16x128xbf16, #tpu.memory_space<vmem>>) attributes {dimension_semantics = [#tpu.dimension_semantics<arbitrary>, #tpu.dimension_semantics<parallel>, #tpu.dimension_semantics<parallel>], iteration_bounds = array<i64: 1, 1, 8>, scalar_prefetch = 0 : i64, scratch_operands = 0 : i64, tpu.core_type = #tpu.core_type<tc>, window_params = [{transform_indices = @transform_0, window_bounds = array<i64: 1, 1, 16, 128>}, {transform_indices = @transform_1, window_bounds = array<i64: 1, 1, 16, 128>}, {transform_indices = @transform_2, window_bounds = array<i64: 1, 1, 16, 128>}, {transform_indices = @transform_3, window_bounds = array<i64: 3, 128, 128>}, {transform_indices = @transform_4, window_bounds = array<i64: 2, 128>}, {transform_indices = @transform_5, window_bounds = array<i64: 1, 1, 16, 128>}]} {
    %c0 = arith.constant 0 : index
    %c0_0 = arith.constant 0 : index
    %c0_1 = arith.constant 0 : index
    %c0_2 = arith.constant 0 : index
    %0 = vector.load %arg3[%c0, %c0_0, %c0_1, %c0_2] : memref<1x1x16x128xbf16, #tpu.memory_space<vmem>>, vector<1x1x16x128xbf16>
    %1 = vector.shape_cast %0 : vector<1x1x16x128xbf16> to vector<16x128xbf16>
    %c0_3 = arith.constant 0 : index
    %c0_4 = arith.constant 0 : index
    %c0_5 = arith.constant 0 : index
    %2 = vector.load %arg6[%c0_3, %c0_4, %c0_5] : memref<3x128x128xbf16, #tpu.memory_space<vmem>>, vector<1x128x128xbf16>
    %3 = vector.shape_cast %2 : vector<1x128x128xbf16> to vector<128x128xbf16>
    %cst = arith.constant dense<0.000000e+00> : vector<16x128xf32>
    %4 = tpu.matmul %1, %3, %cst {dimension_numbers = #tpu.dot_dimension_numbers<[1], [0], [0], [1], [0, 0, 1, 1], [], []>} : vector<16x128xbf16>, vector<128x128xbf16>, vector<16x128xf32> -> vector<16x128xf32>
    %c0_6 = arith.constant 0 : index
    %c0_7 = arith.constant 0 : index
    %c0_8 = arith.constant 0 : index
    %c0_9 = arith.constant 0 : index
    %5 = vector.load %arg4[%c0_6, %c0_7, %c0_8, %c0_9] : memref<1x1x16x128xbf16, #tpu.memory_space<vmem>>, vector<1x1x16x128xbf16>
    %6 = vector.shape_cast %5 : vector<1x1x16x128xbf16> to vector<16x128xbf16>
    %c1 = arith.constant 1 : index
    %c0_10 = arith.constant 0 : index
    %c0_11 = arith.constant 0 : index
    %7 = vector.load %arg6[%c1, %c0_10, %c0_11] : memref<3x128x128xbf16, #tpu.memory_space<vmem>>, vector<1x128x128xbf16>
    %8 = vector.shape_cast %7 : vector<1x128x128xbf16> to vector<128x128xbf16>
    %cst_12 = arith.constant dense<0.000000e+00> : vector<16x128xf32>
    %9 = tpu.matmul %6, %8, %cst_12 {dimension_numbers = #tpu.dot_dimension_numbers<[1], [0], [0], [1], [0, 0, 1, 1], [], []>} : vector<16x128xbf16>, vector<128x128xbf16>, vector<16x128xf32> -> vector<16x128xf32>
    %10 = arith.addf %4, %9 : vector<16x128xf32>
    %c0_13 = arith.constant 0 : index
    %c0_14 = arith.constant 0 : index
    %c0_15 = arith.constant 0 : index
    %c0_16 = arith.constant 0 : index
    %11 = vector.load %arg5[%c0_13, %c0_14, %c0_15, %c0_16] : memref<1x1x16x128xbf16, #tpu.memory_space<vmem>>, vector<1x1x16x128xbf16>
    %12 = vector.shape_cast %11 : vector<1x1x16x128xbf16> to vector<16x128xbf16>
    %c2 = arith.constant 2 : index
    %c0_17 = arith.constant 0 : index
    %c0_18 = arith.constant 0 : index
    %13 = vector.load %arg6[%c2, %c0_17, %c0_18] : memref<3x128x128xbf16, #tpu.memory_space<vmem>>, vector<1x128x128xbf16>
    %14 = vector.shape_cast %13 : vector<1x128x128xbf16> to vector<128x128xbf16>
    %cst_19 = arith.constant dense<0.000000e+00> : vector<16x128xf32>
    %15 = tpu.matmul %12, %14, %cst_19 {dimension_numbers = #tpu.dot_dimension_numbers<[1], [0], [0], [1], [0, 0, 1, 1], [], []>} : vector<16x128xbf16>, vector<128x128xbf16>, vector<16x128xf32> -> vector<16x128xf32>
    %16 = arith.addf %10, %15 : vector<16x128xf32>
    %c0_20 = arith.constant 0 : index
    %c0_21 = arith.constant 0 : index
    %17 = vector.load %arg7[%c0_20, %c0_21] : memref<2x128xf32, #tpu.memory_space<vmem>>, vector<1x128xf32>
    %18 = vector.broadcast %17 : vector<1x128xf32> to vector<16x128xf32>
    %19 = arith.mulf %16, %18 : vector<16x128xf32>
    %c1_22 = arith.constant 1 : index
    %c0_23 = arith.constant 0 : index
    %20 = vector.load %arg7[%c1_22, %c0_23] : memref<2x128xf32, #tpu.memory_space<vmem>>, vector<1x128xf32>
    %21 = vector.broadcast %20 : vector<1x128xf32> to vector<16x128xf32>
    %22 = arith.addf %19, %21 : vector<16x128xf32>
    %cst_24 = arith.constant 0.000000e+00 : f32
    %23 = vector.broadcast %cst_24 : f32 to vector<16x128xf32>
    %24 = arith.maximumf %22, %23 : vector<16x128xf32>
    %25 = arith.truncf %24 : vector<16x128xf32> to vector<16x128xbf16>
    %c0_25 = arith.constant 0 : index
    %c0_26 = arith.constant 0 : index
    %c0_27 = arith.constant 0 : index
    %c0_28 = arith.constant 0 : index
    %26 = vector.load %arg8[%c0_25, %c0_26, %c0_27, %c0_28] : memref<1x1x16x128xbf16, #tpu.memory_space<vmem>>, vector<1x1x16x128xbf16>
    %27 = vector.shape_cast %26 : vector<1x1x16x128xbf16> to vector<16x128xbf16>
    %28 = vector.shape_cast %25 : vector<16x128xbf16> to vector<1x1x16x128xbf16>
    tpu.vector_store %arg8[%c0_25, %c0_26, %c0_27, %c0_28], %28 {strides = array<i32>} : memref<1x1x16x128xbf16, #tpu.memory_space<vmem>>, vector<1x1x16x128xbf16>,
    return
  }
  func.func @transform_0(%arg0: i32, %arg1: i32, %arg2: i32) -> (i32, i32, i32, i32) {
    %c1_i32 = arith.constant 1 : i32
    %0 = arith.muli %c1_i32, %arg2 : i32
    %c0_i32 = arith.constant 0 : i32
    %1 = arith.addi %0, %c0_i32 : i32
    %c0_i32_0 = arith.constant 0 : i32
    %c0_i32_1 = arith.constant 0 : i32
    %c0_i32_2 = arith.constant 0 : i32
    return %arg1, %1, %c0_i32_0, %c0_i32_1 : i32, i32, i32, i32
  }
  func.func @transform_1(%arg0: i32, %arg1: i32, %arg2: i32) -> (i32, i32, i32, i32) {
    %c1_i32 = arith.constant 1 : i32
    %0 = arith.muli %c1_i32, %arg2 : i32
    %c1_i32_0 = arith.constant 1 : i32
    %1 = arith.addi %0, %c1_i32_0 : i32
    %c0_i32 = arith.constant 0 : i32
    %c0_i32_1 = arith.constant 0 : i32
    %c0_i32_2 = arith.constant 0 : i32
    return %arg1, %1, %c0_i32, %c0_i32_1 : i32, i32, i32, i32
  }
  func.func @transform_2(%arg0: i32, %arg1: i32, %arg2: i32) -> (i32, i32, i32, i32) {
    %c1_i32 = arith.constant 1 : i32
    %0 = arith.muli %c1_i32, %arg2 : i32
    %c2_i32 = arith.constant 2 : i32
    %1 = arith.addi %0, %c2_i32 : i32
    %c0_i32 = arith.constant 0 : i32
    %c0_i32_0 = arith.constant 0 : i32
    %c0_i32_1 = arith.constant 0 : i32
    return %arg1, %1, %c0_i32, %c0_i32_0 : i32, i32, i32, i32
  }
  func.func @transform_3(%arg0: i32, %arg1: i32, %arg2: i32) -> (i32, i32, i32) {
    %c0_i32 = arith.constant 0 : i32
    %c0_i32_0 = arith.constant 0 : i32
    %c0_i32_1 = arith.constant 0 : i32
    return %c0_i32, %c0_i32_0, %arg0 : i32, i32, i32
  }
  func.func @transform_4(%arg0: i32, %arg1: i32, %arg2: i32) -> (i32, i32) {
    %c0_i32 = arith.constant 0 : i32
    %c0_i32_0 = arith.constant 0 : i32
    return %c0_i32, %arg0 : i32, i32
  }
  func.func @transform_5(%arg0: i32, %arg1: i32, %arg2: i32) -> (i32, i32, i32, i32) {
    %c0_i32 = arith.constant 0 : i32
    %c0_i32_0 = arith.constant 0 : i32
    return %arg1, %arg2, %c0_i32, %arg0 : i32, i32, i32, i32
  }
}

module attributes {stable_mosaic.version = 11 : i64} {
  func.func @kernel(%arg0: i32, %arg1: i32, %arg2: i32, %arg3: memref<1x1x16x128xbf16, #tpu.memory_space<vmem>>, %arg4: memref<1x128x128xbf16, #tpu.memory_space<vmem>>, %arg5: memref<2x128xf32, #tpu.memory_space<vmem>>, %arg6: memref<1x1x16x128xbf16, #tpu.memory_space<vmem>>) attributes {dimension_semantics = [#tpu.dimension_semantics<arbitrary>, #tpu.dimension_semantics<parallel>, #tpu.dimension_semantics<parallel>], iteration_bounds = array<i64: 1, 1, 8>, scalar_prefetch = 0 : i64, scratch_operands = 0 : i64, tpu.core_type = #tpu.core_type<tc>, window_params = [{transform_indices = @transform_0, window_bounds = array<i64: 1, 1, 16, 128>}, {transform_indices = @transform_1, window_bounds = array<i64: 1, 128, 128>}, {transform_indices = @transform_2, window_bounds = array<i64: 2, 128>}, {transform_indices = @transform_3, window_bounds = array<i64: 1, 1, 16, 128>}]} {
    %c0 = arith.constant 0 : index
    %c0_0 = arith.constant 0 : index
    %c0_1 = arith.constant 0 : index
    %c0_2 = arith.constant 0 : index
    %0 = vector.load %arg3[%c0, %c0_0, %c0_1, %c0_2] : memref<1x1x16x128xbf16, #tpu.memory_space<vmem>>, vector<1x1x16x128xbf16>
    %1 = vector.shape_cast %0 : vector<1x1x16x128xbf16> to vector<16x128xbf16>
    %c0_3 = arith.constant 0 : index
    %c0_4 = arith.constant 0 : index
    %c0_5 = arith.constant 0 : index
    %2 = vector.load %arg4[%c0_3, %c0_4, %c0_5] : memref<1x128x128xbf16, #tpu.memory_space<vmem>>, vector<1x128x128xbf16>
    %3 = vector.shape_cast %2 : vector<1x128x128xbf16> to vector<128x128xbf16>
    %cst = arith.constant dense<0.000000e+00> : vector<16x128xf32>
    %4 = tpu.matmul %1, %3, %cst {dimension_numbers = #tpu.dot_dimension_numbers<[1], [0], [0], [1], [0, 0, 1, 1], [], []>} : vector<16x128xbf16>, vector<128x128xbf16>, vector<16x128xf32> -> vector<16x128xf32>
    %c0_6 = arith.constant 0 : index
    %c0_7 = arith.constant 0 : index
    %5 = vector.load %arg5[%c0_6, %c0_7] : memref<2x128xf32, #tpu.memory_space<vmem>>, vector<1x128xf32>
    %6 = vector.broadcast %5 : vector<1x128xf32> to vector<16x128xf32>
    %7 = arith.mulf %4, %6 : vector<16x128xf32>
    %c1 = arith.constant 1 : index
    %c0_8 = arith.constant 0 : index
    %8 = vector.load %arg5[%c1, %c0_8] : memref<2x128xf32, #tpu.memory_space<vmem>>, vector<1x128xf32>
    %9 = vector.broadcast %8 : vector<1x128xf32> to vector<16x128xf32>
    %10 = arith.addf %7, %9 : vector<16x128xf32>
    %cst_9 = arith.constant 0.000000e+00 : f32
    %11 = vector.broadcast %cst_9 : f32 to vector<16x128xf32>
    %12 = arith.maximumf %10, %11 : vector<16x128xf32>
    %13 = arith.truncf %12 : vector<16x128xf32> to vector<16x128xbf16>
    %c0_10 = arith.constant 0 : index
    %c0_11 = arith.constant 0 : index
    %c0_12 = arith.constant 0 : index
    %c0_13 = arith.constant 0 : index
    %14 = vector.load %arg6[%c0_10, %c0_11, %c0_12, %c0_13] : memref<1x1x16x128xbf16, #tpu.memory_space<vmem>>, vector<1x1x16x128xbf16>
    %15 = vector.shape_cast %14 : vector<1x1x16x128xbf16> to vector<16x128xbf16>
    %16 = vector.shape_cast %13 : vector<16x128xbf16> to vector<1x1x16x128xbf16>
    tpu.vector_store %arg6[%c0_10, %c0_11, %c0_12, %c0_13], %16 {strides = array<i32>} : memref<1x1x16x128xbf16, #tpu.memory_space<vmem>>, vector<1x1x16x128xbf16>,
    return
  }
  func.func @transform_0(%arg0: i32, %arg1: i32, %arg2: i32) -> (i32, i32, i32, i32) {
    %c1_i32 = arith.constant 1 : i32
    %0 = arith.muli %c1_i32, %arg2 : i32
    %c0_i32 = arith.constant 0 : i32
    %1 = arith.addi %0, %c0_i32 : i32
    %c0_i32_0 = arith.constant 0 : i32
    %c0_i32_1 = arith.constant 0 : i32
    %c0_i32_2 = arith.constant 0 : i32
    return %arg1, %1, %c0_i32_0, %c0_i32_1 : i32, i32, i32, i32
  }
  func.func @transform_1(%arg0: i32, %arg1: i32, %arg2: i32) -> (i32, i32, i32) {
    %c0_i32 = arith.constant 0 : i32
    %c0_i32_0 = arith.constant 0 : i32
    %c0_i32_1 = arith.constant 0 : i32
    return %c0_i32, %c0_i32_0, %arg0 : i32, i32, i32
  }
  func.func @transform_2(%arg0: i32, %arg1: i32, %arg2: i32) -> (i32, i32) {
    %c0_i32 = arith.constant 0 : i32
    %c0_i32_0 = arith.constant 0 : i32
    return %c0_i32, %arg0 : i32, i32
  }
  func.func @transform_3(%arg0: i32, %arg1: i32, %arg2: i32) -> (i32, i32, i32, i32) {
    %c0_i32 = arith.constant 0 : i32
    %c0_i32_0 = arith.constant 0 : i32
    return %arg1, %arg2, %c0_i32, %arg0 : i32, i32, i32, i32
  }
}

module attributes {stable_mosaic.version = 11 : i64} {
  func.func @kernel(%arg0: i32, %arg1: i32, %arg2: i32, %arg3: memref<1x1x16x128xbf16, #tpu.memory_space<vmem>>, %arg4: memref<1x1x16x128xbf16, #tpu.memory_space<vmem>>, %arg5: memref<1x1x16x128xbf16, #tpu.memory_space<vmem>>, %arg6: memref<3x128x128xbf16, #tpu.memory_space<vmem>>, %arg7: memref<2x128xf32, #tpu.memory_space<vmem>>, %arg8: memref<1x1x16x128xbf16, #tpu.memory_space<vmem>>) attributes {dimension_semantics = [#tpu.dimension_semantics<arbitrary>, #tpu.dimension_semantics<parallel>, #tpu.dimension_semantics<parallel>], iteration_bounds = array<i64: 1, 1, 4>, scalar_prefetch = 0 : i64, scratch_operands = 0 : i64, tpu.core_type = #tpu.core_type<tc>, window_params = [{transform_indices = @transform_0, window_bounds = array<i64: 1, 1, 16, 128>}, {transform_indices = @transform_1, window_bounds = array<i64: 1, 1, 16, 128>}, {transform_indices = @transform_2, window_bounds = array<i64: 1, 1, 16, 128>}, {transform_indices = @transform_3, window_bounds = array<i64: 3, 128, 128>}, {transform_indices = @transform_4, window_bounds = array<i64: 2, 128>}, {transform_indices = @transform_5, window_bounds = array<i64: 1, 1, 16, 128>}]} {
    %c0 = arith.constant 0 : index
    %c0_0 = arith.constant 0 : index
    %c0_1 = arith.constant 0 : index
    %c0_2 = arith.constant 0 : index
    %0 = vector.load %arg3[%c0, %c0_0, %c0_1, %c0_2] : memref<1x1x16x128xbf16, #tpu.memory_space<vmem>>, vector<1x1x16x128xbf16>
    %1 = vector.shape_cast %0 : vector<1x1x16x128xbf16> to vector<16x128xbf16>
    %c0_3 = arith.constant 0 : index
    %c0_4 = arith.constant 0 : index
    %c0_5 = arith.constant 0 : index
    %2 = vector.load %arg6[%c0_3, %c0_4, %c0_5] : memref<3x128x128xbf16, #tpu.memory_space<vmem>>, vector<1x128x128xbf16>
    %3 = vector.shape_cast %2 : vector<1x128x128xbf16> to vector<128x128xbf16>
    %cst = arith.constant dense<0.000000e+00> : vector<16x128xf32>
    %4 = tpu.matmul %1, %3, %cst {dimension_numbers = #tpu.dot_dimension_numbers<[1], [0], [0], [1], [0, 0, 1, 1], [], []>} : vector<16x128xbf16>, vector<128x128xbf16>, vector<16x128xf32> -> vector<16x128xf32>
    %c0_6 = arith.constant 0 : index
    %c0_7 = arith.constant 0 : index
    %c0_8 = arith.constant 0 : index
    %c0_9 = arith.constant 0 : index
    %5 = vector.load %arg4[%c0_6, %c0_7, %c0_8, %c0_9] : memref<1x1x16x128xbf16, #tpu.memory_space<vmem>>, vector<1x1x16x128xbf16>
    %6 = vector.shape_cast %5 : vector<1x1x16x128xbf16> to vector<16x128xbf16>
    %c1 = arith.constant 1 : index
    %c0_10 = arith.constant 0 : index
    %c0_11 = arith.constant 0 : index
    %7 = vector.load %arg6[%c1, %c0_10, %c0_11] : memref<3x128x128xbf16, #tpu.memory_space<vmem>>, vector<1x128x128xbf16>
    %8 = vector.shape_cast %7 : vector<1x128x128xbf16> to vector<128x128xbf16>
    %cst_12 = arith.constant dense<0.000000e+00> : vector<16x128xf32>
    %9 = tpu.matmul %6, %8, %cst_12 {dimension_numbers = #tpu.dot_dimension_numbers<[1], [0], [0], [1], [0, 0, 1, 1], [], []>} : vector<16x128xbf16>, vector<128x128xbf16>, vector<16x128xf32> -> vector<16x128xf32>
    %10 = arith.addf %4, %9 : vector<16x128xf32>
    %c0_13 = arith.constant 0 : index
    %c0_14 = arith.constant 0 : index
    %c0_15 = arith.constant 0 : index
    %c0_16 = arith.constant 0 : index
    %11 = vector.load %arg5[%c0_13, %c0_14, %c0_15, %c0_16] : memref<1x1x16x128xbf16, #tpu.memory_space<vmem>>, vector<1x1x16x128xbf16>
    %12 = vector.shape_cast %11 : vector<1x1x16x128xbf16> to vector<16x128xbf16>
    %c2 = arith.constant 2 : index
    %c0_17 = arith.constant 0 : index
    %c0_18 = arith.constant 0 : index
    %13 = vector.load %arg6[%c2, %c0_17, %c0_18] : memref<3x128x128xbf16, #tpu.memory_space<vmem>>, vector<1x128x128xbf16>
    %14 = vector.shape_cast %13 : vector<1x128x128xbf16> to vector<128x128xbf16>
    %cst_19 = arith.constant dense<0.000000e+00> : vector<16x128xf32>
    %15 = tpu.matmul %12, %14, %cst_19 {dimension_numbers = #tpu.dot_dimension_numbers<[1], [0], [0], [1], [0, 0, 1, 1], [], []>} : vector<16x128xbf16>, vector<128x128xbf16>, vector<16x128xf32> -> vector<16x128xf32>
    %16 = arith.addf %10, %15 : vector<16x128xf32>
    %c0_20 = arith.constant 0 : index
    %c0_21 = arith.constant 0 : index
    %17 = vector.load %arg7[%c0_20, %c0_21] : memref<2x128xf32, #tpu.memory_space<vmem>>, vector<1x128xf32>
    %18 = vector.broadcast %17 : vector<1x128xf32> to vector<16x128xf32>
    %19 = arith.mulf %16, %18 : vector<16x128xf32>
    %c1_22 = arith.constant 1 : index
    %c0_23 = arith.constant 0 : index
    %20 = vector.load %arg7[%c1_22, %c0_23] : memref<2x128xf32, #tpu.memory_space<vmem>>, vector<1x128xf32>
    %21 = vector.broadcast %20 : vector<1x128xf32> to vector<16x128xf32>
    %22 = arith.addf %19, %21 : vector<16x128xf32>
    %cst_24 = arith.constant 0.000000e+00 : f32
    %23 = vector.broadcast %cst_24 : f32 to vector<16x128xf32>
    %24 = arith.maximumf %22, %23 : vector<16x128xf32>
    %25 = arith.truncf %24 : vector<16x128xf32> to vector<16x128xbf16>
    %c0_25 = arith.constant 0 : index
    %c0_26 = arith.constant 0 : index
    %c0_27 = arith.constant 0 : index
    %c0_28 = arith.constant 0 : index
    %26 = vector.load %arg8[%c0_25, %c0_26, %c0_27, %c0_28] : memref<1x1x16x128xbf16, #tpu.memory_space<vmem>>, vector<1x1x16x128xbf16>
    %27 = vector.shape_cast %26 : vector<1x1x16x128xbf16> to vector<16x128xbf16>
    %28 = vector.shape_cast %25 : vector<16x128xbf16> to vector<1x1x16x128xbf16>
    tpu.vector_store %arg8[%c0_25, %c0_26, %c0_27, %c0_28], %28 {strides = array<i32>} : memref<1x1x16x128xbf16, #tpu.memory_space<vmem>>, vector<1x1x16x128xbf16>,
    return
  }
  func.func @transform_0(%arg0: i32, %arg1: i32, %arg2: i32) -> (i32, i32, i32, i32) {
    %c1_i32 = arith.constant 1 : i32
    %0 = arith.muli %c1_i32, %arg2 : i32
    %c0_i32 = arith.constant 0 : i32
    %1 = arith.addi %0, %c0_i32 : i32
    %c0_i32_0 = arith.constant 0 : i32
    %c0_i32_1 = arith.constant 0 : i32
    %c0_i32_2 = arith.constant 0 : i32
    return %arg1, %1, %c0_i32_0, %c0_i32_1 : i32, i32, i32, i32
  }
  func.func @transform_1(%arg0: i32, %arg1: i32, %arg2: i32) -> (i32, i32, i32, i32) {
    %c1_i32 = arith.constant 1 : i32
    %0 = arith.muli %c1_i32, %arg2 : i32
    %c1_i32_0 = arith.constant 1 : i32
    %1 = arith.addi %0, %c1_i32_0 : i32
    %c0_i32 = arith.constant 0 : i32
    %c0_i32_1 = arith.constant 0 : i32
    %c0_i32_2 = arith.constant 0 : i32
    return %arg1, %1, %c0_i32, %c0_i32_1 : i32, i32, i32, i32
  }
  func.func @transform_2(%arg0: i32, %arg1: i32, %arg2: i32) -> (i32, i32, i32, i32) {
    %c1_i32 = arith.constant 1 : i32
    %0 = arith.muli %c1_i32, %arg2 : i32
    %c2_i32 = arith.constant 2 : i32
    %1 = arith.addi %0, %c2_i32 : i32
    %c0_i32 = arith.constant 0 : i32
    %c0_i32_0 = arith.constant 0 : i32
    %c0_i32_1 = arith.constant 0 : i32
    return %arg1, %1, %c0_i32, %c0_i32_0 : i32, i32, i32, i32
  }
  func.func @transform_3(%arg0: i32, %arg1: i32, %arg2: i32) -> (i32, i32, i32) {
    %c0_i32 = arith.constant 0 : i32
    %c0_i32_0 = arith.constant 0 : i32
    %c0_i32_1 = arith.constant 0 : i32
    return %c0_i32, %c0_i32_0, %arg0 : i32, i32, i32
  }
  func.func @transform_4(%arg0: i32, %arg1: i32, %arg2: i32) -> (i32, i32) {
    %c0_i32 = arith.constant 0 : i32
    %c0_i32_0 = arith.constant 0 : i32
    return %c0_i32, %arg0 : i32, i32
  }
  func.func @transform_5(%arg0: i32, %arg1: i32, %arg2: i32) -> (i32, i32, i32, i32) {
    %c0_i32 = arith.constant 0 : i32
    %c0_i32_0 = arith.constant 0 : i32
    return %arg1, %arg2, %c0_i32, %arg0 : i32, i32, i32, i32
  }
}

module attributes {stable_mosaic.version = 11 : i64} {
  func.func @kernel(%arg0: i32, %arg1: i32, %arg2: i32, %arg3: memref<1x1x16x128xbf16, #tpu.memory_space<vmem>>, %arg4: memref<1x1x16x128xbf16, #tpu.memory_space<vmem>>, %arg5: memref<1x1x16x128xbf16, #tpu.memory_space<vmem>>, %arg6: memref<3x128x128xbf16, #tpu.memory_space<vmem>>, %arg7: memref<2x128xf32, #tpu.memory_space<vmem>>, %arg8: memref<1x1x16x128xbf16, #tpu.memory_space<vmem>>) attributes {dimension_semantics = [#tpu.dimension_semantics<arbitrary>, #tpu.dimension_semantics<parallel>, #tpu.dimension_semantics<parallel>], iteration_bounds = array<i64: 1, 1, 4>, scalar_prefetch = 0 : i64, scratch_operands = 0 : i64, tpu.core_type = #tpu.core_type<tc>, window_params = [{transform_indices = @transform_0, window_bounds = array<i64: 1, 1, 16, 128>}, {transform_indices = @transform_1, window_bounds = array<i64: 1, 1, 16, 128>}, {transform_indices = @transform_2, window_bounds = array<i64: 1, 1, 16, 128>}, {transform_indices = @transform_3, window_bounds = array<i64: 3, 128, 128>}, {transform_indices = @transform_4, window_bounds = array<i64: 2, 128>}, {transform_indices = @transform_5, window_bounds = array<i64: 1, 1, 16, 128>}]} {
    %c0 = arith.constant 0 : index
    %c0_0 = arith.constant 0 : index
    %c0_1 = arith.constant 0 : index
    %c0_2 = arith.constant 0 : index
    %0 = vector.load %arg3[%c0, %c0_0, %c0_1, %c0_2] : memref<1x1x16x128xbf16, #tpu.memory_space<vmem>>, vector<1x1x16x128xbf16>
    %1 = vector.shape_cast %0 : vector<1x1x16x128xbf16> to vector<16x128xbf16>
    %c0_3 = arith.constant 0 : index
    %c0_4 = arith.constant 0 : index
    %c0_5 = arith.constant 0 : index
    %2 = vector.load %arg6[%c0_3, %c0_4, %c0_5] : memref<3x128x128xbf16, #tpu.memory_space<vmem>>, vector<1x128x128xbf16>
    %3 = vector.shape_cast %2 : vector<1x128x128xbf16> to vector<128x128xbf16>
    %cst = arith.constant dense<0.000000e+00> : vector<16x128xf32>
    %4 = tpu.matmul %1, %3, %cst {dimension_numbers = #tpu.dot_dimension_numbers<[1], [0], [0], [1], [0, 0, 1, 1], [], []>} : vector<16x128xbf16>, vector<128x128xbf16>, vector<16x128xf32> -> vector<16x128xf32>
    %c0_6 = arith.constant 0 : index
    %c0_7 = arith.constant 0 : index
    %c0_8 = arith.constant 0 : index
    %c0_9 = arith.constant 0 : index
    %5 = vector.load %arg4[%c0_6, %c0_7, %c0_8, %c0_9] : memref<1x1x16x128xbf16, #tpu.memory_space<vmem>>, vector<1x1x16x128xbf16>
    %6 = vector.shape_cast %5 : vector<1x1x16x128xbf16> to vector<16x128xbf16>
    %c1 = arith.constant 1 : index
    %c0_10 = arith.constant 0 : index
    %c0_11 = arith.constant 0 : index
    %7 = vector.load %arg6[%c1, %c0_10, %c0_11] : memref<3x128x128xbf16, #tpu.memory_space<vmem>>, vector<1x128x128xbf16>
    %8 = vector.shape_cast %7 : vector<1x128x128xbf16> to vector<128x128xbf16>
    %cst_12 = arith.constant dense<0.000000e+00> : vector<16x128xf32>
    %9 = tpu.matmul %6, %8, %cst_12 {dimension_numbers = #tpu.dot_dimension_numbers<[1], [0], [0], [1], [0, 0, 1, 1], [], []>} : vector<16x128xbf16>, vector<128x128xbf16>, vector<16x128xf32> -> vector<16x128xf32>
    %10 = arith.addf %4, %9 : vector<16x128xf32>
    %c0_13 = arith.constant 0 : index
    %c0_14 = arith.constant 0 : index
    %c0_15 = arith.constant 0 : index
    %c0_16 = arith.constant 0 : index
    %11 = vector.load %arg5[%c0_13, %c0_14, %c0_15, %c0_16] : memref<1x1x16x128xbf16, #tpu.memory_space<vmem>>, vector<1x1x16x128xbf16>
    %12 = vector.shape_cast %11 : vector<1x1x16x128xbf16> to vector<16x128xbf16>
    %c2 = arith.constant 2 : index
    %c0_17 = arith.constant 0 : index
    %c0_18 = arith.constant 0 : index
    %13 = vector.load %arg6[%c2, %c0_17, %c0_18] : memref<3x128x128xbf16, #tpu.memory_space<vmem>>, vector<1x128x128xbf16>
    %14 = vector.shape_cast %13 : vector<1x128x128xbf16> to vector<128x128xbf16>
    %cst_19 = arith.constant dense<0.000000e+00> : vector<16x128xf32>
    %15 = tpu.matmul %12, %14, %cst_19 {dimension_numbers = #tpu.dot_dimension_numbers<[1], [0], [0], [1], [0, 0, 1, 1], [], []>} : vector<16x128xbf16>, vector<128x128xbf16>, vector<16x128xf32> -> vector<16x128xf32>
    %16 = arith.addf %10, %15 : vector<16x128xf32>
    %c0_20 = arith.constant 0 : index
    %c0_21 = arith.constant 0 : index
    %17 = vector.load %arg7[%c0_20, %c0_21] : memref<2x128xf32, #tpu.memory_space<vmem>>, vector<1x128xf32>
    %18 = vector.broadcast %17 : vector<1x128xf32> to vector<16x128xf32>
    %19 = arith.mulf %16, %18 : vector<16x128xf32>
    %c1_22 = arith.constant 1 : index
    %c0_23 = arith.constant 0 : index
    %20 = vector.load %arg7[%c1_22, %c0_23] : memref<2x128xf32, #tpu.memory_space<vmem>>, vector<1x128xf32>
    %21 = vector.broadcast %20 : vector<1x128xf32> to vector<16x128xf32>
    %22 = arith.addf %19, %21 : vector<16x128xf32>
    %cst_24 = arith.constant 0.000000e+00 : f32
    %23 = vector.broadcast %cst_24 : f32 to vector<16x128xf32>
    %24 = arith.maximumf %22, %23 : vector<16x128xf32>
    %25 = arith.truncf %24 : vector<16x128xf32> to vector<16x128xbf16>
    %c0_25 = arith.constant 0 : index
    %c0_26 = arith.constant 0 : index
    %c0_27 = arith.constant 0 : index
    %c0_28 = arith.constant 0 : index
    %26 = vector.load %arg8[%c0_25, %c0_26, %c0_27, %c0_28] : memref<1x1x16x128xbf16, #tpu.memory_space<vmem>>, vector<1x1x16x128xbf16>
    %27 = vector.shape_cast %26 : vector<1x1x16x128xbf16> to vector<16x128xbf16>
    %28 = vector.shape_cast %25 : vector<16x128xbf16> to vector<1x1x16x128xbf16>
    tpu.vector_store %arg8[%c0_25, %c0_26, %c0_27, %c0_28], %28 {strides = array<i32>} : memref<1x1x16x128xbf16, #tpu.memory_space<vmem>>, vector<1x1x16x128xbf16>,
    return
  }
  func.func @transform_0(%arg0: i32, %arg1: i32, %arg2: i32) -> (i32, i32, i32, i32) {
    %c2_i32 = arith.constant 2 : i32
    %0 = arith.muli %c2_i32, %arg2 : i32
    %c0_i32 = arith.constant 0 : i32
    %1 = arith.addi %0, %c0_i32 : i32
    %c0_i32_0 = arith.constant 0 : i32
    %c0_i32_1 = arith.constant 0 : i32
    %c0_i32_2 = arith.constant 0 : i32
    return %arg1, %1, %c0_i32_0, %c0_i32_1 : i32, i32, i32, i32
  }
  func.func @transform_1(%arg0: i32, %arg1: i32, %arg2: i32) -> (i32, i32, i32, i32) {
    %c2_i32 = arith.constant 2 : i32
    %0 = arith.muli %c2_i32, %arg2 : i32
    %c1_i32 = arith.constant 1 : i32
    %1 = arith.addi %0, %c1_i32 : i32
    %c0_i32 = arith.constant 0 : i32
    %c0_i32_0 = arith.constant 0 : i32
    %c0_i32_1 = arith.constant 0 : i32
    return %arg1, %1, %c0_i32, %c0_i32_0 : i32, i32, i32, i32
  }
  func.func @transform_2(%arg0: i32, %arg1: i32, %arg2: i32) -> (i32, i32, i32, i32) {
    %c2_i32 = arith.constant 2 : i32
    %0 = arith.muli %c2_i32, %arg2 : i32
    %c2_i32_0 = arith.constant 2 : i32
    %1 = arith.addi %0, %c2_i32_0 : i32
    %c0_i32 = arith.constant 0 : i32
    %c0_i32_1 = arith.constant 0 : i32
    %c0_i32_2 = arith.constant 0 : i32
    return %arg1, %1, %c0_i32, %c0_i32_1 : i32, i32, i32, i32
  }
  func.func @transform_3(%arg0: i32, %arg1: i32, %arg2: i32) -> (i32, i32, i32) {
    %c0_i32 = arith.constant 0 : i32
    %c0_i32_0 = arith.constant 0 : i32
    %c0_i32_1 = arith.constant 0 : i32
    return %c0_i32, %c0_i32_0, %arg0 : i32, i32, i32
  }
  func.func @transform_4(%arg0: i32, %arg1: i32, %arg2: i32) -> (i32, i32) {
    %c0_i32 = arith.constant 0 : i32
    %c0_i32_0 = arith.constant 0 : i32
    return %c0_i32, %arg0 : i32, i32
  }
  func.func @transform_5(%arg0: i32, %arg1: i32, %arg2: i32) -> (i32, i32, i32, i32) {
    %c0_i32 = arith.constant 0 : i32
    %c0_i32_0 = arith.constant 0 : i32
    return %arg1, %arg2, %c0_i32, %arg0 : i32, i32, i32, i32
  }
}

module attributes {stable_mosaic.version = 11 : i64} {
  func.func @kernel(%arg0: i32, %arg1: i32, %arg2: i32, %arg3: memref<1x1x16x128xbf16, #tpu.memory_space<vmem>>, %arg4: memref<1x1x16x128xbf16, #tpu.memory_space<vmem>>, %arg5: memref<1x1x16x128xbf16, #tpu.memory_space<vmem>>, %arg6: memref<3x128x128xbf16, #tpu.memory_space<vmem>>, %arg7: memref<2x128xf32, #tpu.memory_space<vmem>>, %arg8: memref<1x1x16x128xbf16, #tpu.memory_space<vmem>>) attributes {dimension_semantics = [#tpu.dimension_semantics<arbitrary>, #tpu.dimension_semantics<parallel>, #tpu.dimension_semantics<parallel>], iteration_bounds = array<i64: 1, 1, 2>, scalar_prefetch = 0 : i64, scratch_operands = 0 : i64, tpu.core_type = #tpu.core_type<tc>, window_params = [{transform_indices = @transform_0, window_bounds = array<i64: 1, 1, 16, 128>}, {transform_indices = @transform_1, window_bounds = array<i64: 1, 1, 16, 128>}, {transform_indices = @transform_2, window_bounds = array<i64: 1, 1, 16, 128>}, {transform_indices = @transform_3, window_bounds = array<i64: 3, 128, 128>}, {transform_indices = @transform_4, window_bounds = array<i64: 2, 128>}, {transform_indices = @transform_5, window_bounds = array<i64: 1, 1, 16, 128>}]} {
    %c0 = arith.constant 0 : index
    %c0_0 = arith.constant 0 : index
    %c0_1 = arith.constant 0 : index
    %c0_2 = arith.constant 0 : index
    %0 = vector.load %arg3[%c0, %c0_0, %c0_1, %c0_2] : memref<1x1x16x128xbf16, #tpu.memory_space<vmem>>, vector<1x1x16x128xbf16>
    %1 = vector.shape_cast %0 : vector<1x1x16x128xbf16> to vector<16x128xbf16>
    %c0_3 = arith.constant 0 : index
    %c0_4 = arith.constant 0 : index
    %c0_5 = arith.constant 0 : index
    %2 = vector.load %arg6[%c0_3, %c0_4, %c0_5] : memref<3x128x128xbf16, #tpu.memory_space<vmem>>, vector<1x128x128xbf16>
    %3 = vector.shape_cast %2 : vector<1x128x128xbf16> to vector<128x128xbf16>
    %cst = arith.constant dense<0.000000e+00> : vector<16x128xf32>
    %4 = tpu.matmul %1, %3, %cst {dimension_numbers = #tpu.dot_dimension_numbers<[1], [0], [0], [1], [0, 0, 1, 1], [], []>} : vector<16x128xbf16>, vector<128x128xbf16>, vector<16x128xf32> -> vector<16x128xf32>
    %c0_6 = arith.constant 0 : index
    %c0_7 = arith.constant 0 : index
    %c0_8 = arith.constant 0 : index
    %c0_9 = arith.constant 0 : index
    %5 = vector.load %arg4[%c0_6, %c0_7, %c0_8, %c0_9] : memref<1x1x16x128xbf16, #tpu.memory_space<vmem>>, vector<1x1x16x128xbf16>
    %6 = vector.shape_cast %5 : vector<1x1x16x128xbf16> to vector<16x128xbf16>
    %c1 = arith.constant 1 : index
    %c0_10 = arith.constant 0 : index
    %c0_11 = arith.constant 0 : index
    %7 = vector.load %arg6[%c1, %c0_10, %c0_11] : memref<3x128x128xbf16, #tpu.memory_space<vmem>>, vector<1x128x128xbf16>
    %8 = vector.shape_cast %7 : vector<1x128x128xbf16> to vector<128x128xbf16>
    %cst_12 = arith.constant dense<0.000000e+00> : vector<16x128xf32>
    %9 = tpu.matmul %6, %8, %cst_12 {dimension_numbers = #tpu.dot_dimension_numbers<[1], [0], [0], [1], [0, 0, 1, 1], [], []>} : vector<16x128xbf16>, vector<128x128xbf16>, vector<16x128xf32> -> vector<16x128xf32>
    %10 = arith.addf %4, %9 : vector<16x128xf32>
    %c0_13 = arith.constant 0 : index
    %c0_14 = arith.constant 0 : index
    %c0_15 = arith.constant 0 : index
    %c0_16 = arith.constant 0 : index
    %11 = vector.load %arg5[%c0_13, %c0_14, %c0_15, %c0_16] : memref<1x1x16x128xbf16, #tpu.memory_space<vmem>>, vector<1x1x16x128xbf16>
    %12 = vector.shape_cast %11 : vector<1x1x16x128xbf16> to vector<16x128xbf16>
    %c2 = arith.constant 2 : index
    %c0_17 = arith.constant 0 : index
    %c0_18 = arith.constant 0 : index
    %13 = vector.load %arg6[%c2, %c0_17, %c0_18] : memref<3x128x128xbf16, #tpu.memory_space<vmem>>, vector<1x128x128xbf16>
    %14 = vector.shape_cast %13 : vector<1x128x128xbf16> to vector<128x128xbf16>
    %cst_19 = arith.constant dense<0.000000e+00> : vector<16x128xf32>
    %15 = tpu.matmul %12, %14, %cst_19 {dimension_numbers = #tpu.dot_dimension_numbers<[1], [0], [0], [1], [0, 0, 1, 1], [], []>} : vector<16x128xbf16>, vector<128x128xbf16>, vector<16x128xf32> -> vector<16x128xf32>
    %16 = arith.addf %10, %15 : vector<16x128xf32>
    %c0_20 = arith.constant 0 : index
    %c0_21 = arith.constant 0 : index
    %17 = vector.load %arg7[%c0_20, %c0_21] : memref<2x128xf32, #tpu.memory_space<vmem>>, vector<1x128xf32>
    %18 = vector.broadcast %17 : vector<1x128xf32> to vector<16x128xf32>
    %19 = arith.mulf %16, %18 : vector<16x128xf32>
    %c1_22 = arith.constant 1 : index
    %c0_23 = arith.constant 0 : index
    %20 = vector.load %arg7[%c1_22, %c0_23] : memref<2x128xf32, #tpu.memory_space<vmem>>, vector<1x128xf32>
    %21 = vector.broadcast %20 : vector<1x128xf32> to vector<16x128xf32>
    %22 = arith.addf %19, %21 : vector<16x128xf32>
    %cst_24 = arith.constant 0.000000e+00 : f32
    %23 = vector.broadcast %cst_24 : f32 to vector<16x128xf32>
    %24 = arith.maximumf %22, %23 : vector<16x128xf32>
    %25 = arith.truncf %24 : vector<16x128xf32> to vector<16x128xbf16>
    %c0_25 = arith.constant 0 : index
    %c0_26 = arith.constant 0 : index
    %c0_27 = arith.constant 0 : index
    %c0_28 = arith.constant 0 : index
    %26 = vector.load %arg8[%c0_25, %c0_26, %c0_27, %c0_28] : memref<1x1x16x128xbf16, #tpu.memory_space<vmem>>, vector<1x1x16x128xbf16>
    %27 = vector.shape_cast %26 : vector<1x1x16x128xbf16> to vector<16x128xbf16>
    %28 = vector.shape_cast %25 : vector<16x128xbf16> to vector<1x1x16x128xbf16>
    tpu.vector_store %arg8[%c0_25, %c0_26, %c0_27, %c0_28], %28 {strides = array<i32>} : memref<1x1x16x128xbf16, #tpu.memory_space<vmem>>, vector<1x1x16x128xbf16>,
    return
  }
  func.func @transform_0(%arg0: i32, %arg1: i32, %arg2: i32) -> (i32, i32, i32, i32) {
    %c2_i32 = arith.constant 2 : i32
    %0 = arith.muli %c2_i32, %arg2 : i32
    %c0_i32 = arith.constant 0 : i32
    %1 = arith.addi %0, %c0_i32 : i32
    %c0_i32_0 = arith.constant 0 : i32
    %c0_i32_1 = arith.constant 0 : i32
    %c0_i32_2 = arith.constant 0 : i32
    return %arg1, %1, %c0_i32_0, %c0_i32_1 : i32, i32, i32, i32
  }
  func.func @transform_1(%arg0: i32, %arg1: i32, %arg2: i32) -> (i32, i32, i32, i32) {
    %c2_i32 = arith.constant 2 : i32
    %0 = arith.muli %c2_i32, %arg2 : i32
    %c1_i32 = arith.constant 1 : i32
    %1 = arith.addi %0, %c1_i32 : i32
    %c0_i32 = arith.constant 0 : i32
    %c0_i32_0 = arith.constant 0 : i32
    %c0_i32_1 = arith.constant 0 : i32
    return %arg1, %1, %c0_i32, %c0_i32_0 : i32, i32, i32, i32
  }
  func.func @transform_2(%arg0: i32, %arg1: i32, %arg2: i32) -> (i32, i32, i32, i32) {
    %c2_i32 = arith.constant 2 : i32
    %0 = arith.muli %c2_i32, %arg2 : i32
    %c2_i32_0 = arith.constant 2 : i32
    %1 = arith.addi %0, %c2_i32_0 : i32
    %c0_i32 = arith.constant 0 : i32
    %c0_i32_1 = arith.constant 0 : i32
    %c0_i32_2 = arith.constant 0 : i32
    return %arg1, %1, %c0_i32, %c0_i32_1 : i32, i32, i32, i32
  }
  func.func @transform_3(%arg0: i32, %arg1: i32, %arg2: i32) -> (i32, i32, i32) {
    %c0_i32 = arith.constant 0 : i32
    %c0_i32_0 = arith.constant 0 : i32
    %c0_i32_1 = arith.constant 0 : i32
    return %c0_i32, %c0_i32_0, %arg0 : i32, i32, i32
  }
  func.func @transform_4(%arg0: i32, %arg1: i32, %arg2: i32) -> (i32, i32) {
    %c0_i32 = arith.constant 0 : i32
    %c0_i32_0 = arith.constant 0 : i32
    return %c0_i32, %arg0 : i32, i32
  }
  func.func @transform_5(%arg0: i32, %arg1: i32, %arg2: i32) -> (i32, i32, i32, i32) {
    %c0_i32 = arith.constant 0 : i32
    %c0_i32_0 = arith.constant 0 : i32
    return %arg1, %arg2, %c0_i32, %arg0 : i32, i32, i32, i32
  }
}

module attributes {stable_mosaic.version = 11 : i64} {
  func.func @kernel(%arg0: i32, %arg1: i32, %arg2: i32, %arg3: memref<1x1x16x256xbf16, #tpu.memory_space<vmem>>, %arg4: memref<1x1x16x256xbf16, #tpu.memory_space<vmem>>, %arg5: memref<1x1x16x256xbf16, #tpu.memory_space<vmem>>, %arg6: memref<3x256x128xbf16, #tpu.memory_space<vmem>>, %arg7: memref<2x128xf32, #tpu.memory_space<vmem>>, %arg8: memref<1x1x16x128xbf16, #tpu.memory_space<vmem>>) attributes {dimension_semantics = [#tpu.dimension_semantics<arbitrary>, #tpu.dimension_semantics<parallel>, #tpu.dimension_semantics<parallel>], iteration_bounds = array<i64: 1, 1, 2>, scalar_prefetch = 0 : i64, scratch_operands = 0 : i64, tpu.core_type = #tpu.core_type<tc>, window_params = [{transform_indices = @transform_0, window_bounds = array<i64: 1, 1, 16, 256>}, {transform_indices = @transform_1, window_bounds = array<i64: 1, 1, 16, 256>}, {transform_indices = @transform_2, window_bounds = array<i64: 1, 1, 16, 256>}, {transform_indices = @transform_3, window_bounds = array<i64: 3, 256, 128>}, {transform_indices = @transform_4, window_bounds = array<i64: 2, 128>}, {transform_indices = @transform_5, window_bounds = array<i64: 1, 1, 16, 128>}]} {
    %c0 = arith.constant 0 : index
    %c0_0 = arith.constant 0 : index
    %c0_1 = arith.constant 0 : index
    %c0_2 = arith.constant 0 : index
    %0 = vector.load %arg3[%c0, %c0_0, %c0_1, %c0_2] : memref<1x1x16x256xbf16, #tpu.memory_space<vmem>>, vector<1x1x16x256xbf16>
    %1 = vector.shape_cast %0 : vector<1x1x16x256xbf16> to vector<16x256xbf16>
    %c0_3 = arith.constant 0 : index
    %c0_4 = arith.constant 0 : index
    %c0_5 = arith.constant 0 : index
    %2 = vector.load %arg6[%c0_3, %c0_4, %c0_5] : memref<3x256x128xbf16, #tpu.memory_space<vmem>>, vector<1x256x128xbf16>
    %3 = vector.shape_cast %2 : vector<1x256x128xbf16> to vector<256x128xbf16>
    %cst = arith.constant dense<0.000000e+00> : vector<16x128xf32>
    %4 = tpu.matmul %1, %3, %cst {dimension_numbers = #tpu.dot_dimension_numbers<[1], [0], [0], [1], [0, 0, 1, 1], [], []>} : vector<16x256xbf16>, vector<256x128xbf16>, vector<16x128xf32> -> vector<16x128xf32>
    %c0_6 = arith.constant 0 : index
    %c0_7 = arith.constant 0 : index
    %c0_8 = arith.constant 0 : index
    %c0_9 = arith.constant 0 : index
    %5 = vector.load %arg4[%c0_6, %c0_7, %c0_8, %c0_9] : memref<1x1x16x256xbf16, #tpu.memory_space<vmem>>, vector<1x1x16x256xbf16>
    %6 = vector.shape_cast %5 : vector<1x1x16x256xbf16> to vector<16x256xbf16>
    %c1 = arith.constant 1 : index
    %c0_10 = arith.constant 0 : index
    %c0_11 = arith.constant 0 : index
    %7 = vector.load %arg6[%c1, %c0_10, %c0_11] : memref<3x256x128xbf16, #tpu.memory_space<vmem>>, vector<1x256x128xbf16>
    %8 = vector.shape_cast %7 : vector<1x256x128xbf16> to vector<256x128xbf16>
    %cst_12 = arith.constant dense<0.000000e+00> : vector<16x128xf32>
    %9 = tpu.matmul %6, %8, %cst_12 {dimension_numbers = #tpu.dot_dimension_numbers<[1], [0], [0], [1], [0, 0, 1, 1], [], []>} : vector<16x256xbf16>, vector<256x128xbf16>, vector<16x128xf32> -> vector<16x128xf32>
    %10 = arith.addf %4, %9 : vector<16x128xf32>
    %c0_13 = arith.constant 0 : index
    %c0_14 = arith.constant 0 : index
    %c0_15 = arith.constant 0 : index
    %c0_16 = arith.constant 0 : index
    %11 = vector.load %arg5[%c0_13, %c0_14, %c0_15, %c0_16] : memref<1x1x16x256xbf16, #tpu.memory_space<vmem>>, vector<1x1x16x256xbf16>
    %12 = vector.shape_cast %11 : vector<1x1x16x256xbf16> to vector<16x256xbf16>
    %c2 = arith.constant 2 : index
    %c0_17 = arith.constant 0 : index
    %c0_18 = arith.constant 0 : index
    %13 = vector.load %arg6[%c2, %c0_17, %c0_18] : memref<3x256x128xbf16, #tpu.memory_space<vmem>>, vector<1x256x128xbf16>
    %14 = vector.shape_cast %13 : vector<1x256x128xbf16> to vector<256x128xbf16>
    %cst_19 = arith.constant dense<0.000000e+00> : vector<16x128xf32>
    %15 = tpu.matmul %12, %14, %cst_19 {dimension_numbers = #tpu.dot_dimension_numbers<[1], [0], [0], [1], [0, 0, 1, 1], [], []>} : vector<16x256xbf16>, vector<256x128xbf16>, vector<16x128xf32> -> vector<16x128xf32>
    %16 = arith.addf %10, %15 : vector<16x128xf32>
    %c0_20 = arith.constant 0 : index
    %c0_21 = arith.constant 0 : index
    %17 = vector.load %arg7[%c0_20, %c0_21] : memref<2x128xf32, #tpu.memory_space<vmem>>, vector<1x128xf32>
    %18 = vector.broadcast %17 : vector<1x128xf32> to vector<16x128xf32>
    %19 = arith.mulf %16, %18 : vector<16x128xf32>
    %c1_22 = arith.constant 1 : index
    %c0_23 = arith.constant 0 : index
    %20 = vector.load %arg7[%c1_22, %c0_23] : memref<2x128xf32, #tpu.memory_space<vmem>>, vector<1x128xf32>
    %21 = vector.broadcast %20 : vector<1x128xf32> to vector<16x128xf32>
    %22 = arith.addf %19, %21 : vector<16x128xf32>
    %cst_24 = arith.constant 0.000000e+00 : f32
    %23 = vector.broadcast %cst_24 : f32 to vector<16x128xf32>
    %24 = arith.maximumf %22, %23 : vector<16x128xf32>
    %25 = arith.truncf %24 : vector<16x128xf32> to vector<16x128xbf16>
    %c0_25 = arith.constant 0 : index
    %c0_26 = arith.constant 0 : index
    %c0_27 = arith.constant 0 : index
    %c0_28 = arith.constant 0 : index
    %26 = vector.load %arg8[%c0_25, %c0_26, %c0_27, %c0_28] : memref<1x1x16x128xbf16, #tpu.memory_space<vmem>>, vector<1x1x16x128xbf16>
    %27 = vector.shape_cast %26 : vector<1x1x16x128xbf16> to vector<16x128xbf16>
    %28 = vector.shape_cast %25 : vector<16x128xbf16> to vector<1x1x16x128xbf16>
    tpu.vector_store %arg8[%c0_25, %c0_26, %c0_27, %c0_28], %28 {strides = array<i32>} : memref<1x1x16x128xbf16, #tpu.memory_space<vmem>>, vector<1x1x16x128xbf16>,
    return
  }
  func.func @transform_0(%arg0: i32, %arg1: i32, %arg2: i32) -> (i32, i32, i32, i32) {
    %c1_i32 = arith.constant 1 : i32
    %0 = arith.muli %c1_i32, %arg2 : i32
    %c0_i32 = arith.constant 0 : i32
    %1 = arith.addi %0, %c0_i32 : i32
    %c0_i32_0 = arith.constant 0 : i32
    %c0_i32_1 = arith.constant 0 : i32
    %c0_i32_2 = arith.constant 0 : i32
    return %arg1, %1, %c0_i32_0, %c0_i32_1 : i32, i32, i32, i32
  }
  func.func @transform_1(%arg0: i32, %arg1: i32, %arg2: i32) -> (i32, i32, i32, i32) {
    %c1_i32 = arith.constant 1 : i32
    %0 = arith.muli %c1_i32, %arg2 : i32
    %c1_i32_0 = arith.constant 1 : i32
    %1 = arith.addi %0, %c1_i32_0 : i32
    %c0_i32 = arith.constant 0 : i32
    %c0_i32_1 = arith.constant 0 : i32
    %c0_i32_2 = arith.constant 0 : i32
    return %arg1, %1, %c0_i32, %c0_i32_1 : i32, i32, i32, i32
  }
  func.func @transform_2(%arg0: i32, %arg1: i32, %arg2: i32) -> (i32, i32, i32, i32) {
    %c1_i32 = arith.constant 1 : i32
    %0 = arith.muli %c1_i32, %arg2 : i32
    %c2_i32 = arith.constant 2 : i32
    %1 = arith.addi %0, %c2_i32 : i32
    %c0_i32 = arith.constant 0 : i32
    %c0_i32_0 = arith.constant 0 : i32
    %c0_i32_1 = arith.constant 0 : i32
    return %arg1, %1, %c0_i32, %c0_i32_0 : i32, i32, i32, i32
  }
  func.func @transform_3(%arg0: i32, %arg1: i32, %arg2: i32) -> (i32, i32, i32) {
    %c0_i32 = arith.constant 0 : i32
    %c0_i32_0 = arith.constant 0 : i32
    %c0_i32_1 = arith.constant 0 : i32
    return %c0_i32, %c0_i32_0, %arg0 : i32, i32, i32
  }
  func.func @transform_4(%arg0: i32, %arg1: i32, %arg2: i32) -> (i32, i32) {
    %c0_i32 = arith.constant 0 : i32
    %c0_i32_0 = arith.constant 0 : i32
    return %c0_i32, %arg0 : i32, i32
  }
  func.func @transform_5(%arg0: i32, %arg1: i32, %arg2: i32) -> (i32, i32, i32, i32) {
    %c0_i32 = arith.constant 0 : i32
    %c0_i32_0 = arith.constant 0 : i32
    return %arg1, %arg2, %c0_i32, %arg0 : i32, i32, i32, i32
  }
}

module attributes {stable_mosaic.version = 11 : i64} {
  func.func @kernel(%arg0: i32, %arg1: i32, %arg2: i32, %arg3: memref<1x1x16x128xbf16, #tpu.memory_space<vmem>>, %arg4: memref<1x128x256xbf16, #tpu.memory_space<vmem>>, %arg5: memref<2x256xf32, #tpu.memory_space<vmem>>, %arg6: memref<1x1x16x256xbf16, #tpu.memory_space<vmem>>) attributes {dimension_semantics = [#tpu.dimension_semantics<arbitrary>, #tpu.dimension_semantics<parallel>, #tpu.dimension_semantics<parallel>], iteration_bounds = array<i64: 2, 1, 4>, scalar_prefetch = 0 : i64, scratch_operands = 0 : i64, tpu.core_type = #tpu.core_type<tc>, window_params = [{transform_indices = @transform_0, window_bounds = array<i64: 1, 1, 16, 128>}, {transform_indices = @transform_1, window_bounds = array<i64: 1, 128, 256>}, {transform_indices = @transform_2, window_bounds = array<i64: 2, 256>}, {transform_indices = @transform_3, window_bounds = array<i64: 1, 1, 16, 256>}]} {
    %c0 = arith.constant 0 : index
    %c0_0 = arith.constant 0 : index
    %c0_1 = arith.constant 0 : index
    %c0_2 = arith.constant 0 : index
    %0 = vector.load %arg3[%c0, %c0_0, %c0_1, %c0_2] : memref<1x1x16x128xbf16, #tpu.memory_space<vmem>>, vector<1x1x16x128xbf16>
    %1 = vector.shape_cast %0 : vector<1x1x16x128xbf16> to vector<16x128xbf16>
    %c0_3 = arith.constant 0 : index
    %c0_4 = arith.constant 0 : index
    %c0_5 = arith.constant 0 : index
    %2 = vector.load %arg4[%c0_3, %c0_4, %c0_5] : memref<1x128x256xbf16, #tpu.memory_space<vmem>>, vector<1x128x256xbf16>
    %3 = vector.shape_cast %2 : vector<1x128x256xbf16> to vector<128x256xbf16>
    %cst = arith.constant dense<0.000000e+00> : vector<16x256xf32>
    %4 = tpu.matmul %1, %3, %cst {dimension_numbers = #tpu.dot_dimension_numbers<[1], [0], [0], [1], [0, 0, 1, 1], [], []>} : vector<16x128xbf16>, vector<128x256xbf16>, vector<16x256xf32> -> vector<16x256xf32>
    %c0_6 = arith.constant 0 : index
    %c0_7 = arith.constant 0 : index
    %5 = vector.load %arg5[%c0_6, %c0_7] : memref<2x256xf32, #tpu.memory_space<vmem>>, vector<1x256xf32>
    %6 = vector.broadcast %5 : vector<1x256xf32> to vector<16x256xf32>
    %7 = arith.mulf %4, %6 : vector<16x256xf32>
    %c1 = arith.constant 1 : index
    %c0_8 = arith.constant 0 : index
    %8 = vector.load %arg5[%c1, %c0_8] : memref<2x256xf32, #tpu.memory_space<vmem>>, vector<1x256xf32>
    %9 = vector.broadcast %8 : vector<1x256xf32> to vector<16x256xf32>
    %10 = arith.addf %7, %9 : vector<16x256xf32>
    %cst_9 = arith.constant 0.000000e+00 : f32
    %11 = vector.broadcast %cst_9 : f32 to vector<16x256xf32>
    %12 = arith.maximumf %10, %11 : vector<16x256xf32>
    %13 = arith.truncf %12 : vector<16x256xf32> to vector<16x256xbf16>
    %c0_10 = arith.constant 0 : index
    %c0_11 = arith.constant 0 : index
    %c0_12 = arith.constant 0 : index
    %c0_13 = arith.constant 0 : index
    %14 = vector.load %arg6[%c0_10, %c0_11, %c0_12, %c0_13] : memref<1x1x16x256xbf16, #tpu.memory_space<vmem>>, vector<1x1x16x256xbf16>
    %15 = vector.shape_cast %14 : vector<1x1x16x256xbf16> to vector<16x256xbf16>
    %16 = vector.shape_cast %13 : vector<16x256xbf16> to vector<1x1x16x256xbf16>
    tpu.vector_store %arg6[%c0_10, %c0_11, %c0_12, %c0_13], %16 {strides = array<i32>} : memref<1x1x16x256xbf16, #tpu.memory_space<vmem>>, vector<1x1x16x256xbf16>,
    return
  }
  func.func @transform_0(%arg0: i32, %arg1: i32, %arg2: i32) -> (i32, i32, i32, i32) {
    %c1_i32 = arith.constant 1 : i32
    %0 = arith.muli %c1_i32, %arg2 : i32
    %c0_i32 = arith.constant 0 : i32
    %1 = arith.addi %0, %c0_i32 : i32
    %c0_i32_0 = arith.constant 0 : i32
    %c0_i32_1 = arith.constant 0 : i32
    %c0_i32_2 = arith.constant 0 : i32
    return %arg1, %1, %c0_i32_0, %c0_i32_1 : i32, i32, i32, i32
  }
  func.func @transform_1(%arg0: i32, %arg1: i32, %arg2: i32) -> (i32, i32, i32) {
    %c0_i32 = arith.constant 0 : i32
    %c0_i32_0 = arith.constant 0 : i32
    %c0_i32_1 = arith.constant 0 : i32
    return %c0_i32, %c0_i32_0, %arg0 : i32, i32, i32
  }
  func.func @transform_2(%arg0: i32, %arg1: i32, %arg2: i32) -> (i32, i32) {
    %c0_i32 = arith.constant 0 : i32
    %c0_i32_0 = arith.constant 0 : i32
    return %c0_i32, %arg0 : i32, i32
  }
  func.func @transform_3(%arg0: i32, %arg1: i32, %arg2: i32) -> (i32, i32, i32, i32) {
    %c0_i32 = arith.constant 0 : i32
    %c0_i32_0 = arith.constant 0 : i32
    return %arg1, %arg2, %c0_i32, %arg0 : i32, i32, i32, i32
  }
}

module attributes {stable_mosaic.version = 11 : i64} {
  func.func @kernel(%arg0: i32, %arg1: i32, %arg2: i32, %arg3: memref<1x1x16x128xbf16, #tpu.memory_space<vmem>>, %arg4: memref<1x128x256xbf16, #tpu.memory_space<vmem>>, %arg5: memref<2x256xf32, #tpu.memory_space<vmem>>, %arg6: memref<1x1x16x256xbf16, #tpu.memory_space<vmem>>) attributes {dimension_semantics = [#tpu.dimension_semantics<arbitrary>, #tpu.dimension_semantics<parallel>, #tpu.dimension_semantics<parallel>], iteration_bounds = array<i64: 8, 1, 2>, scalar_prefetch = 0 : i64, scratch_operands = 0 : i64, tpu.core_type = #tpu.core_type<tc>, window_params = [{transform_indices = @transform_0, window_bounds = array<i64: 1, 1, 16, 128>}, {transform_indices = @transform_1, window_bounds = array<i64: 1, 128, 256>}, {transform_indices = @transform_2, window_bounds = array<i64: 2, 256>}, {transform_indices = @transform_3, window_bounds = array<i64: 1, 1, 16, 256>}]} {
    %c0 = arith.constant 0 : index
    %c0_0 = arith.constant 0 : index
    %c0_1 = arith.constant 0 : index
    %c0_2 = arith.constant 0 : index
    %0 = vector.load %arg3[%c0, %c0_0, %c0_1, %c0_2] : memref<1x1x16x128xbf16, #tpu.memory_space<vmem>>, vector<1x1x16x128xbf16>
    %1 = vector.shape_cast %0 : vector<1x1x16x128xbf16> to vector<16x128xbf16>
    %c0_3 = arith.constant 0 : index
    %c0_4 = arith.constant 0 : index
    %c0_5 = arith.constant 0 : index
    %2 = vector.load %arg4[%c0_3, %c0_4, %c0_5] : memref<1x128x256xbf16, #tpu.memory_space<vmem>>, vector<1x128x256xbf16>
    %3 = vector.shape_cast %2 : vector<1x128x256xbf16> to vector<128x256xbf16>
    %cst = arith.constant dense<0.000000e+00> : vector<16x256xf32>
    %4 = tpu.matmul %1, %3, %cst {dimension_numbers = #tpu.dot_dimension_numbers<[1], [0], [0], [1], [0, 0, 1, 1], [], []>} : vector<16x128xbf16>, vector<128x256xbf16>, vector<16x256xf32> -> vector<16x256xf32>
    %c0_6 = arith.constant 0 : index
    %c0_7 = arith.constant 0 : index
    %5 = vector.load %arg5[%c0_6, %c0_7] : memref<2x256xf32, #tpu.memory_space<vmem>>, vector<1x256xf32>
    %6 = vector.broadcast %5 : vector<1x256xf32> to vector<16x256xf32>
    %7 = arith.mulf %4, %6 : vector<16x256xf32>
    %c1 = arith.constant 1 : index
    %c0_8 = arith.constant 0 : index
    %8 = vector.load %arg5[%c1, %c0_8] : memref<2x256xf32, #tpu.memory_space<vmem>>, vector<1x256xf32>
    %9 = vector.broadcast %8 : vector<1x256xf32> to vector<16x256xf32>
    %10 = arith.addf %7, %9 : vector<16x256xf32>
    %cst_9 = arith.constant 0.000000e+00 : f32
    %11 = vector.broadcast %cst_9 : f32 to vector<16x256xf32>
    %12 = arith.maximumf %10, %11 : vector<16x256xf32>
    %13 = arith.truncf %12 : vector<16x256xf32> to vector<16x256xbf16>
    %c0_10 = arith.constant 0 : index
    %c0_11 = arith.constant 0 : index
    %c0_12 = arith.constant 0 : index
    %c0_13 = arith.constant 0 : index
    %14 = vector.load %arg6[%c0_10, %c0_11, %c0_12, %c0_13] : memref<1x1x16x256xbf16, #tpu.memory_space<vmem>>, vector<1x1x16x256xbf16>
    %15 = vector.shape_cast %14 : vector<1x1x16x256xbf16> to vector<16x256xbf16>
    %16 = vector.shape_cast %13 : vector<16x256xbf16> to vector<1x1x16x256xbf16>
    tpu.vector_store %arg6[%c0_10, %c0_11, %c0_12, %c0_13], %16 {strides = array<i32>} : memref<1x1x16x256xbf16, #tpu.memory_space<vmem>>, vector<1x1x16x256xbf16>,
    return
  }
  func.func @transform_0(%arg0: i32, %arg1: i32, %arg2: i32) -> (i32, i32, i32, i32) {
    %c1_i32 = arith.constant 1 : i32
    %0 = arith.muli %c1_i32, %arg2 : i32
    %c0_i32 = arith.constant 0 : i32
    %1 = arith.addi %0, %c0_i32 : i32
    %c0_i32_0 = arith.constant 0 : i32
    %c0_i32_1 = arith.constant 0 : i32
    %c0_i32_2 = arith.constant 0 : i32
    return %arg1, %1, %c0_i32_0, %c0_i32_1 : i32, i32, i32, i32
  }
  func.func @transform_1(%arg0: i32, %arg1: i32, %arg2: i32) -> (i32, i32, i32) {
    %c0_i32 = arith.constant 0 : i32
    %c0_i32_0 = arith.constant 0 : i32
    %c0_i32_1 = arith.constant 0 : i32
    return %c0_i32, %c0_i32_0, %arg0 : i32, i32, i32
  }
  func.func @transform_2(%arg0: i32, %arg1: i32, %arg2: i32) -> (i32, i32) {
    %c0_i32 = arith.constant 0 : i32
    %c0_i32_0 = arith.constant 0 : i32
    return %c0_i32, %arg0 : i32, i32
  }
  func.func @transform_3(%arg0: i32, %arg1: i32, %arg2: i32) -> (i32, i32, i32, i32) {
    %c0_i32 = arith.constant 0 : i32
    %c0_i32_0 = arith.constant 0 : i32
    return %arg1, %arg2, %c0_i32, %arg0 : i32, i32, i32, i32
  }
}

</mosaic_0001>

<bundles_post_ra>
// kernel: forward.19
= control target key start
LH: loop header
LB: loop body
LE: loop exit
PB: predicated region body
PF: predicated region fallthrough
CT: control target
= control target key end

     0   :  { %s1227_s18 = smov 0   ;;  %s1229_s19 = smov 0   ;;  %s1385_s0 = inlined_call_operand.vmem [shape: bf16[1,10,16,128], index: 0, kind: input, shape index: {}, may-alias: {0,1,2}]   ;;  %s1386_s1 = inlined_call_operand.vmem [shape: bf16[1,10,16,128], index: 1, kind: input, shape index: {}, may-alias: {0,1,2}]   ;;  %s1387_s2 = inlined_call_operand.vmem [shape: bf16[1,10,16,128], index: 2, kind: input, shape index: {}, may-alias: {0,1,2}]   ;;  %s1388_s3 = inlined_call_operand.vmem [shape: bf16[3,128,128], index: 3, kind: input, shape index: {}]   ;;  %s1389_s4 = inlined_call_operand.vmem [shape: f32[2,128], index: 4, kind: input, shape index: {}]   ;;  %s1390_s5 = inlined_call_operand.vmem [shape: bf16[1,8,16,128], index: 5, kind: output, shape index: {}]  }
   0x1   :  { %s1231_s20 = smov 0  }
   0x2 LB: > { %s27_s21 = sadd.s32 1, %s1189_s19  ;;  %p946_p0 = scmp.ge.s32.totalorder %s1193_s20, 1  ;;  %s1193_s20 = sphi %s1231_s20, %s15_s20   ;;  %s1189_s19 = sphi %s1229_s19, %s1392_s19   ;;  %s1185_s18 = sphi %s1227_s18, %s1391_s18  }
   0x3   : > { %p28_p1 = scmp.ge.s32.totalorder %s27_s21, 8  ;;  %p274_p2 = scmp.lt.s32.totalorder %s1193_s20, 9 }
   0x5   : > { %s1394_s21 = smov (%p28_p1, %s27_s21), 0  ;;  %p275_p3 = pnand %p946_p0, %p274_p2 }
   0x6   : > { %s350_s28 = sadd.s32 (!%p275_p3), 1, %s1185_s18  ;;  %p343_p5 = scmp.lt.s32.totalorder (!%p275_p3), %s1185_s18, 9 }
   0x7   : > { %278 = sbr.rel (%p275_p3) target bundleno = 285 (0x11d), region = 40  ;;  %p353_p4 = scmp.lt.s32.totalorder (!%p275_p3), %s350_s28, 9 }
   0x8   : > { %s361_s15 = sadd.s32 (!%p275_p3), 2, %s1185_s18  ;;  %p382_p7 = scmp.lt.s32.totalorder (!%p275_p3), %s1185_s18, 7 }
   0x9   : > { %p364_p6 = scmp.lt.s32.totalorder (!%p275_p3), %s361_s15, 9 }
   0xc   : > { %v1144_v0 = vld [vmem:[%s1388_s3 + $0x78] sm:$0xff]   ;;  %v1195_v1 = vmov 0.0   ;;  %v1146_v3 = vld [vmem:[%s1388_s3 + $0x70] sm:$0xff]   ;;  %vm1196_vm0 = vmmov 0   ;;  %v1148_v5 = vld [vmem:[%s1388_s3 + $0x68] sm:$0xff]   ;;  %s1396_s28 = smov (!%p353_p4, %s350_s28), 9 }
   0xd   : > { %1058 = vmatprep.subr.bf16.mxu0 %v1195_v1  ;;  %1078 = vmatprep.subr.bf16.mxu1 %v1195_v1  ;;  %v1145_v2 = vld [vmem:[%s1388_s3 + $0x38] sm:$0xff]   ;;  %v1147_v4 = vld [vmem:[%s1388_s3 + $0x30] sm:$0xff]   ;;  %v1149_v6 = vld [vmem:[%s1388_s3 + $0x28] sm:$0xff]   ;;  %s344_s10 = scalar_select %p343_p5, %s1185_s18, 9 }
   0xe   : > { %1059 = vmatpush3.bf16.msra.mxu0 %v1144_v0  ;;  %1074 = vmatprep.mubr.msk.bf16.mxu0 %vm1196_vm0, %v1195_v1  ;;  %v1150_v7 = vld [vmem:[%s1388_s3 + $0x60] sm:$0xff]   ;;  %s1021_s16 = sshll.u32 %s1396_s28, 3  ;;  %v1152_v9 = vld [vmem:[%s1388_s3 + $0x58] sm:$0xff]   ;;  %v1154_v11 = vld [vmem:[%s1388_s3 + $0x50] sm:$0xff]   ;;  %s1398_s15 = smov (!%p364_p6, %s361_s15), 9 }
   0xf   : > { %1079 = vmatpush3.bf16.msra.mxu1 %v1145_v2  ;;  %1060 = vmatprep.subr.bf16.mxu0 %v1195_v1  ;;  %v1151_v8 = vld [vmem:[%s1388_s3 + $0x20] sm:$0xff]   ;;  %s1020_s17 = sshll.u32 %s344_s10, 3  ;;  %v1153_v10 = vld [vmem:[%s1388_s3 + $0x18] sm:$0xff]   ;;  %s359_s29 = scalar_lea.vmem %s1386_s1, %s1021_s16  ;;  %v1155_v12 = vld [vmem:[%s1388_s3 + $0x10] sm:$0xff]  }
  0x10   : > { %1080 = vmatprep.subr.bf16.mxu1 %v1195_v1  ;;  %1094 = vmatprep.mubr.msk.bf16.mxu1 %vm1196_vm0, %v1195_v1  ;;  %s349_s6 = scalar_lea.vmem %s1385_s0, %s1020_s17  ;;  %v1156_v13 = vld [vmem:[%s1388_s3 + $0x48] sm:$0xff]   ;;  %s1022_s13 = sshll.u32 %s1398_s15, 3  ;;  %v1158_v15 = vld [vmem:[%s1388_s3 + $0x40] sm:$0xff]   ;;  %v1162_v19 = vld [vmem:[%s1388_s3 + $0xb8] sm:$0xff]  }
  0x11   : > { %v1157_v14 = vld [vmem:[%s1388_s3 + $0x8] sm:$0xff]   ;;  %s1320_s23 = scalar_lea.vmem %s1387_s2, %s1022_s13  ;;  %v1159_v16 = vld [vmem:[%s1388_s3] sm:$0xff]   ;;  %v1163_v20 = vld [vmem:[%s1388_s3 + $0xb0] sm:$0xff]   ;;  %s1400_s18 = smov (!%p382_p7, %s1185_s18), 7 }
  0x12   : > { %1061 = vmatpush3.bf16.msra.mxu0 %v1146_v3  ;;  %v1160_v17 = vld [vmem:[%s359_s29] sm:$0xff]   ;;  %v1164_v21 = vld [vmem:[%s1388_s3 + $0xa8] sm:$0xff]   ;;  %v1166_v23 = vld [vmem:[%s1388_s3 + $0x98] sm:$0xff]   ;;  %s1023_s26 = sshll.u32 %s1400_s18, 3 }
  0x13   : > { %1081 = vmatpush3.bf16.msra.mxu1 %v1147_v4  ;;  %1062 = vmatprep.subr.bf16.mxu0 %v1195_v1  ;;  %v1161_v18 = vld [vmem:[%s349_s6] sm:$0xff]   ;;  %v1167_v24 = vld [vmem:[%s1388_s3 + $0x90] sm:$0xff]   ;;  %v1168_v25 = vld [vmem:[%s1388_s3 + $0x88] sm:$0xff]   ;;  %s391_s30 = scalar_lea.vmem %s1390_s5, %s1023_s26 }
  0x14   : > { %1082 = vmatprep.subr.bf16.mxu1 %v1195_v1  ;;  %v1165_v22 = vld [vmem:[%s1388_s3 + $0xa0] sm:$0xff]  }
  0x15   : > { %v1169_v26 = vld [vmem:[%s1388_s3 + $0x80] sm:$0xff]  }
  0x16   : > { %1063 = vmatpush3.bf16.msra.mxu0 %v1148_v5  ;;  %v1170_v27 = vld [vmem:[%s1320_s23] sm:$0xff]  }
  0x17   : > { %1083 = vmatpush3.bf16.msra.mxu1 %v1149_v6  ;;  %1064 = vmatprep.subr.bf16.mxu0 %v1195_v1  ;;  %v1014_v38 = vld [vmem:[%s1389_s4] ss:$0 sm:$0xff]  ;;  %v1015_v43 = vld [vmem:[%s1389_s4 + $0x1] ss:$0 sm:$0xff] }
  0x18   : > { %1084 = vmatprep.subr.bf16.mxu1 %v1195_v1 }
  0x1a   : > { %1065 = vmatpush3.bf16.msra.mxu0 %v1150_v7 }
  0x1b   : > { %1085 = vmatpush3.bf16.msra.mxu1 %v1151_v8  ;;  %1066 = vmatprep.subr.bf16.mxu0 %v1195_v1 }
  0x1c   : > { %1086 = vmatprep.subr.bf16.mxu1 %v1195_v1 }
  0x1e   : > { %1067 = vmatpush3.bf16.msra.mxu0 %v1152_v9 }
  0x1f   : > { %1087 = vmatpush3.bf16.msra.mxu1 %v1153_v10  ;;  %1068 = vmatprep.subr.bf16.mxu0 %v1195_v1 }
  0x20   : > { %1088 = vmatprep.subr.bf16.mxu1 %v1195_v1 }
  0x22   : > { %1069 = vmatpush3.bf16.msra.mxu0 %v1154_v11 }
  0x23   : > { %1089 = vmatpush3.bf16.msra.mxu1 %v1155_v12  ;;  %1070 = vmatprep.subr.bf16.mxu0 %v1195_v1 }
  0x24   : > { %1090 = vmatprep.subr.bf16.mxu1 %v1195_v1 }
  0x26   : > { %1071 = vmatpush3.bf16.msra.mxu0 %v1156_v13 }
  0x27   : > { %1091 = vmatpush3.bf16.msra.mxu1 %v1157_v14  ;;  %1072 = vmatprep.subr.bf16.mxu0 %v1195_v1 }
  0x28   : > { %1092 = vmatprep.subr.bf16.mxu1 %v1195_v1 }
  0x2a   : > { %1073 = vmatpush3.bf16.msra.mxu0 %v1158_v15 }
  0x2b   : > { %1093 = vmatpush3.bf16.msra.mxu1 %v1159_v16  ;;  %1098 = vmatprep.subr.bf16.mxu0 %v1195_v1 }
  0x2d   : > { %1075 = vmatmul.mubr.bf16.vlgmr.msra.gmra.mxu0 %v1160_v17 }
  0x2e   : > { %1095 = vmatmul.mubr.bf16.vlgmr.msra.gmra.mxu1 %v1161_v18  ;;  %1099 = vmatpush3.bf16.msra.mxu0 %v1162_v19 }
  0x2f   : > { %1100 = vmatprep.subr.bf16.mxu0 %v1195_v1  ;;  %1114 = vmatprep.mubr.msk.bf16.mxu0 %vm1196_vm0, %v1195_v1 }
  0x32   : > { %1101 = vmatpush3.bf16.msra.mxu0 %v1163_v20 }
  0x33   : > { %1102 = vmatprep.subr.bf16.mxu0 %v1195_v1 }
  0x36   : > { %1103 = vmatpush3.bf16.msra.mxu0 %v1164_v21 }
  0x37   : > { %1104 = vmatprep.subr.bf16.mxu0 %v1195_v1 }
  0x3a   : > { %1105 = vmatpush3.bf16.msra.mxu0 %v1165_v22 }
  0x3b   : > { %1106 = vmatprep.subr.bf16.mxu0 %v1195_v1 }
  0x3e   : > { %1107 = vmatpush3.bf16.msra.mxu0 %v1166_v23 }
  0x3f   : > { %1108 = vmatprep.subr.bf16.mxu0 %v1195_v1 }
  0x42   : > { %1109 = vmatpush3.bf16.msra.mxu0 %v1167_v24 }
  0x43   : > { %1110 = vmatprep.subr.bf16.mxu0 %v1195_v1 }
  0x46   : > { %1111 = vmatpush3.bf16.msra.mxu0 %v1168_v25 }
  0x47   : > { %1112 = vmatprep.subr.bf16.mxu0 %v1195_v1 }
  0x4a   : > { %1113 = vmatpush3.bf16.msra.mxu0 %v1169_v26 }
  0x4d   : > { %1115 = vmatmul.mubr.bf16.vlgmr.msra.gmra.mxu0 %v1170_v27 }
  0xed   : > { %v518_v28 = vpop.f32.mrf.mxu0 }
  0xee   : > { %v613_v29 = vpop.f32.mrf.mxu1 }
  0xef   : > { %v1076_v30 = vpop.f32.mrf.mxu0  ;;  %v614_v36 = vadd.f32 %v613_v29, %v518_v28 }
  0xf0   : > { %v1096_v31 = vpop.f32.mrf.mxu1 }
  0xf1   : > { %v521_v32 = vpop.f32.mrf.mxu0 }
  0xf2   : > { %v616_v33 = vpop.f32.mrf.mxu1 }
  0xf3   : > { %v1077_v34 = vpop.f32.mrf.mxu0  ;;  %v617_v41 = vadd.f32 %v616_v33, %v521_v32 }
  0xf4   : > { %v1097_v35 = vpop.f32.mrf.mxu1 }
 0x10d   : > { %v727_v37 = vpop.f32.mrf.mxu0 }
 0x10e   : > { %v734_v39 = vadd.f32 %v727_v37, %v614_v36 }
 0x10f   : > { %v1116_v40 = vpop.f32.mrf.mxu0 }
 0x110   : > { %v741_v42 = vmul.f32 %v1014_v38, %v734_v39 }
 0x111   : > { %v730_v44 = vpop.f32.mrf.mxu0 }
 0x112   : > { %v735_v45 = vadd.f32 %v730_v44, %v617_v41  ;;  %v748_v47 = vadd.f32 %v1015_v43, %v741_v42 }
 0x113   : > { %v1117_v46 = vpop.f32.mrf.mxu0 }
 0x114   : > { %v742_v48 = vmul.f32 %v1014_v38, %v735_v45  ;;  %v750_v50 = vmax.f32 %v748_v47, 0.0 }
 0x116   : > { %v749_v49 = vadd.f32 %v1015_v43, %v742_v48 }
 0x118   : > { %v751_v51 = vmax.f32 %v749_v49, 0.0 }
 0x11a   : > { %v1029_v52 = vpack.c.bf16 %v751_v51, %v750_v50 }
 0x11c   : > { %1030 = vst [vmem:[%s391_s30] sm:$0xff] %v1029_v52  }
 0x11d PF: > { %s15_s20 = sadd.s32 1, %s1193_s20   ;;  %s1391_s18 = smov %s1189_s19 }
 0x11e   : > { %p12_p8 = scmp.ge.s32.totalorder %s15_s20, 10   ;;  %s1392_s19 = smov %s1394_s21 }
 0x120   :  { %14 = sbr.rel (!%p12_p8) target bundleno = 2 (0x2), region = 84 }

// kernel: forward.18
= control target key start
LH: loop header
LB: loop body
LE: loop exit
PB: predicated region body
PF: predicated region fallthrough
CT: control target
= control target key end

     0   :  { %s1257_s18 = smov 0   ;;  %s1259_s19 = smov 0   ;;  %s1418_s0 = inlined_call_operand.vmem [shape: bf16[1,18,16,128], index: 0, kind: input, shape index: {}, may-alias: {0,1,2}]   ;;  %s1419_s1 = inlined_call_operand.vmem [shape: bf16[1,18,16,128], index: 1, kind: input, shape index: {}, may-alias: {0,1,2}]   ;;  %s1420_s2 = inlined_call_operand.vmem [shape: bf16[1,18,16,128], index: 2, kind: input, shape index: {}, may-alias: {0,1,2}]   ;;  %s1421_s3 = inlined_call_operand.vmem [shape: bf16[3,128,128], index: 3, kind: input, shape index: {}]   ;;  %s1422_s4 = inlined_call_operand.vmem [shape: f32[2,128], index: 4, kind: input, shape index: {}]   ;;  %s1423_s5 = inlined_call_operand.vmem [shape: bf16[1,8,16,128], index: 5, kind: output, shape index: {}]  }
   0x1   :  { %s1261_s20 = smov 0  }
   0x2 LB: > { %s27_s21 = sadd.s32 1, %s1219_s19  ;;  %p973_p0 = scmp.ge.s32.totalorder %s1223_s20, 1  ;;  %s1223_s20 = sphi %s1261_s20, %s15_s20   ;;  %s1219_s19 = sphi %s1259_s19, %s1425_s19   ;;  %s1215_s18 = sphi %s1257_s18, %s1424_s18  }
   0x3   : > { %p28_p1 = scmp.ge.s32.totalorder %s27_s21, 8  ;;  %p286_p2 = scmp.lt.s32.totalorder %s1223_s20, 9 }
   0x5   : > { %s1427_s21 = smov (%p28_p1, %s27_s21), 0  ;;  %p287_p3 = pnand %p973_p0, %p286_p2 }
   0x6   : > { %s1291_s28 = sshll.u32 (!%p287_p3), %s1215_s18, 1  ;;  %p403_p7 = scmp.lt.s32.totalorder (!%p287_p3), %s1215_s18, 7 }
   0x7   : > { %290 = sbr.rel (%p287_p3) target bundleno = 285 (0x11d), region = 40  ;;  %s368_s6 = sadd.s32 (!%p287_p3), 1, %s1291_s28 }
   0x8   : > { %p371_p4 = scmp.lt.s32.totalorder (!%p287_p3), %s368_s6, 17  ;;  %p359_p5 = scmp.lt.s32.totalorder (!%p287_p3), %s1291_s28, 17 }
   0x9   : > { %s381_s16 = sadd.s32 (!%p287_p3), 2, %s1291_s28 }
   0xa   : > { %p384_p6 = scmp.lt.s32.totalorder (!%p287_p3), %s381_s16, 17 }
   0xc   : > { %v1174_v0 = vld [vmem:[%s1421_s3 + $0x78] sm:$0xff]   ;;  %v1225_v1 = vmov 0.0   ;;  %v1176_v3 = vld [vmem:[%s1421_s3 + $0x70] sm:$0xff]   ;;  %vm1226_vm0 = vmmov 0   ;;  %v1178_v5 = vld [vmem:[%s1421_s3 + $0x68] sm:$0xff]   ;;  %s1429_s6 = smov (!%p371_p4, %s368_s6), 17 }
   0xd   : > { %1088 = vmatprep.subr.bf16.mxu0 %v1225_v1  ;;  %1108 = vmatprep.subr.bf16.mxu1 %v1225_v1  ;;  %v1175_v2 = vld [vmem:[%s1421_s3 + $0x38] sm:$0xff]   ;;  %v1177_v4 = vld [vmem:[%s1421_s3 + $0x30] sm:$0xff]   ;;  %v1179_v6 = vld [vmem:[%s1421_s3 + $0x28] sm:$0xff]   ;;  %s360_s11 = scalar_select %p359_p5, %s1291_s28, 17 }
   0xe   : > { %1089 = vmatpush3.bf16.msra.mxu0 %v1174_v0  ;;  %1104 = vmatprep.mubr.msk.bf16.mxu0 %vm1226_vm0, %v1225_v1  ;;  %v1180_v7 = vld [vmem:[%s1421_s3 + $0x60] sm:$0xff]   ;;  %s1051_s17 = sshll.u32 %s1429_s6, 3  ;;  %v1182_v9 = vld [vmem:[%s1421_s3 + $0x58] sm:$0xff]   ;;  %v1184_v11 = vld [vmem:[%s1421_s3 + $0x50] sm:$0xff]   ;;  %s1431_s16 = smov (!%p384_p6, %s381_s16), 17 }
   0xf   : > { %1109 = vmatpush3.bf16.msra.mxu1 %v1175_v2  ;;  %1090 = vmatprep.subr.bf16.mxu0 %v1225_v1  ;;  %v1181_v8 = vld [vmem:[%s1421_s3 + $0x20] sm:$0xff]   ;;  %s1050_s22 = sshll.u32 %s360_s11, 3  ;;  %v1183_v10 = vld [vmem:[%s1421_s3 + $0x18] sm:$0xff]   ;;  %s377_s28 = scalar_lea.vmem %s1419_s1, %s1051_s17  ;;  %v1185_v12 = vld [vmem:[%s1421_s3 + $0x10] sm:$0xff]  }
  0x10   : > { %1110 = vmatprep.subr.bf16.mxu1 %v1225_v1  ;;  %1124 = vmatprep.mubr.msk.bf16.mxu1 %vm1226_vm0, %v1225_v1  ;;  %s365_s7 = scalar_lea.vmem %s1418_s0, %s1050_s22  ;;  %v1186_v13 = vld [vmem:[%s1421_s3 + $0x48] sm:$0xff]   ;;  %s1052_s14 = sshll.u32 %s1431_s16, 3  ;;  %v1188_v15 = vld [vmem:[%s1421_s3 + $0x40] sm:$0xff]   ;;  %v1192_v19 = vld [vmem:[%s1421_s3 + $0xb8] sm:$0xff]  }
  0x11   : > { %v1187_v14 = vld [vmem:[%s1421_s3 + $0x8] sm:$0xff]   ;;  %s1353_s24 = scalar_lea.vmem %s1420_s2, %s1052_s14  ;;  %v1189_v16 = vld [vmem:[%s1421_s3] sm:$0xff]   ;;  %v1193_v20 = vld [vmem:[%s1421_s3 + $0xb0] sm:$0xff]   ;;  %s1433_s18 = smov (!%p403_p7, %s1215_s18), 7 }
  0x12   : > { %1091 = vmatpush3.bf16.msra.mxu0 %v1176_v3  ;;  %v1190_v17 = vld [vmem:[%s377_s28] sm:$0xff]   ;;  %v1194_v21 = vld [vmem:[%s1421_s3 + $0xa8] sm:$0xff]   ;;  %v1196_v23 = vld [vmem:[%s1421_s3 + $0x98] sm:$0xff]   ;;  %s1053_s27 = sshll.u32 %s1433_s18, 3 }
  0x13   : > { %1111 = vmatpush3.bf16.msra.mxu1 %v1177_v4  ;;  %1092 = vmatprep.subr.bf16.mxu0 %v1225_v1  ;;  %v1191_v18 = vld [vmem:[%s365_s7] sm:$0xff]   ;;  %v1197_v24 = vld [vmem:[%s1421_s3 + $0x90] sm:$0xff]   ;;  %v1198_v25 = vld [vmem:[%s1421_s3 + $0x88] sm:$0xff]   ;;  %s412_s6 = scalar_lea.vmem %s1423_s5, %s1053_s27 }
  0x14   : > { %1112 = vmatprep.subr.bf16.mxu1 %v1225_v1  ;;  %v1195_v22 = vld [vmem:[%s1421_s3 + $0xa0] sm:$0xff]  }
  0x15   : > { %v1199_v26 = vld [vmem:[%s1421_s3 + $0x80] sm:$0xff]  }
  0x16   : > { %1093 = vmatpush3.bf16.msra.mxu0 %v1178_v5  ;;  %v1200_v27 = vld [vmem:[%s1353_s24] sm:$0xff]  }
  0x17   : > { %1113 = vmatpush3.bf16.msra.mxu1 %v1179_v6  ;;  %1094 = vmatprep.subr.bf16.mxu0 %v1225_v1  ;;  %v1044_v38 = vld [vmem:[%s1422_s4] ss:$0 sm:$0xff]  ;;  %v1045_v43 = vld [vmem:[%s1422_s4 + $0x1] ss:$0 sm:$0xff] }
  0x18   : > { %1114 = vmatprep.subr.bf16.mxu1 %v1225_v1 }
  0x1a   : > { %1095 = vmatpush3.bf16.msra.mxu0 %v1180_v7 }
  0x1b   : > { %1115 = vmatpush3.bf16.msra.mxu1 %v1181_v8  ;;  %1096 = vmatprep.subr.bf16.mxu0 %v1225_v1 }
  0x1c   : > { %1116 = vmatprep.subr.bf16.mxu1 %v1225_v1 }
  0x1e   : > { %1097 = vmatpush3.bf16.msra.mxu0 %v1182_v9 }
  0x1f   : > { %1117 = vmatpush3.bf16.msra.mxu1 %v1183_v10  ;;  %1098 = vmatprep.subr.bf16.mxu0 %v1225_v1 }
  0x20   : > { %1118 = vmatprep.subr.bf16.mxu1 %v1225_v1 }
  0x22   : > { %1099 = vmatpush3.bf16.msra.mxu0 %v1184_v11 }
  0x23   : > { %1119 = vmatpush3.bf16.msra.mxu1 %v1185_v12  ;;  %1100 = vmatprep.subr.bf16.mxu0 %v1225_v1 }
  0x24   : > { %1120 = vmatprep.subr.bf16.mxu1 %v1225_v1 }
  0x26   : > { %1101 = vmatpush3.bf16.msra.mxu0 %v1186_v13 }
  0x27   : > { %1121 = vmatpush3.bf16.msra.mxu1 %v1187_v14  ;;  %1102 = vmatprep.subr.bf16.mxu0 %v1225_v1 }
  0x28   : > { %1122 = vmatprep.subr.bf16.mxu1 %v1225_v1 }
  0x2a   : > { %1103 = vmatpush3.bf16.msra.mxu0 %v1188_v15 }
  0x2b   : > { %1123 = vmatpush3.bf16.msra.mxu1 %v1189_v16  ;;  %1128 = vmatprep.subr.bf16.mxu0 %v1225_v1 }
  0x2d   : > { %1105 = vmatmul.mubr.bf16.vlgmr.msra.gmra.mxu0 %v1190_v17 }
  0x2e   : > { %1125 = vmatmul.mubr.bf16.vlgmr.msra.gmra.mxu1 %v1191_v18  ;;  %1129 = vmatpush3.bf16.msra.mxu0 %v1192_v19 }
  0x2f   : > { %1130 = vmatprep.subr.bf16.mxu0 %v1225_v1  ;;  %1144 = vmatprep.mubr.msk.bf16.mxu0 %vm1226_vm0, %v1225_v1 }
  0x32   : > { %1131 = vmatpush3.bf16.msra.mxu0 %v1193_v20 }
  0x33   : > { %1132 = vmatprep.subr.bf16.mxu0 %v1225_v1 }
  0x36   : > { %1133 = vmatpush3.bf16.msra.mxu0 %v1194_v21 }
  0x37   : > { %1134 = vmatprep.subr.bf16.mxu0 %v1225_v1 }
  0x3a   : > { %1135 = vmatpush3.bf16.msra.mxu0 %v1195_v22 }
  0x3b   : > { %1136 = vmatprep.subr.bf16.mxu0 %v1225_v1 }
  0x3e   : > { %1137 = vmatpush3.bf16.msra.mxu0 %v1196_v23 }
  0x3f   : > { %1138 = vmatprep.subr.bf16.mxu0 %v1225_v1 }
  0x42   : > { %1139 = vmatpush3.bf16.msra.mxu0 %v1197_v24 }
  0x43   : > { %1140 = vmatprep.subr.bf16.mxu0 %v1225_v1 }
  0x46   : > { %1141 = vmatpush3.bf16.msra.mxu0 %v1198_v25 }
  0x47   : > { %1142 = vmatprep.subr.bf16.mxu0 %v1225_v1 }
  0x4a   : > { %1143 = vmatpush3.bf16.msra.mxu0 %v1199_v26 }
  0x4d   : > { %1145 = vmatmul.mubr.bf16.vlgmr.msra.gmra.mxu0 %v1200_v27 }
  0xed   : > { %v539_v28 = vpop.f32.mrf.mxu0 }
  0xee   : > { %v634_v29 = vpop.f32.mrf.mxu1 }
  0xef   : > { %v1106_v30 = vpop.f32.mrf.mxu0  ;;  %v635_v36 = vadd.f32 %v634_v29, %v539_v28 }
  0xf0   : > { %v1126_v31 = vpop.f32.mrf.mxu1 }
  0xf1   : > { %v542_v32 = vpop.f32.mrf.mxu0 }
  0xf2   : > { %v637_v33 = vpop.f32.mrf.mxu1 }
  0xf3   : > { %v1107_v34 = vpop.f32.mrf.mxu0  ;;  %v638_v41 = vadd.f32 %v637_v33, %v542_v32 }
  0xf4   : > { %v1127_v35 = vpop.f32.mrf.mxu1 }
 0x10d   : > { %v748_v37 = vpop.f32.mrf.mxu0 }
 0x10e   : > { %v755_v39 = vadd.f32 %v748_v37, %v635_v36 }
 0x10f   : > { %v1146_v40 = vpop.f32.mrf.mxu0 }
 0x110   : > { %v762_v42 = vmul.f32 %v1044_v38, %v755_v39 }
 0x111   : > { %v751_v44 = vpop.f32.mrf.mxu0 }
 0x112   : > { %v756_v45 = vadd.f32 %v751_v44, %v638_v41  ;;  %v769_v47 = vadd.f32 %v1045_v43, %v762_v42 }
 0x113   : > { %v1147_v46 = vpop.f32.mrf.mxu0 }
 0x114   : > { %v763_v48 = vmul.f32 %v1044_v38, %v756_v45  ;;  %v771_v50 = vmax.f32 %v769_v47, 0.0 }
 0x116   : > { %v770_v49 = vadd.f32 %v1045_v43, %v763_v48 }
 0x118   : > { %v772_v51 = vmax.f32 %v770_v49, 0.0 }
 0x11a   : > { %v1059_v52 = vpack.c.bf16 %v772_v51, %v771_v50 }
 0x11c   : > { %1060 = vst [vmem:[%s412_s6] sm:$0xff] %v1059_v52  }
 0x11d PF: > { %s15_s20 = sadd.s32 1, %s1223_s20   ;;  %s1424_s18 = smov %s1219_s19 }
 0x11e   : > { %p12_p8 = scmp.ge.s32.totalorder %s15_s20, 10   ;;  %s1425_s19 = smov %s1427_s21 }
 0x120   :  { %14 = sbr.rel (!%p12_p8) target bundleno = 2 (0x2), region = 84 }

// kernel: forward.20
= control target key start
LH: loop header
LB: loop body
LE: loop exit
PB: predicated region body
PF: predicated region fallthrough
CT: control target
= control target key end

     0   :  { %s677_s12 = smov 0   ;;  %s679_s13 = smov 0   ;;  %s747_s0 = inlined_call_operand.vmem [shape: bf16[1,8,16,128], index: 0, kind: input, shape index: {}]   ;;  %s748_s1 = inlined_call_operand.vmem [shape: bf16[1,128,128], index: 1, kind: input, shape index: {}]   ;;  %s749_s2 = inlined_call_operand.vmem [shape: f32[2,128], index: 2, kind: input, shape index: {}]   ;;  %s750_s3 = inlined_call_operand.vmem [shape: bf16[1,8,16,128], index: 3, kind: output, shape index: {}]  }
   0x1   :  { %s681_s14 = smov 0  }
   0x2 LB: > { %s25_s15 = sadd.s32 1, %s649_s13  ;;  %p538_p0 = scmp.ge.s32.totalorder %s653_s14, 1  ;;  %s653_s14 = sphi %s681_s14, %s13_s14   ;;  %s649_s13 = sphi %s679_s13, %s752_s13   ;;  %s645_s12 = sphi %s677_s12, %s751_s12  }
   0x3   : > { %p26_p1 = scmp.ge.s32.totalorder %s25_s15, 8  ;;  %p184_p2 = scmp.lt.s32.totalorder %s653_s14, 9 }
   0x5   : > { %s754_s15 = smov (%p26_p1, %s25_s15), 0  ;;  %p185_p3 = pnand %p538_p0, %p184_p2 }
   0x6   : > { %p229_p4 = scmp.lt.s32.totalorder (!%p185_p3), %s645_s12, 7 }
   0x7   : > { %188 = sbr.rel (%p185_p3) target bundleno = 251 (0xfb), region = 32 }
   0xc   : > { %v622_v0 = vld [vmem:[%s748_s1 + $0x38] sm:$0xff]   ;;  %v655_v1 = vmov 0.0   ;;  %v623_v2 = vld [vmem:[%s748_s1 + $0x30] sm:$0xff]   ;;  %vm656_vm0 = vmmov 0   ;;  %s756_s12 = smov (!%p229_p4, %s645_s12), 7  ;;  %v624_v3 = vld [vmem:[%s748_s1 + $0x28] sm:$0xff]  }
   0xd   : > { %576 = vmatprep.subr.bf16.mxu0 %v655_v1  ;;  %592 = vmatprep.mubr.msk.bf16.mxu0 %vm656_vm0, %v655_v1  ;;  %s558_s22 = sshll.u32 %s756_s12, 3  ;;  %v625_v4 = vld [vmem:[%s748_s1 + $0x20] sm:$0xff]   ;;  %v626_v5 = vld [vmem:[%s748_s1 + $0x18] sm:$0xff]   ;;  %v627_v6 = vld [vmem:[%s748_s1 + $0x10] sm:$0xff]  }
   0xe   : > { %577 = vmatpush3.bf16.msra.mxu0 %v622_v0  ;;  %s235_s25 = scalar_lea.vmem %s747_s0, %s558_s22  ;;  %v628_v7 = vld [vmem:[%s748_s1 + $0x8] sm:$0xff]   ;;  %v629_v8 = vld [vmem:[%s748_s1] sm:$0xff]   ;;  %s255_s19 = scalar_lea.vmem %s750_s3, %s558_s22 }
   0xf   : > { %578 = vmatprep.subr.bf16.mxu0 %v655_v1  ;;  %v630_v9 = vld [vmem:[%s235_s25] sm:$0xff]  }
  0x10   : > { %v552_v10 = vld [vmem:[%s749_s2] ss:$0 sm:$0xff]  ;;  %v553_v13 = vld [vmem:[%s749_s2 + $0x1] ss:$0 sm:$0xff] }
  0x12   : > { %579 = vmatpush3.bf16.msra.mxu0 %v623_v2 }
  0x13   : > { %580 = vmatprep.subr.bf16.mxu0 %v655_v1 }
  0x16   : > { %581 = vmatpush3.bf16.msra.mxu0 %v624_v3 }
  0x17   : > { %582 = vmatprep.subr.bf16.mxu0 %v655_v1 }
  0x1a   : > { %583 = vmatpush3.bf16.msra.mxu0 %v625_v4 }
  0x1b   : > { %584 = vmatprep.subr.bf16.mxu0 %v655_v1 }
  0x1e   : > { %585 = vmatpush3.bf16.msra.mxu0 %v626_v5 }
  0x1f   : > { %586 = vmatprep.subr.bf16.mxu0 %v655_v1 }
  0x22   : > { %587 = vmatpush3.bf16.msra.mxu0 %v627_v6 }
  0x23   : > { %588 = vmatprep.subr.bf16.mxu0 %v655_v1 }
  0x26   : > { %589 = vmatpush3.bf16.msra.mxu0 %v628_v7 }
  0x27   : > { %590 = vmatprep.subr.bf16.mxu0 %v655_v1 }
  0x2a   : > { %591 = vmatpush3.bf16.msra.mxu0 %v629_v8 }
  0x2d   : > { %593 = vmatmul.mubr.bf16.vlgmr.msra.gmra.mxu0 %v630_v9 }
  0xed   : > { %v363_v11 = vpop.f32.mrf.mxu0 }
  0xee   : > { %v375_v12 = vmul.f32 %v552_v10, %v363_v11 }
  0xef   : > { %v594_v14 = vpop.f32.mrf.mxu0 }
  0xf0   : > { %v382_v16 = vadd.f32 %v553_v13, %v375_v12 }
  0xf1   : > { %v366_v15 = vpop.f32.mrf.mxu0 }
  0xf2   : > { %v376_v17 = vmul.f32 %v552_v10, %v366_v15  ;;  %v384_v20 = vmax.f32 %v382_v16, 0.0 }
  0xf3   : > { %v595_v18 = vpop.f32.mrf.mxu0 }
  0xf4   : > { %v383_v19 = vadd.f32 %v553_v13, %v376_v17 }
  0xf6   : > { %v385_v21 = vmax.f32 %v383_v19, 0.0 }
  0xf8   : > { %v565_v22 = vpack.c.bf16 %v385_v21, %v384_v20 }
  0xfa   : > { %566 = vst [vmem:[%s255_s19] sm:$0xff] %v565_v22  }
  0xfb PF: > { %s13_s14 = sadd.s32 1, %s653_s14   ;;  %s751_s12 = smov %s649_s13 }
  0xfc   : > { %p10_p5 = scmp.ge.s32.totalorder %s13_s14, 10   ;;  %s752_s13 = smov %s754_s15 }
  0xfe   :  { %12 = sbr.rel (!%p10_p5) target bundleno = 2 (0x2), region = 68 }

// kernel: forward.21
= control target key start
LH: loop header
LB: loop body
LE: loop exit
PB: predicated region body
PF: predicated region fallthrough
CT: control target
= control target key end

     0   :  { %s1257_s18 = smov 0   ;;  %s1259_s19 = smov 0   ;;  %s1418_s0 = inlined_call_operand.vmem [shape: bf16[1,10,16,128], index: 0, kind: input, shape index: {}, may-alias: {0,1,2}]   ;;  %s1419_s1 = inlined_call_operand.vmem [shape: bf16[1,10,16,128], index: 1, kind: input, shape index: {}, may-alias: {0,1,2}]   ;;  %s1420_s2 = inlined_call_operand.vmem [shape: bf16[1,10,16,128], index: 2, kind: input, shape index: {}, may-alias: {0,1,2}]   ;;  %s1421_s3 = inlined_call_operand.vmem [shape: bf16[3,128,128], index: 3, kind: input, shape index: {}]   ;;  %s1422_s4 = inlined_call_operand.vmem [shape: f32[2,128], index: 4, kind: input, shape index: {}]   ;;  %s1423_s5 = inlined_call_operand.vmem [shape: bf16[1,4,16,128], index: 5, kind: output, shape index: {}]  }
   0x1   :  { %s1261_s20 = smov 0  }
   0x2 LB: > { %s27_s21 = sadd.s32 1, %s1219_s19  ;;  %p973_p0 = scmp.ge.s32.totalorder %s1223_s20, 1  ;;  %s1223_s20 = sphi %s1261_s20, %s15_s20   ;;  %s1219_s19 = sphi %s1259_s19, %s1425_s19   ;;  %s1215_s18 = sphi %s1257_s18, %s1424_s18  }
   0x3   : > { %p28_p1 = scmp.ge.s32.totalorder %s27_s21, 4  ;;  %p286_p2 = scmp.lt.s32.totalorder %s1223_s20, 5 }
   0x5   : > { %s1427_s21 = smov (%p28_p1, %s27_s21), 0  ;;  %p287_p3 = pnand %p973_p0, %p286_p2 }
   0x6   : > { %s1291_s28 = sshll.u32 (!%p287_p3), %s1215_s18, 1  ;;  %p403_p7 = scmp.lt.s32.totalorder (!%p287_p3), %s1215_s18, 3 }
   0x7   : > { %290 = sbr.rel (%p287_p3) target bundleno = 285 (0x11d), region = 40  ;;  %s368_s6 = sadd.s32 (!%p287_p3), 1, %s1291_s28 }
   0x8   : > { %p371_p4 = scmp.lt.s32.totalorder (!%p287_p3), %s368_s6, 9  ;;  %p359_p5 = scmp.lt.s32.totalorder (!%p287_p3), %s1291_s28, 9 }
   0x9   : > { %s381_s16 = sadd.s32 (!%p287_p3), 2, %s1291_s28 }
   0xa   : > { %p384_p6 = scmp.lt.s32.totalorder (!%p287_p3), %s381_s16, 9 }
   0xc   : > { %v1174_v0 = vld [vmem:[%s1421_s3 + $0x78] sm:$0xff]   ;;  %v1225_v1 = vmov 0.0   ;;  %v1176_v3 = vld [vmem:[%s1421_s3 + $0x70] sm:$0xff]   ;;  %vm1226_vm0 = vmmov 0   ;;  %v1178_v5 = vld [vmem:[%s1421_s3 + $0x68] sm:$0xff]   ;;  %s1429_s6 = smov (!%p371_p4, %s368_s6), 9 }
   0xd   : > { %1088 = vmatprep.subr.bf16.mxu0 %v1225_v1  ;;  %1108 = vmatprep.subr.bf16.mxu1 %v1225_v1  ;;  %v1175_v2 = vld [vmem:[%s1421_s3 + $0x38] sm:$0xff]   ;;  %v1177_v4 = vld [vmem:[%s1421_s3 + $0x30] sm:$0xff]   ;;  %v1179_v6 = vld [vmem:[%s1421_s3 + $0x28] sm:$0xff]   ;;  %s360_s11 = scalar_select %p359_p5, %s1291_s28, 9 }
   0xe   : > { %1089 = vmatpush3.bf16.msra.mxu0 %v1174_v0  ;;  %1104 = vmatprep.mubr.msk.bf16.mxu0 %vm1226_vm0, %v1225_v1  ;;  %v1180_v7 = vld [vmem:[%s1421_s3 + $0x60] sm:$0xff]   ;;  %s1051_s17 = sshll.u32 %s1429_s6, 3  ;;  %v1182_v9 = vld [vmem:[%s1421_s3 + $0x58] sm:$0xff]   ;;  %v1184_v11 = vld [vmem:[%s1421_s3 + $0x50] sm:$0xff]   ;;  %s1431_s16 = smov (!%p384_p6, %s381_s16), 9 }
   0xf   : > { %1109 = vmatpush3.bf16.msra.mxu1 %v1175_v2  ;;  %1090 = vmatprep.subr.bf16.mxu0 %v1225_v1  ;;  %v1181_v8 = vld [vmem:[%s1421_s3 + $0x20] sm:$0xff]   ;;  %s1050_s22 = sshll.u32 %s360_s11, 3  ;;  %v1183_v10 = vld [vmem:[%s1421_s3 + $0x18] sm:$0xff]   ;;  %s377_s28 = scalar_lea.vmem %s1419_s1, %s1051_s17  ;;  %v1185_v12 = vld [vmem:[%s1421_s3 + $0x10] sm:$0xff]  }
  0x10   : > { %1110 = vmatprep.subr.bf16.mxu1 %v1225_v1  ;;  %1124 = vmatprep.mubr.msk.bf16.mxu1 %vm1226_vm0, %v1225_v1  ;;  %s365_s7 = scalar_lea.vmem %s1418_s0, %s1050_s22  ;;  %v1186_v13 = vld [vmem:[%s1421_s3 + $0x48] sm:$0xff]   ;;  %s1052_s14 = sshll.u32 %s1431_s16, 3  ;;  %v1188_v15 = vld [vmem:[%s1421_s3 + $0x40] sm:$0xff]   ;;  %v1192_v19 = vld [vmem:[%s1421_s3 + $0xb8] sm:$0xff]  }
  0x11   : > { %v1187_v14 = vld [vmem:[%s1421_s3 + $0x8] sm:$0xff]   ;;  %s1353_s24 = scalar_lea.vmem %s1420_s2, %s1052_s14  ;;  %v1189_v16 = vld [vmem:[%s1421_s3] sm:$0xff]   ;;  %v1193_v20 = vld [vmem:[%s1421_s3 + $0xb0] sm:$0xff]   ;;  %s1433_s18 = smov (!%p403_p7, %s1215_s18), 3 }
  0x12   : > { %1091 = vmatpush3.bf16.msra.mxu0 %v1176_v3  ;;  %v1190_v17 = vld [vmem:[%s377_s28] sm:$0xff]   ;;  %v1194_v21 = vld [vmem:[%s1421_s3 + $0xa8] sm:$0xff]   ;;  %v1196_v23 = vld [vmem:[%s1421_s3 + $0x98] sm:$0xff]   ;;  %s1053_s27 = sshll.u32 %s1433_s18, 3 }
  0x13   : > { %1111 = vmatpush3.bf16.msra.mxu1 %v1177_v4  ;;  %1092 = vmatprep.subr.bf16.mxu0 %v1225_v1  ;;  %v1191_v18 = vld [vmem:[%s365_s7] sm:$0xff]   ;;  %v1197_v24 = vld [vmem:[%s1421_s3 + $0x90] sm:$0xff]   ;;  %v1198_v25 = vld [vmem:[%s1421_s3 + $0x88] sm:$0xff]   ;;  %s412_s6 = scalar_lea.vmem %s1423_s5, %s1053_s27 }
  0x14   : > { %1112 = vmatprep.subr.bf16.mxu1 %v1225_v1  ;;  %v1195_v22 = vld [vmem:[%s1421_s3 + $0xa0] sm:$0xff]  }
  0x15   : > { %v1199_v26 = vld [vmem:[%s1421_s3 + $0x80] sm:$0xff]  }
  0x16   : > { %1093 = vmatpush3.bf16.msra.mxu0 %v1178_v5  ;;  %v1200_v27 = vld [vmem:[%s1353_s24] sm:$0xff]  }
  0x17   : > { %1113 = vmatpush3.bf16.msra.mxu1 %v1179_v6  ;;  %1094 = vmatprep.subr.bf16.mxu0 %v1225_v1  ;;  %v1044_v38 = vld [vmem:[%s1422_s4] ss:$0 sm:$0xff]  ;;  %v1045_v43 = vld [vmem:[%s1422_s4 + $0x1] ss:$0 sm:$0xff] }
  0x18   : > { %1114 = vmatprep.subr.bf16.mxu1 %v1225_v1 }
  0x1a   : > { %1095 = vmatpush3.bf16.msra.mxu0 %v1180_v7 }
  0x1b   : > { %1115 = vmatpush3.bf16.msra.mxu1 %v1181_v8  ;;  %1096 = vmatprep.subr.bf16.mxu0 %v1225_v1 }
  0x1c   : > { %1116 = vmatprep.subr.bf16.mxu1 %v1225_v1 }
  0x1e   : > { %1097 = vmatpush3.bf16.msra.mxu0 %v1182_v9 }
  0x1f   : > { %1117 = vmatpush3.bf16.msra.mxu1 %v1183_v10  ;;  %1098 = vmatprep.subr.bf16.mxu0 %v1225_v1 }
  0x20   : > { %1118 = vmatprep.subr.bf16.mxu1 %v1225_v1 }
  0x22   : > { %1099 = vmatpush3.bf16.msra.mxu0 %v1184_v11 }
  0x23   : > { %1119 = vmatpush3.bf16.msra.mxu1 %v1185_v12  ;;  %1100 = vmatprep.subr.bf16.mxu0 %v1225_v1 }
  0x24   : > { %1120 = vmatprep.subr.bf16.mxu1 %v1225_v1 }
  0x26   : > { %1101 = vmatpush3.bf16.msra.mxu0 %v1186_v13 }
  0x27   : > { %1121 = vmatpush3.bf16.msra.mxu1 %v1187_v14  ;;  %1102 = vmatprep.subr.bf16.mxu0 %v1225_v1 }
  0x28   : > { %1122 = vmatprep.subr.bf16.mxu1 %v1225_v1 }
  0x2a   : > { %1103 = vmatpush3.bf16.msra.mxu0 %v1188_v15 }
  0x2b   : > { %1123 = vmatpush3.bf16.msra.mxu1 %v1189_v16  ;;  %1128 = vmatprep.subr.bf16.mxu0 %v1225_v1 }
  0x2d   : > { %1105 = vmatmul.mubr.bf16.vlgmr.msra.gmra.mxu0 %v1190_v17 }
  0x2e   : > { %1125 = vmatmul.mubr.bf16.vlgmr.msra.gmra.mxu1 %v1191_v18  ;;  %1129 = vmatpush3.bf16.msra.mxu0 %v1192_v19 }
  0x2f   : > { %1130 = vmatprep.subr.bf16.mxu0 %v1225_v1  ;;  %1144 = vmatprep.mubr.msk.bf16.mxu0 %vm1226_vm0, %v1225_v1 }
  0x32   : > { %1131 = vmatpush3.bf16.msra.mxu0 %v1193_v20 }
  0x33   : > { %1132 = vmatprep.subr.bf16.mxu0 %v1225_v1 }
  0x36   : > { %1133 = vmatpush3.bf16.msra.mxu0 %v1194_v21 }
  0x37   : > { %1134 = vmatprep.subr.bf16.mxu0 %v1225_v1 }
  0x3a   : > { %1135 = vmatpush3.bf16.msra.mxu0 %v1195_v22 }
  0x3b   : > { %1136 = vmatprep.subr.bf16.mxu0 %v1225_v1 }
  0x3e   : > { %1137 = vmatpush3.bf16.msra.mxu0 %v1196_v23 }
  0x3f   : > { %1138 = vmatprep.subr.bf16.mxu0 %v1225_v1 }
  0x42   : > { %1139 = vmatpush3.bf16.msra.mxu0 %v1197_v24 }
  0x43   : > { %1140 = vmatprep.subr.bf16.mxu0 %v1225_v1 }
  0x46   : > { %1141 = vmatpush3.bf16.msra.mxu0 %v1198_v25 }
  0x47   : > { %1142 = vmatprep.subr.bf16.mxu0 %v1225_v1 }
  0x4a   : > { %1143 = vmatpush3.bf16.msra.mxu0 %v1199_v26 }
  0x4d   : > { %1145 = vmatmul.mubr.bf16.vlgmr.msra.gmra.mxu0 %v1200_v27 }
  0xed   : > { %v539_v28 = vpop.f32.mrf.mxu0 }
  0xee   : > { %v634_v29 = vpop.f32.mrf.mxu1 }
  0xef   : > { %v1106_v30 = vpop.f32.mrf.mxu0  ;;  %v635_v36 = vadd.f32 %v634_v29, %v539_v28 }
  0xf0   : > { %v1126_v31 = vpop.f32.mrf.mxu1 }
  0xf1   : > { %v542_v32 = vpop.f32.mrf.mxu0 }
  0xf2   : > { %v637_v33 = vpop.f32.mrf.mxu1 }
  0xf3   : > { %v1107_v34 = vpop.f32.mrf.mxu0  ;;  %v638_v41 = vadd.f32 %v637_v33, %v542_v32 }
  0xf4   : > { %v1127_v35 = vpop.f32.mrf.mxu1 }
 0x10d   : > { %v748_v37 = vpop.f32.mrf.mxu0 }
 0x10e   : > { %v755_v39 = vadd.f32 %v748_v37, %v635_v36 }
 0x10f   : > { %v1146_v40 = vpop.f32.mrf.mxu0 }
 0x110   : > { %v762_v42 = vmul.f32 %v1044_v38, %v755_v39 }
 0x111   : > { %v751_v44 = vpop.f32.mrf.mxu0 }
 0x112   : > { %v756_v45 = vadd.f32 %v751_v44, %v638_v41  ;;  %v769_v47 = vadd.f32 %v1045_v43, %v762_v42 }
 0x113   : > { %v1147_v46 = vpop.f32.mrf.mxu0 }
 0x114   : > { %v763_v48 = vmul.f32 %v1044_v38, %v756_v45  ;;  %v771_v50 = vmax.f32 %v769_v47, 0.0 }
 0x116   : > { %v770_v49 = vadd.f32 %v1045_v43, %v763_v48 }
 0x118   : > { %v772_v51 = vmax.f32 %v770_v49, 0.0 }
 0x11a   : > { %v1059_v52 = vpack.c.bf16 %v772_v51, %v771_v50 }
 0x11c   : > { %1060 = vst [vmem:[%s412_s6] sm:$0xff] %v1059_v52  }
 0x11d PF: > { %s15_s20 = sadd.s32 1, %s1223_s20   ;;  %s1424_s18 = smov %s1219_s19 }
 0x11e   : > { %p12_p8 = scmp.ge.s32.totalorder %s15_s20, 6   ;;  %s1425_s19 = smov %s1427_s21 }
 0x120   :  { %14 = sbr.rel (!%p12_p8) target bundleno = 2 (0x2), region = 84 }

// kernel: forward.22
= control target key start
LH: loop header
LB: loop body
LE: loop exit
PB: predicated region body
PF: predicated region fallthrough
CT: control target
= control target key end

     0   :  { %s1227_s18 = smov 0   ;;  %s1229_s19 = smov 0   ;;  %s1385_s0 = inlined_call_operand.vmem [shape: bf16[1,6,16,128], index: 0, kind: input, shape index: {}, may-alias: {0,1,2}]   ;;  %s1386_s1 = inlined_call_operand.vmem [shape: bf16[1,6,16,128], index: 1, kind: input, shape index: {}, may-alias: {0,1,2}]   ;;  %s1387_s2 = inlined_call_operand.vmem [shape: bf16[1,6,16,128], index: 2, kind: input, shape index: {}, may-alias: {0,1,2}]   ;;  %s1388_s3 = inlined_call_operand.vmem [shape: bf16[3,128,128], index: 3, kind: input, shape index: {}]   ;;  %s1389_s4 = inlined_call_operand.vmem [shape: f32[2,128], index: 4, kind: input, shape index: {}]   ;;  %s1390_s5 = inlined_call_operand.vmem [shape: bf16[1,4,16,128], index: 5, kind: output, shape index: {}]  }
   0x1   :  { %s1231_s20 = smov 0  }
   0x2 LB: > { %s27_s21 = sadd.s32 1, %s1189_s19  ;;  %p946_p0 = scmp.ge.s32.totalorder %s1193_s20, 1  ;;  %s1193_s20 = sphi %s1231_s20, %s15_s20   ;;  %s1189_s19 = sphi %s1229_s19, %s1392_s19   ;;  %s1185_s18 = sphi %s1227_s18, %s1391_s18  }
   0x3   : > { %p28_p1 = scmp.ge.s32.totalorder %s27_s21, 4  ;;  %p274_p2 = scmp.lt.s32.totalorder %s1193_s20, 5 }
   0x5   : > { %s1394_s21 = smov (%p28_p1, %s27_s21), 0  ;;  %p275_p3 = pnand %p946_p0, %p274_p2 }
   0x6   : > { %s350_s28 = sadd.s32 (!%p275_p3), 1, %s1185_s18  ;;  %p343_p5 = scmp.lt.s32.totalorder (!%p275_p3), %s1185_s18, 5 }
   0x7   : > { %278 = sbr.rel (%p275_p3) target bundleno = 285 (0x11d), region = 40  ;;  %p353_p4 = scmp.lt.s32.totalorder (!%p275_p3), %s350_s28, 5 }
   0x8   : > { %s361_s15 = sadd.s32 (!%p275_p3), 2, %s1185_s18  ;;  %p382_p7 = scmp.lt.s32.totalorder (!%p275_p3), %s1185_s18, 3 }
   0x9   : > { %p364_p6 = scmp.lt.s32.totalorder (!%p275_p3), %s361_s15, 5 }
   0xc   : > { %v1144_v0 = vld [vmem:[%s1388_s3 + $0x78] sm:$0xff]   ;;  %v1195_v1 = vmov 0.0   ;;  %v1146_v3 = vld [vmem:[%s1388_s3 + $0x70] sm:$0xff]   ;;  %vm1196_vm0 = vmmov 0   ;;  %v1148_v5 = vld [vmem:[%s1388_s3 + $0x68] sm:$0xff]   ;;  %s1396_s28 = smov (!%p353_p4, %s350_s28), 5 }
   0xd   : > { %1058 = vmatprep.subr.bf16.mxu0 %v1195_v1  ;;  %1078 = vmatprep.subr.bf16.mxu1 %v1195_v1  ;;  %v1145_v2 = vld [vmem:[%s1388_s3 + $0x38] sm:$0xff]   ;;  %v1147_v4 = vld [vmem:[%s1388_s3 + $0x30] sm:$0xff]   ;;  %v1149_v6 = vld [vmem:[%s1388_s3 + $0x28] sm:$0xff]   ;;  %s344_s10 = scalar_select %p343_p5, %s1185_s18, 5 }
   0xe   : > { %1059 = vmatpush3.bf16.msra.mxu0 %v1144_v0  ;;  %1074 = vmatprep.mubr.msk.bf16.mxu0 %vm1196_vm0, %v1195_v1  ;;  %v1150_v7 = vld [vmem:[%s1388_s3 + $0x60] sm:$0xff]   ;;  %s1021_s16 = sshll.u32 %s1396_s28, 3  ;;  %v1152_v9 = vld [vmem:[%s1388_s3 + $0x58] sm:$0xff]   ;;  %v1154_v11 = vld [vmem:[%s1388_s3 + $0x50] sm:$0xff]   ;;  %s1398_s15 = smov (!%p364_p6, %s361_s15), 5 }
   0xf   : > { %1079 = vmatpush3.bf16.msra.mxu1 %v1145_v2  ;;  %1060 = vmatprep.subr.bf16.mxu0 %v1195_v1  ;;  %v1151_v8 = vld [vmem:[%s1388_s3 + $0x20] sm:$0xff]   ;;  %s1020_s17 = sshll.u32 %s344_s10, 3  ;;  %v1153_v10 = vld [vmem:[%s1388_s3 + $0x18] sm:$0xff]   ;;  %s359_s29 = scalar_lea.vmem %s1386_s1, %s1021_s16  ;;  %v1155_v12 = vld [vmem:[%s1388_s3 + $0x10] sm:$0xff]  }
  0x10   : > { %1080 = vmatprep.subr.bf16.mxu1 %v1195_v1  ;;  %1094 = vmatprep.mubr.msk.bf16.mxu1 %vm1196_vm0, %v1195_v1  ;;  %s349_s6 = scalar_lea.vmem %s1385_s0, %s1020_s17  ;;  %v1156_v13 = vld [vmem:[%s1388_s3 + $0x48] sm:$0xff]   ;;  %s1022_s13 = sshll.u32 %s1398_s15, 3  ;;  %v1158_v15 = vld [vmem:[%s1388_s3 + $0x40] sm:$0xff]   ;;  %v1162_v19 = vld [vmem:[%s1388_s3 + $0xb8] sm:$0xff]  }
  0x11   : > { %v1157_v14 = vld [vmem:[%s1388_s3 + $0x8] sm:$0xff]   ;;  %s1320_s23 = scalar_lea.vmem %s1387_s2, %s1022_s13  ;;  %v1159_v16 = vld [vmem:[%s1388_s3] sm:$0xff]   ;;  %v1163_v20 = vld [vmem:[%s1388_s3 + $0xb0] sm:$0xff]   ;;  %s1400_s18 = smov (!%p382_p7, %s1185_s18), 3 }
  0x12   : > { %1061 = vmatpush3.bf16.msra.mxu0 %v1146_v3  ;;  %v1160_v17 = vld [vmem:[%s359_s29] sm:$0xff]   ;;  %v1164_v21 = vld [vmem:[%s1388_s3 + $0xa8] sm:$0xff]   ;;  %v1166_v23 = vld [vmem:[%s1388_s3 + $0x98] sm:$0xff]   ;;  %s1023_s26 = sshll.u32 %s1400_s18, 3 }
  0x13   : > { %1081 = vmatpush3.bf16.msra.mxu1 %v1147_v4  ;;  %1062 = vmatprep.subr.bf16.mxu0 %v1195_v1  ;;  %v1161_v18 = vld [vmem:[%s349_s6] sm:$0xff]   ;;  %v1167_v24 = vld [vmem:[%s1388_s3 + $0x90] sm:$0xff]   ;;  %v1168_v25 = vld [vmem:[%s1388_s3 + $0x88] sm:$0xff]   ;;  %s391_s30 = scalar_lea.vmem %s1390_s5, %s1023_s26 }
  0x14   : > { %1082 = vmatprep.subr.bf16.mxu1 %v1195_v1  ;;  %v1165_v22 = vld [vmem:[%s1388_s3 + $0xa0] sm:$0xff]  }
  0x15   : > { %v1169_v26 = vld [vmem:[%s1388_s3 + $0x80] sm:$0xff]  }
  0x16   : > { %1063 = vmatpush3.bf16.msra.mxu0 %v1148_v5  ;;  %v1170_v27 = vld [vmem:[%s1320_s23] sm:$0xff]  }
  0x17   : > { %1083 = vmatpush3.bf16.msra.mxu1 %v1149_v6  ;;  %1064 = vmatprep.subr.bf16.mxu0 %v1195_v1  ;;  %v1014_v38 = vld [vmem:[%s1389_s4] ss:$0 sm:$0xff]  ;;  %v1015_v43 = vld [vmem:[%s1389_s4 + $0x1] ss:$0 sm:$0xff] }
  0x18   : > { %1084 = vmatprep.subr.bf16.mxu1 %v1195_v1 }
  0x1a   : > { %1065 = vmatpush3.bf16.msra.mxu0 %v1150_v7 }
  0x1b   : > { %1085 = vmatpush3.bf16.msra.mxu1 %v1151_v8  ;;  %1066 = vmatprep.subr.bf16.mxu0 %v1195_v1 }
  0x1c   : > { %1086 = vmatprep.subr.bf16.mxu1 %v1195_v1 }
  0x1e   : > { %1067 = vmatpush3.bf16.msra.mxu0 %v1152_v9 }
  0x1f   : > { %1087 = vmatpush3.bf16.msra.mxu1 %v1153_v10  ;;  %1068 = vmatprep.subr.bf16.mxu0 %v1195_v1 }
  0x20   : > { %1088 = vmatprep.subr.bf16.mxu1 %v1195_v1 }
  0x22   : > { %1069 = vmatpush3.bf16.msra.mxu0 %v1154_v11 }
  0x23   : > { %1089 = vmatpush3.bf16.msra.mxu1 %v1155_v12  ;;  %1070 = vmatprep.subr.bf16.mxu0 %v1195_v1 }
  0x24   : > { %1090 = vmatprep.subr.bf16.mxu1 %v1195_v1 }
  0x26   : > { %1071 = vmatpush3.bf16.msra.mxu0 %v1156_v13 }
  0x27   : > { %1091 = vmatpush3.bf16.msra.mxu1 %v1157_v14  ;;  %1072 = vmatprep.subr.bf16.mxu0 %v1195_v1 }
  0x28   : > { %1092 = vmatprep.subr.bf16.mxu1 %v1195_v1 }
  0x2a   : > { %1073 = vmatpush3.bf16.msra.mxu0 %v1158_v15 }
  0x2b   : > { %1093 = vmatpush3.bf16.msra.mxu1 %v1159_v16  ;;  %1098 = vmatprep.subr.bf16.mxu0 %v1195_v1 }
  0x2d   : > { %1075 = vmatmul.mubr.bf16.vlgmr.msra.gmra.mxu0 %v1160_v17 }
  0x2e   : > { %1095 = vmatmul.mubr.bf16.vlgmr.msra.gmra.mxu1 %v1161_v18  ;;  %1099 = vmatpush3.bf16.msra.mxu0 %v1162_v19 }
  0x2f   : > { %1100 = vmatprep.subr.bf16.mxu0 %v1195_v1  ;;  %1114 = vmatprep.mubr.msk.bf16.mxu0 %vm1196_vm0, %v1195_v1 }
  0x32   : > { %1101 = vmatpush3.bf16.msra.mxu0 %v1163_v20 }
  0x33   : > { %1102 = vmatprep.subr.bf16.mxu0 %v1195_v1 }
  0x36   : > { %1103 = vmatpush3.bf16.msra.mxu0 %v1164_v21 }
  0x37   : > { %1104 = vmatprep.subr.bf16.mxu0 %v1195_v1 }
  0x3a   : > { %1105 = vmatpush3.bf16.msra.mxu0 %v1165_v22 }
  0x3b   : > { %1106 = vmatprep.subr.bf16.mxu0 %v1195_v1 }
  0x3e   : > { %1107 = vmatpush3.bf16.msra.mxu0 %v1166_v23 }
  0x3f   : > { %1108 = vmatprep.subr.bf16.mxu0 %v1195_v1 }
  0x42   : > { %1109 = vmatpush3.bf16.msra.mxu0 %v1167_v24 }
  0x43   : > { %1110 = vmatprep.subr.bf16.mxu0 %v1195_v1 }
  0x46   : > { %1111 = vmatpush3.bf16.msra.mxu0 %v1168_v25 }
  0x47   : > { %1112 = vmatprep.subr.bf16.mxu0 %v1195_v1 }
  0x4a   : > { %1113 = vmatpush3.bf16.msra.mxu0 %v1169_v26 }
  0x4d   : > { %1115 = vmatmul.mubr.bf16.vlgmr.msra.gmra.mxu0 %v1170_v27 }
  0xed   : > { %v518_v28 = vpop.f32.mrf.mxu0 }
  0xee   : > { %v613_v29 = vpop.f32.mrf.mxu1 }
  0xef   : > { %v1076_v30 = vpop.f32.mrf.mxu0  ;;  %v614_v36 = vadd.f32 %v613_v29, %v518_v28 }
  0xf0   : > { %v1096_v31 = vpop.f32.mrf.mxu1 }
  0xf1   : > { %v521_v32 = vpop.f32.mrf.mxu0 }
  0xf2   : > { %v616_v33 = vpop.f32.mrf.mxu1 }
  0xf3   : > { %v1077_v34 = vpop.f32.mrf.mxu0  ;;  %v617_v41 = vadd.f32 %v616_v33, %v521_v32 }
  0xf4   : > { %v1097_v35 = vpop.f32.mrf.mxu1 }
 0x10d   : > { %v727_v37 = vpop.f32.mrf.mxu0 }
 0x10e   : > { %v734_v39 = vadd.f32 %v727_v37, %v614_v36 }
 0x10f   : > { %v1116_v40 = vpop.f32.mrf.mxu0 }
 0x110   : > { %v741_v42 = vmul.f32 %v1014_v38, %v734_v39 }
 0x111   : > { %v730_v44 = vpop.f32.mrf.mxu0 }
 0x112   : > { %v735_v45 = vadd.f32 %v730_v44, %v617_v41  ;;  %v748_v47 = vadd.f32 %v1015_v43, %v741_v42 }
 0x113   : > { %v1117_v46 = vpop.f32.mrf.mxu0 }
 0x114   : > { %v742_v48 = vmul.f32 %v1014_v38, %v735_v45  ;;  %v750_v50 = vmax.f32 %v748_v47, 0.0 }
 0x116   : > { %v749_v49 = vadd.f32 %v1015_v43, %v742_v48 }
 0x118   : > { %v751_v51 = vmax.f32 %v749_v49, 0.0 }
 0x11a   : > { %v1029_v52 = vpack.c.bf16 %v751_v51, %v750_v50 }
 0x11c   : > { %1030 = vst [vmem:[%s391_s30] sm:$0xff] %v1029_v52  }
 0x11d PF: > { %s15_s20 = sadd.s32 1, %s1193_s20   ;;  %s1391_s18 = smov %s1189_s19 }
 0x11e   : > { %p12_p8 = scmp.ge.s32.totalorder %s15_s20, 6   ;;  %s1392_s19 = smov %s1394_s21 }
 0x120   :  { %14 = sbr.rel (!%p12_p8) target bundleno = 2 (0x2), region = 84 }

// kernel: forward.24
= control target key start
LH: loop header
LB: loop body
LE: loop exit
PB: predicated region body
PF: predicated region fallthrough
CT: control target
= control target key end

     0   :  { %s1257_s18 = smov 0   ;;  %s1259_s19 = smov 0   ;;  %s1418_s0 = inlined_call_operand.vmem [shape: bf16[1,6,16,128], index: 0, kind: input, shape index: {}, may-alias: {0,1,2}]   ;;  %s1419_s1 = inlined_call_operand.vmem [shape: bf16[1,6,16,128], index: 1, kind: input, shape index: {}, may-alias: {0,1,2}]   ;;  %s1420_s2 = inlined_call_operand.vmem [shape: bf16[1,6,16,128], index: 2, kind: input, shape index: {}, may-alias: {0,1,2}]   ;;  %s1421_s3 = inlined_call_operand.vmem [shape: bf16[3,128,128], index: 3, kind: input, shape index: {}]   ;;  %s1422_s4 = inlined_call_operand.vmem [shape: f32[2,128], index: 4, kind: input, shape index: {}]   ;;  %s1423_s5 = inlined_call_operand.vmem [shape: bf16[1,2,16,128], index: 5, kind: output, shape index: {}]  }
   0x1   :  { %s1261_s20 = smov 0  }
   0x2 LB: > { %s27_s21 = sadd.s32 1, %s1219_s19  ;;  %p973_p0 = scmp.ge.s32.totalorder %s1223_s20, 1  ;;  %s1223_s20 = sphi %s1261_s20, %s15_s20   ;;  %s1219_s19 = sphi %s1259_s19, %s1425_s19   ;;  %s1215_s18 = sphi %s1257_s18, %s1424_s18  }
   0x3   : > { %p28_p1 = scmp.ge.s32.totalorder %s27_s21, 2  ;;  %p286_p2 = scmp.lt.s32.totalorder %s1223_s20, 3 }
   0x5   : > { %s1427_s21 = smov (%p28_p1, %s27_s21), 0  ;;  %p287_p3 = pnand %p973_p0, %p286_p2 }
   0x6   : > { %s1291_s28 = sshll.u32 (!%p287_p3), %s1215_s18, 1  ;;  %p403_p7 = scmp.lt.s32.totalorder (!%p287_p3), %s1215_s18, 1 }
   0x7   : > { %290 = sbr.rel (%p287_p3) target bundleno = 285 (0x11d), region = 40  ;;  %s368_s6 = sadd.s32 (!%p287_p3), 1, %s1291_s28 }
   0x8   : > { %p371_p4 = scmp.lt.s32.totalorder (!%p287_p3), %s368_s6, 5  ;;  %p359_p5 = scmp.lt.s32.totalorder (!%p287_p3), %s1291_s28, 5 }
   0x9   : > { %s381_s16 = sadd.s32 (!%p287_p3), 2, %s1291_s28 }
   0xa   : > { %p384_p6 = scmp.lt.s32.totalorder (!%p287_p3), %s381_s16, 5 }
   0xc   : > { %v1174_v0 = vld [vmem:[%s1421_s3 + $0x78] sm:$0xff]   ;;  %v1225_v1 = vmov 0.0   ;;  %v1176_v3 = vld [vmem:[%s1421_s3 + $0x70] sm:$0xff]   ;;  %vm1226_vm0 = vmmov 0   ;;  %v1178_v5 = vld [vmem:[%s1421_s3 + $0x68] sm:$0xff]   ;;  %s1429_s6 = smov (!%p371_p4, %s368_s6), 5 }
   0xd   : > { %1088 = vmatprep.subr.bf16.mxu0 %v1225_v1  ;;  %1108 = vmatprep.subr.bf16.mxu1 %v1225_v1  ;;  %v1175_v2 = vld [vmem:[%s1421_s3 + $0x38] sm:$0xff]   ;;  %v1177_v4 = vld [vmem:[%s1421_s3 + $0x30] sm:$0xff]   ;;  %v1179_v6 = vld [vmem:[%s1421_s3 + $0x28] sm:$0xff]   ;;  %s360_s11 = scalar_select %p359_p5, %s1291_s28, 5 }
   0xe   : > { %1089 = vmatpush3.bf16.msra.mxu0 %v1174_v0  ;;  %1104 = vmatprep.mubr.msk.bf16.mxu0 %vm1226_vm0, %v1225_v1  ;;  %v1180_v7 = vld [vmem:[%s1421_s3 + $0x60] sm:$0xff]   ;;  %s1051_s17 = sshll.u32 %s1429_s6, 3  ;;  %v1182_v9 = vld [vmem:[%s1421_s3 + $0x58] sm:$0xff]   ;;  %v1184_v11 = vld [vmem:[%s1421_s3 + $0x50] sm:$0xff]   ;;  %s1431_s16 = smov (!%p384_p6, %s381_s16), 5 }
   0xf   : > { %1109 = vmatpush3.bf16.msra.mxu1 %v1175_v2  ;;  %1090 = vmatprep.subr.bf16.mxu0 %v1225_v1  ;;  %v1181_v8 = vld [vmem:[%s1421_s3 + $0x20] sm:$0xff]   ;;  %s1050_s22 = sshll.u32 %s360_s11, 3  ;;  %v1183_v10 = vld [vmem:[%s1421_s3 + $0x18] sm:$0xff]   ;;  %s377_s28 = scalar_lea.vmem %s1419_s1, %s1051_s17  ;;  %v1185_v12 = vld [vmem:[%s1421_s3 + $0x10] sm:$0xff]  }
  0x10   : > { %1110 = vmatprep.subr.bf16.mxu1 %v1225_v1  ;;  %1124 = vmatprep.mubr.msk.bf16.mxu1 %vm1226_vm0, %v1225_v1  ;;  %s365_s7 = scalar_lea.vmem %s1418_s0, %s1050_s22  ;;  %v1186_v13 = vld [vmem:[%s1421_s3 + $0x48] sm:$0xff]   ;;  %s1052_s14 = sshll.u32 %s1431_s16, 3  ;;  %v1188_v15 = vld [vmem:[%s1421_s3 + $0x40] sm:$0xff]   ;;  %v1192_v19 = vld [vmem:[%s1421_s3 + $0xb8] sm:$0xff]  }
  0x11   : > { %v1187_v14 = vld [vmem:[%s1421_s3 + $0x8] sm:$0xff]   ;;  %s1353_s24 = scalar_lea.vmem %s1420_s2, %s1052_s14  ;;  %v1189_v16 = vld [vmem:[%s1421_s3] sm:$0xff]   ;;  %v1193_v20 = vld [vmem:[%s1421_s3 + $0xb0] sm:$0xff]   ;;  %s1433_s18 = smov (!%p403_p7, %s1215_s18), 1 }
  0x12   : > { %1091 = vmatpush3.bf16.msra.mxu0 %v1176_v3  ;;  %v1190_v17 = vld [vmem:[%s377_s28] sm:$0xff]   ;;  %v1194_v21 = vld [vmem:[%s1421_s3 + $0xa8] sm:$0xff]   ;;  %v1196_v23 = vld [vmem:[%s1421_s3 + $0x98] sm:$0xff]   ;;  %s1053_s27 = sshll.u32 %s1433_s18, 3 }
  0x13   : > { %1111 = vmatpush3.bf16.msra.mxu1 %v1177_v4  ;;  %1092 = vmatprep.subr.bf16.mxu0 %v1225_v1  ;;  %v1191_v18 = vld [vmem:[%s365_s7] sm:$0xff]   ;;  %v1197_v24 = vld [vmem:[%s1421_s3 + $0x90] sm:$0xff]   ;;  %v1198_v25 = vld [vmem:[%s1421_s3 + $0x88] sm:$0xff]   ;;  %s412_s6 = scalar_lea.vmem %s1423_s5, %s1053_s27 }
  0x14   : > { %1112 = vmatprep.subr.bf16.mxu1 %v1225_v1  ;;  %v1195_v22 = vld [vmem:[%s1421_s3 + $0xa0] sm:$0xff]  }
  0x15   : > { %v1199_v26 = vld [vmem:[%s1421_s3 + $0x80] sm:$0xff]  }
  0x16   : > { %1093 = vmatpush3.bf16.msra.mxu0 %v1178_v5  ;;  %v1200_v27 = vld [vmem:[%s1353_s24] sm:$0xff]  }
  0x17   : > { %1113 = vmatpush3.bf16.msra.mxu1 %v1179_v6  ;;  %1094 = vmatprep.subr.bf16.mxu0 %v1225_v1  ;;  %v1044_v38 = vld [vmem:[%s1422_s4] ss:$0 sm:$0xff]  ;;  %v1045_v43 = vld [vmem:[%s1422_s4 + $0x1] ss:$0 sm:$0xff] }
  0x18   : > { %1114 = vmatprep.subr.bf16.mxu1 %v1225_v1 }
  0x1a   : > { %1095 = vmatpush3.bf16.msra.mxu0 %v1180_v7 }
  0x1b   : > { %1115 = vmatpush3.bf16.msra.mxu1 %v1181_v8  ;;  %1096 = vmatprep.subr.bf16.mxu0 %v1225_v1 }
  0x1c   : > { %1116 = vmatprep.subr.bf16.mxu1 %v1225_v1 }
  0x1e   : > { %1097 = vmatpush3.bf16.msra.mxu0 %v1182_v9 }
  0x1f   : > { %1117 = vmatpush3.bf16.msra.mxu1 %v1183_v10  ;;  %1098 = vmatprep.subr.bf16.mxu0 %v1225_v1 }
  0x20   : > { %1118 = vmatprep.subr.bf16.mxu1 %v1225_v1 }
  0x22   : > { %1099 = vmatpush3.bf16.msra.mxu0 %v1184_v11 }
  0x23   : > { %1119 = vmatpush3.bf16.msra.mxu1 %v1185_v12  ;;  %1100 = vmatprep.subr.bf16.mxu0 %v1225_v1 }
  0x24   : > { %1120 = vmatprep.subr.bf16.mxu1 %v1225_v1 }
  0x26   : > { %1101 = vmatpush3.bf16.msra.mxu0 %v1186_v13 }
  0x27   : > { %1121 = vmatpush3.bf16.msra.mxu1 %v1187_v14  ;;  %1102 = vmatprep.subr.bf16.mxu0 %v1225_v1 }
  0x28   : > { %1122 = vmatprep.subr.bf16.mxu1 %v1225_v1 }
  0x2a   : > { %1103 = vmatpush3.bf16.msra.mxu0 %v1188_v15 }
  0x2b   : > { %1123 = vmatpush3.bf16.msra.mxu1 %v1189_v16  ;;  %1128 = vmatprep.subr.bf16.mxu0 %v1225_v1 }
  0x2d   : > { %1105 = vmatmul.mubr.bf16.vlgmr.msra.gmra.mxu0 %v1190_v17 }
  0x2e   : > { %1125 = vmatmul.mubr.bf16.vlgmr.msra.gmra.mxu1 %v1191_v18  ;;  %1129 = vmatpush3.bf16.msra.mxu0 %v1192_v19 }
  0x2f   : > { %1130 = vmatprep.subr.bf16.mxu0 %v1225_v1  ;;  %1144 = vmatprep.mubr.msk.bf16.mxu0 %vm1226_vm0, %v1225_v1 }
  0x32   : > { %1131 = vmatpush3.bf16.msra.mxu0 %v1193_v20 }
  0x33   : > { %1132 = vmatprep.subr.bf16.mxu0 %v1225_v1 }
  0x36   : > { %1133 = vmatpush3.bf16.msra.mxu0 %v1194_v21 }
  0x37   : > { %1134 = vmatprep.subr.bf16.mxu0 %v1225_v1 }
  0x3a   : > { %1135 = vmatpush3.bf16.msra.mxu0 %v1195_v22 }
  0x3b   : > { %1136 = vmatprep.subr.bf16.mxu0 %v1225_v1 }
  0x3e   : > { %1137 = vmatpush3.bf16.msra.mxu0 %v1196_v23 }
  0x3f   : > { %1138 = vmatprep.subr.bf16.mxu0 %v1225_v1 }
  0x42   : > { %1139 = vmatpush3.bf16.msra.mxu0 %v1197_v24 }
  0x43   : > { %1140 = vmatprep.subr.bf16.mxu0 %v1225_v1 }
  0x46   : > { %1141 = vmatpush3.bf16.msra.mxu0 %v1198_v25 }
  0x47   : > { %1142 = vmatprep.subr.bf16.mxu0 %v1225_v1 }
  0x4a   : > { %1143 = vmatpush3.bf16.msra.mxu0 %v1199_v26 }
  0x4d   : > { %1145 = vmatmul.mubr.bf16.vlgmr.msra.gmra.mxu0 %v1200_v27 }
  0xed   : > { %v539_v28 = vpop.f32.mrf.mxu0 }
  0xee   : > { %v634_v29 = vpop.f32.mrf.mxu1 }
  0xef   : > { %v1106_v30 = vpop.f32.mrf.mxu0  ;;  %v635_v36 = vadd.f32 %v634_v29, %v539_v28 }
  0xf0   : > { %v1126_v31 = vpop.f32.mrf.mxu1 }
  0xf1   : > { %v542_v32 = vpop.f32.mrf.mxu0 }
  0xf2   : > { %v637_v33 = vpop.f32.mrf.mxu1 }
  0xf3   : > { %v1107_v34 = vpop.f32.mrf.mxu0  ;;  %v638_v41 = vadd.f32 %v637_v33, %v542_v32 }
  0xf4   : > { %v1127_v35 = vpop.f32.mrf.mxu1 }
 0x10d   : > { %v748_v37 = vpop.f32.mrf.mxu0 }
 0x10e   : > { %v755_v39 = vadd.f32 %v748_v37, %v635_v36 }
 0x10f   : > { %v1146_v40 = vpop.f32.mrf.mxu0 }
 0x110   : > { %v762_v42 = vmul.f32 %v1044_v38, %v755_v39 }
 0x111   : > { %v751_v44 = vpop.f32.mrf.mxu0 }
 0x112   : > { %v756_v45 = vadd.f32 %v751_v44, %v638_v41  ;;  %v769_v47 = vadd.f32 %v1045_v43, %v762_v42 }
 0x113   : > { %v1147_v46 = vpop.f32.mrf.mxu0 }
 0x114   : > { %v763_v48 = vmul.f32 %v1044_v38, %v756_v45  ;;  %v771_v50 = vmax.f32 %v769_v47, 0.0 }
 0x116   : > { %v770_v49 = vadd.f32 %v1045_v43, %v763_v48 }
 0x118   : > { %v772_v51 = vmax.f32 %v770_v49, 0.0 }
 0x11a   : > { %v1059_v52 = vpack.c.bf16 %v772_v51, %v771_v50 }
 0x11c   : > { %1060 = vst [vmem:[%s412_s6] sm:$0xff] %v1059_v52  }
 0x11d PF: > { %s15_s20 = sadd.s32 1, %s1223_s20   ;;  %s1424_s18 = smov %s1219_s19 }
 0x11e   : > { %p12_p8 = scmp.ge.s32.totalorder %s15_s20, 4   ;;  %s1425_s19 = smov %s1427_s21 }
 0x120   :  { %14 = sbr.rel (!%p12_p8) target bundleno = 2 (0x2), region = 84 }

// kernel: forward.32
= control target key start
LH: loop header
LB: loop body
LE: loop exit
PB: predicated region body
PF: predicated region fallthrough
CT: control target
= control target key end

     0   :  { %s936_s12 = smov 0   ;;  %s938_s13 = smov 0   ;;  %s1109_s0 = inlined_call_operand.vmem [shape: bf16[1,4,16,128], index: 0, kind: input, shape index: {}]   ;;  %s1110_s1 = inlined_call_operand.vmem [shape: bf16[1,128,512], index: 1, kind: input, shape index: {}]   ;;  %s1111_s2 = inlined_call_operand.vmem [shape: f32[2,512], index: 2, kind: input, shape index: {}]   ;;  %s1112_s3 = inlined_call_operand.vmem [shape: bf16[1,4,16,512], index: 3, kind: output, shape index: {}]  }
   0x1   :  { %s940_s14 = smov 0   ;;  %s942_s15 = smov 0  }
   0x2   :  { %s944_s16 = smov 0   ;;  %s946_s17 = smov 0  }
   0x3   :  { %s948_s18 = smov 0   ;;  %s950_s19 = smov 0  }
   0x4   :  { %s952_s20 = smov 0  }
   0x5 LB: > { %s25_s21 = sadd.s32 1, %s905_s18  ;;  %s32_s22 = sadd.s32 1, %s909_s19  ;;  %s913_s20 = sphi %s952_s20, %s13_s20   ;;  %s909_s19 = sphi %s950_s19, %s1122_s19   ;;  %s905_s18 = sphi %s948_s18, %s1121_s18   ;;  %s901_s17 = sphi %s946_s17, %s1120_s17   ;;  %s897_s16 = sphi %s944_s16, %s1119_s16   ;;  %s893_s15 = sphi %s942_s15, %s1118_s15   ;;  %s889_s14 = sphi %s940_s14, %s1117_s14   ;;  %s885_s13 = sphi %s938_s13, %s1116_s13   ;;  %s881_s12 = sphi %s936_s12, %s1115_s12  }
   0x6   : > { %p26_p0 = scmp.ge.s32.totalorder %s25_s21, 4  ;;  %p74_p1 = scmp.ne.s32.totalorder %s893_s15, %s889_s14 }
   0x7   : > { %s701_s23 = sadd.s32 4294967295, %s913_s20   ;;  %p75_p2 = scmp.eq.s32.totalorder %s913_s20, 0 }
   0x8   : > { %s1124_s21 = smov (%p26_p0, %s25_s21), 0  ;;  %s1126_s22 = smov (!%p26_p0, %s32_s22), %s909_s19 }
   0x9   : > { %p34_p3 = scmp.ge.s32.totalorder %s1126_s22, 2  ;;  %s117_s24 = ssub.s32 %s905_s18, %s1124_s21 }
   0xa   : > { %p992_p4 = por %p75_p2, %p74_p1  ;;  %p133_p5 = scmp.ne.s32.totalorder %s885_s13, %s881_s12 }
   0xb   : > { %s1128_s22 = smov (%p34_p3, %s1126_s22), 0  ;;  %s67_s26 = sadd.s32 1, %s893_s15 }
   0xc   : > { %p134_p6 = scmp.eq.s32.totalorder %s701_s23, 7  ;;  %s64_s27 = ssub.s32 %s909_s19, %s1128_s22 }
   0xd   : > { %s123_s28 = sadd.s32 1, %s885_s13  ;;  %p65_p7 = scmp.eq.s32.totalorder %s64_s27, 0 }
   0xe   : > { %s120_s29 = sor.u32 %s117_s24, %s64_s27  ;;  %p1004_p9 = por %p134_p6, %p133_p5 }
   0xf   : > { %p121_p8 = scmp.eq.s32.totalorder %s120_s29, 0  ;;  %p704_p10 = scmp.ge.s32.totalorder %s913_s20, 8 }
  0x10   : > { %s1009_s4 = scalar_select %p65_p7, %s893_s15, %s67_s26  }
  0x11   : > { %s1012_s5 = scalar_select %p121_p8, %s885_s13, %s123_s28  }
  0x12   : > { %156 = sbr.rel (%p704_p10) target bundleno = 35 (0x23), region = 16 }
  0x17   : > { %171 = sbr.rel (!%p992_p4) target bundleno = 35 (0x23), region = 24  ;;  %s173_s6 = sand.u32 (%p992_p4), 1, %s893_s15  }
  0x18   : > { %s741_s7 = sshll.u32 (%p992_p4), %s909_s19, 3  ;;  %s705_s8 = sshll.u32 (%p992_p4), %s173_s6, 7 }
  0x19   : > { %s1022_s11 = scalar_lea.vmem (%p992_p4), %s1110_s1, %s741_s7  ;;  %s175_s23 = scalar_lea.vmem (%p992_p4), [#allocation2], %s705_s8 }
  0x1a   : > { %v237_v0 = vld [vmem:[%s1022_s11] sm:$0xff] (%p992_p4)  ;;  %v239_v1 = vld [vmem:[%s1022_s11 + $0x10] sm:$0xff] (%p992_p4) }
  0x1b   : > { %v241_v2 = vld [vmem:[%s1022_s11 + $0x20] sm:$0xff] (%p992_p4)  ;;  %238 = vst [vmem:[%s175_s23] sm:$0xff] (%p992_p4), %v237_v0  ;;  %240 = vst [vmem:[%s175_s23 + $0x8] sm:$0xff] (%p992_p4), %v239_v1  ;;  %v243_v3 = vld [vmem:[%s1022_s11 + $0x30] sm:$0xff] (%p992_p4) }
  0x1c   : > { %242 = vst [vmem:[%s175_s23 + $0x10] sm:$0xff] %v241_v2  ;;  %v245_v4 = vld [vmem:[%s1022_s11 + $0x40] sm:$0xff]  ;;  %v247_v5 = vld [vmem:[%s1022_s11 + $0x50] sm:$0xff]  ;;  %244 = vst [vmem:[%s175_s23 + $0x18] sm:$0xff] %v243_v3 }
  0x1d   : > { %246 = vst [vmem:[%s175_s23 + $0x20] sm:$0xff] %v245_v4  ;;  %248 = vst [vmem:[%s175_s23 + $0x28] sm:$0xff] %v247_v5  ;;  %v249_v6 = vld [vmem:[%s1022_s11 + $0x60] sm:$0xff]  ;;  %v251_v7 = vld [vmem:[%s1022_s11 + $0x70] sm:$0xff] }
  0x1e   : > { %v253_v8 = vld [vmem:[%s1022_s11 + $0x80] sm:$0xff]  ;;  %250 = vst [vmem:[%s175_s23 + $0x30] sm:$0xff] %v249_v6  ;;  %252 = vst [vmem:[%s175_s23 + $0x38] sm:$0xff] %v251_v7  ;;  %v255_v9 = vld [vmem:[%s1022_s11 + $0x90] sm:$0xff] }
  0x1f   : > { %254 = vst [vmem:[%s175_s23 + $0x40] sm:$0xff] %v253_v8  ;;  %v257_v10 = vld [vmem:[%s1022_s11 + $0xa0] sm:$0xff]  ;;  %v259_v11 = vld [vmem:[%s1022_s11 + $0xb0] sm:$0xff]  ;;  %256 = vst [vmem:[%s175_s23 + $0x48] sm:$0xff] %v255_v9 }
  0x20   : > { %258 = vst [vmem:[%s175_s23 + $0x50] sm:$0xff] %v257_v10  ;;  %260 = vst [vmem:[%s175_s23 + $0x58] sm:$0xff] %v259_v11  ;;  %v261_v12 = vld [vmem:[%s1022_s11 + $0xc0] sm:$0xff]  ;;  %v263_v13 = vld [vmem:[%s1022_s11 + $0xd0] sm:$0xff] }
  0x21   : > { %v265_v14 = vld [vmem:[%s1022_s11 + $0xe0] sm:$0xff]  ;;  %262 = vst [vmem:[%s175_s23 + $0x60] sm:$0xff] %v261_v12  ;;  %264 = vst [vmem:[%s175_s23 + $0x68] sm:$0xff] %v263_v13  ;;  %v267_v15 = vld [vmem:[%s1022_s11 + $0xf0] sm:$0xff] }
  0x22   : > { %266 = vst [vmem:[%s175_s23 + $0x70] sm:$0xff] %v265_v14  ;;  %268 = vst [vmem:[%s175_s23 + $0x78] sm:$0xff] %v267_v15 }
  0x23 PF: > { %p708_p11 = scmp.ge.s32.totalorder %s913_s20, 1  ;;  %p282_p12 = scmp.lt.s32.totalorder %s913_s20, 9 }
  0x25   : > { %p283_p13 = pnand %p708_p11, %p282_p12 }
  0x26   : > { %s289_s24 = sand.u32 (!%p283_p13), 1, %s889_s14   ;;  %p327_p0 = scmp.lt.s32.totalorder (!%p283_p13), %s897_s16, 3 }
  0x27   : > { %286 = sbr.rel (%p283_p13) target bundleno = 293 (0x125), region = 66  ;;  %s709_s25 = sshll.u32 (!%p283_p13), %s289_s24, 7 }
  0x28   : > { %s1044_s26 = scalar_lea.vmem (!%p283_p13), [#allocation2], %s709_s25  ;;  %s1067_s7 = sshll.u32 (!%p283_p13), %s901_s17, 1 }
  0x29   : > { %p336_p1 = scmp.lt.s32.totalorder (!%p283_p13), %s1067_s7, 3  ;;  %s322_s17 = sand.u32 (!%p283_p13), 1, %s881_s12  }
  0x2a   : > { %s710_s24 = sshll.u32 (!%p283_p13), %s322_s17, 4 }
  0x2b   : > { %s324_s25 = scalar_lea.vmem (!%p283_p13), [#allocation3], %s710_s24 }
  0x2c   : > { %v915_v16 = vmov 0   ;;  %v818_v17 = vld [vmem:[%s1044_s26 + $0x74] ss:$8 sps:$4 sm:$0xff]   ;;  %v820_v18 = vld [vmem:[%s1044_s26 + $0x70] ss:$8 sps:$4 sm:$0xff]   ;;  %s328_s14 = scalar_select %p327_p0, %s897_s16, 3  ;;  %v492_v34 = vlaneseq }
  0x2d   : > { %479 = vmatprep.mubr.bf16.mxu0 %v915_v16  ;;  %447 = vmatprep.subr.bf16.mxu0 %v818_v17  ;;  %v821_v19 = vld [vmem:[%s1044_s26 + $0x64] ss:$8 sps:$4 sm:$0xff]   ;;  %v823_v20 = vld [vmem:[%s1044_s26 + $0x60] ss:$8 sps:$4 sm:$0xff]   ;;  %v824_v21 = vld [vmem:[%s1044_s26 + $0x54] ss:$8 sps:$4 sm:$0xff]  }
  0x2e   : > { %448 = vmatpush1.bf16.msra.mxu0 %v820_v18  ;;  %s742_s27 = sshll.u32 %s328_s14, 3  ;;  %v826_v22 = vld [vmem:[%s1044_s26 + $0x50] ss:$8 sps:$4 sm:$0xff]   ;;  %v827_v23 = vld [vmem:[%s1044_s26 + $0x44] ss:$8 sps:$4 sm:$0xff]   ;;  %v493_v35 = vshrl.u32 %v492_v34, 7 }
  0x2f   : > { %449 = vmatprep.subr.bf16.mxu0 %v821_v19  ;;  %s333_s6 = scalar_lea.vmem %s1109_s0, %s742_s27  ;;  %v829_v24 = vld [vmem:[%s1044_s26 + $0x40] ss:$8 sps:$4 sm:$0xff]   ;;  %v830_v25 = vld [vmem:[%s1044_s26 + $0x34] ss:$8 sps:$4 sm:$0xff]   ;;  %v832_v26 = vld [vmem:[%s1044_s26 + $0x30] ss:$8 sps:$4 sm:$0xff]  }
  0x30   : > { %v833_v27 = vld [vmem:[%s1044_s26 + $0x24] ss:$8 sps:$4 sm:$0xff]   ;;  %v835_v28 = vld [vmem:[%s1044_s26 + $0x20] ss:$8 sps:$4 sm:$0xff]   ;;  %v836_v29 = vld [vmem:[%s1044_s26 + $0x14] ss:$8 sps:$4 sm:$0xff]  }
  0x31   : > { %v838_v30 = vld [vmem:[%s1044_s26 + $0x10] ss:$8 sps:$4 sm:$0xff]   ;;  %v839_v31 = vld [vmem:[%s1044_s26 + $0x4] ss:$8 sps:$4 sm:$0xff]   ;;  %v841_v32 = vld [vmem:[%s1044_s26] ss:$8 sps:$4 sm:$0xff]  }
  0x32   : > { %450 = vmatpush1.bf16.msra.mxu0 %v823_v20  ;;  %v842_v33 = vld [vmem:[%s333_s6] sm:$0xff]   ;;  %s337_s8 = scalar_select %p336_p1, %s1067_s7, 3  ;;  %v494_v36 = vsub.s32 0, %v493_v35  ;;  %v498_v38 = vsub.s32 1, %v493_v35 }
  0x33   : > { %451 = vmatprep.subr.bf16.mxu0 %v824_v21  ;;  %s737_s12 = sshll.u32 (%p1004_p9), %s897_s16, 3 }
  0x34   : > { %s714_s9 = sshll.u32 %s337_s8, 1  ;;  %s550_s26 = sadd.s32 (%p1004_p9), %s737_s12, %s1067_s7 }
  0x35   : > { %s339_s23 = scalar_lea.vmem %s1111_s2, %s714_s9  ;;  %s738_s14 = sshll.u32 (%p1004_p9), %s550_s26, 2 }
  0x36   : > { %452 = vmatpush1.bf16.msra.mxu0 %v826_v22  ;;  %v490_v37 = vld [vmem:[%s339_s23] ss:$2 sm:$0x3]  ;;  %v732_v39 = vld [vmem:[%s339_s23 + $0x1] ss:$2 sm:$0x3]  ;;  %s554_s29 = scalar_lea.vmem (%p1004_p9), %s1112_s3, %s738_s14 }
  0x37   : > { %453 = vmatprep.subr.bf16.mxu0 %v827_v23  ;;  %v495_v40 = vrot.slane %v490_v37, %v494_v36  ;;  %v512_v41 = vrot.slane %v732_v39, %v494_v36  ;;  %v499_v42 = vrot.slane %v490_v37, %v498_v38  ;;  %v516_v45 = vrot.slane %v732_v39, %v498_v38 }
  0x3a   : > { %454 = vmatpush1.bf16.msra.mxu0 %v829_v24 }
  0x3b   : > { %455 = vmatprep.subr.bf16.mxu0 %v830_v25 }
  0x3e   : > { %456 = vmatpush1.bf16.msra.mxu0 %v832_v26 }
  0x3f   : > { %457 = vmatprep.subr.bf16.mxu0 %v833_v27 }
  0x42   : > { %458 = vmatpush1.bf16.msra.mxu0 %v835_v28 }
  0x43   : > { %459 = vmatprep.subr.bf16.mxu0 %v836_v29 }
  0x46   : > { %460 = vmatpush1.bf16.msra.mxu0 %v838_v30 }
  0x47   : > { %461 = vmatprep.subr.bf16.mxu0 %v839_v31 }
  0x4a   : > { %462 = vmatpush1.bf16.msra.mxu0 %v841_v32 }
  0x4d   : > { %480 = vmatmul.mubr.bf16.vlgmr.msra.gmra.mxu0 %v842_v33 }
 0x10d   : > { %v481_v43 = vpop.f32.mrf.mxu0 }
 0x10e   : > { %v502_v44 = vmul.f32 %v495_v40, %v481_v43 }
 0x10f   : > { %v483_v46 = vpop.f32.mrf.mxu0 }
 0x110   : > { %v519_v47 = vadd.f32 %v512_v41, %v502_v44  ;;  %v503_v48 = vmul.f32 %v499_v42, %v483_v46 }
 0x111   : > { %v485_v49 = vpop.f32.mrf.mxu0 }
 0x112   : > { %v520_v50 = vadd.f32 %v516_v45, %v503_v48  ;;  %v504_v51 = vmul.f32 %v495_v40, %v485_v49  ;;  %v523_v53 = vmax.f32 %v519_v47, 0.0 }
 0x113   : > { %v487_v52 = vpop.f32.mrf.mxu0 }
 0x114   : > { %v524_v54 = vmax.f32 %v520_v50, 0.0  ;;  %v521_v55 = vadd.f32 %v512_v41, %v504_v51  ;;  %v505_v56 = vmul.f32 %v499_v42, %v487_v52 }
 0x116   : > { %v743_v57 = vpack.c.bf16 %v524_v54, %v523_v53  ;;  %v522_v58 = vadd.f32 %v516_v45, %v505_v56  ;;  %v525_v59 = vmax.f32 %v521_v55, 0.0 }
 0x118   : > { %539 = vst [vmem:[%s324_s25] sm:$0xff] %v743_v57  ;;  %v526_v60 = vmax.f32 %v522_v58, 0.0  ;;  %547 = sbr.rel (!%p1004_p9) target bundleno = 293 (0x125), region = 74 }
 0x11a   : > { %v744_v61 = vpack.c.bf16 %v526_v60, %v525_v59 }
 0x11c   : > { %540 = vst [vmem:[%s324_s25 + $0x8] sm:$0xff] %v744_v61 }
 0x11f   : > { %v585_v62 = vld [vmem:[%s324_s25] sm:$0xff] }
 0x120   : > { %586 = vst [vmem:[%s554_s29] sm:$0xff] %v585_v62 }
 0x123   : > { %v587_v63 = vld [vmem:[%s324_s25 + $0x8] sm:$0xff] }
 0x124   : > { %588 = vst [vmem:[%s554_s29 + $0x10] sm:$0xff] %v587_v63 }
 0x125 PF: > { %s13_s20 = sadd.s32 1, %s913_s20   ;;  %s1115_s12 = smov %s885_s13 }
 0x126   : > { %p10_p2 = scmp.ge.s32.totalorder %s13_s20, 10   ;;  %s1116_s13 = smov %s1012_s5 }
 0x127   : > { %s1117_s14 = smov %s893_s15  ;;  %s1118_s15 = smov %s1009_s4 }
 0x128   : > { %s1119_s16 = smov %s905_s18  ;;  %s1120_s17 = smov %s909_s19 }
 0x129   : > { %s1121_s18 = smov %s1124_s21  ;;  %s1122_s19 = smov %s1128_s22 }
 0x12a   :  { %12 = sbr.rel (!%p10_p2) target bundleno = 5 (0x5), region = 150 }

// kernel: forward.25
= control target key start
LH: loop header
LB: loop body
LE: loop exit
PB: predicated region body
PF: predicated region fallthrough
CT: control target
= control target key end

     0   :  { %s1495_s18 = smov 0   ;;  %s1497_s19 = smov 0   ;;  %s1692_s0 = inlined_call_operand.vmem [shape: bf16[1,4,16,256], index: 0, kind: input, shape index: {}, may-alias: {0,1,2}]   ;;  %s1693_s1 = inlined_call_operand.vmem [shape: bf16[1,4,16,256], index: 1, kind: input, shape index: {}, may-alias: {0,1,2}]   ;;  %s1694_s2 = inlined_call_operand.vmem [shape: bf16[1,4,16,256], index: 2, kind: input, shape index: {}, may-alias: {0,1,2}]   ;;  %s1695_s3 = inlined_call_operand.vmem [shape: bf16[3,256,128], index: 3, kind: input, shape index: {}]   ;;  %s1696_s4 = inlined_call_operand.vmem [shape: f32[2,128], index: 4, kind: input, shape index: {}]   ;;  %s1697_s5 = inlined_call_operand.vmem [shape: bf16[1,2,16,128], index: 5, kind: output, shape index: {}]  }
   0x1   :  { %s1499_s20 = smov 0  }
   0x2 LB: > { %s27_s21 = sadd.s32 1, %s1459_s19  ;;  %p1150_p0 = scmp.ge.s32.totalorder %s1463_s20, 1  ;;  %s1463_s20 = sphi %s1499_s20, %s15_s20   ;;  %s1459_s19 = sphi %s1497_s19, %s1699_s19   ;;  %s1455_s18 = sphi %s1495_s18, %s1698_s18  }
   0x3   : > { %p28_p1 = scmp.ge.s32.totalorder %s27_s21, 2  ;;  %p274_p2 = scmp.lt.s32.totalorder %s1463_s20, 3 }
   0x5   : > { %s1701_s21 = smov (%p28_p1, %s27_s21), 0  ;;  %p275_p3 = pnand %p1150_p0, %p274_p2 }
   0x6   : > { %s350_s8 = sadd.s32 (!%p275_p3), 1, %s1455_s18  ;;  %p343_p5 = scmp.lt.s32.totalorder (!%p275_p3), %s1455_s18, 3 }
   0x7   : > { %278 = sbr.rel (%p275_p3) target bundleno = 290 (0x122), region = 40  ;;  %p353_p4 = scmp.lt.s32.totalorder (!%p275_p3), %s350_s8, 3 }
   0x8   : > { %s361_s9 = sadd.s32 (!%p275_p3), 2, %s1455_s18  ;;  %p382_p7 = scmp.lt.s32.totalorder (!%p275_p3), %s1455_s18, 1 }
   0x9   : > { %p364_p6 = scmp.lt.s32.totalorder (!%p275_p3), %s361_s9, 3 }
   0xc   : > { %v1384_v0 = vld [vmem:[%s1695_s3 + $0xf8] sm:$0xff]   ;;  %v1388_v4 = vld [vmem:[%s1695_s3 + $0xf0] sm:$0xff]   ;;  %v1392_v8 = vld [vmem:[%s1695_s3 + $0xe8] sm:$0xff]   ;;  %s1703_s8 = smov (!%p353_p4, %s350_s8), 3  ;;  %s1705_s9 = smov (!%p364_p6, %s361_s9), 3 }
   0xd   : > { %v1385_v1 = vld [vmem:[%s1695_s3 + $0x78] sm:$0xff]   ;;  %1294 = vmatprep.subr.bf16.mxu0 %v1384_v0  ;;  %v1389_v5 = vld [vmem:[%s1695_s3 + $0x70] sm:$0xff]   ;;  %v1393_v9 = vld [vmem:[%s1695_s3 + $0x68] sm:$0xff]   ;;  %s344_s6 = scalar_select %p343_p5, %s1455_s18, 3 }
   0xe   : > { %v1386_v2 = vld [vmem:[%s1695_s3 + $0xb8] sm:$0xff]   ;;  %1316 = vmatprep.subr.bf16.mxu1 %v1385_v1  ;;  %v1390_v6 = vld [vmem:[%s1695_s3 + $0xb0] sm:$0xff]   ;;  %v1394_v10 = vld [vmem:[%s1695_s3 + $0xa8] sm:$0xff]   ;;  %s1284_s12 = sshll.u32 %s1703_s8, 4  ;;  %s1285_s27 = sshll.u32 %s1705_s9, 4 }
   0xf   : > { %v1387_v3 = vld [vmem:[%s1695_s3 + $0x38] sm:$0xff]   ;;  %1295 = vmatpush3.bf16.msra.mxu0 %v1386_v2  ;;  %v1391_v7 = vld [vmem:[%s1695_s3 + $0x30] sm:$0xff]   ;;  %v1395_v11 = vld [vmem:[%s1695_s3 + $0x28] sm:$0xff]   ;;  %s1283_s17 = sshll.u32 %s344_s6, 4  ;;  %s359_s8 = scalar_lea.vmem %s1693_s1, %s1284_s12 }
  0x10   : > { %1317 = vmatpush3.bf16.msra.mxu1 %v1387_v3  ;;  %1296 = vmatprep.subr.bf16.mxu0 %v1388_v4  ;;  %v1396_v12 = vld [vmem:[%s1695_s3 + $0xe0] sm:$0xff]   ;;  %v1400_v16 = vld [vmem:[%s1695_s3 + $0xd8] sm:$0xff]   ;;  %v1404_v20 = vld [vmem:[%s1695_s3 + $0xd0] sm:$0xff]   ;;  %s349_s7 = scalar_lea.vmem %s1692_s0, %s1283_s17  ;;  %s370_s11 = scalar_lea.vmem %s1694_s2, %s1285_s27 }
  0x11   : > { %1318 = vmatprep.subr.bf16.mxu1 %v1389_v5  ;;  %v1397_v13 = vld [vmem:[%s1695_s3 + $0x60] sm:$0xff]   ;;  %v1401_v17 = vld [vmem:[%s1695_s3 + $0x58] sm:$0xff]   ;;  %v1405_v21 = vld [vmem:[%s1695_s3 + $0x50] sm:$0xff]   ;;  %s1707_s18 = smov (!%p382_p7, %s1455_s18), 1 }
  0x12   : > { %v1398_v14 = vld [vmem:[%s1695_s3 + $0xa0] sm:$0xff]   ;;  %v1402_v18 = vld [vmem:[%s1695_s3 + $0x98] sm:$0xff]   ;;  %v1406_v22 = vld [vmem:[%s1695_s3 + $0x90] sm:$0xff]  }
  0x13   : > { %1297 = vmatpush3.bf16.msra.mxu0 %v1390_v6  ;;  %v1399_v15 = vld [vmem:[%s1695_s3 + $0x20] sm:$0xff]   ;;  %v1403_v19 = vld [vmem:[%s1695_s3 + $0x18] sm:$0xff]   ;;  %v1407_v23 = vld [vmem:[%s1695_s3 + $0x10] sm:$0xff]  }
  0x14   : > { %1319 = vmatpush3.bf16.msra.mxu1 %v1391_v7  ;;  %1298 = vmatprep.subr.bf16.mxu0 %v1392_v8  ;;  %v1408_v24 = vld [vmem:[%s1695_s3 + $0xc8] sm:$0xff]   ;;  %v1412_v28 = vld [vmem:[%s1695_s3 + $0xc0] sm:$0xff]   ;;  %v1422_v36 = vld [vmem:[%s1695_s3 + $0x178] sm:$0xff]  }
  0x15   : > { %1320 = vmatprep.subr.bf16.mxu1 %v1393_v9  ;;  %v1409_v25 = vld [vmem:[%s1695_s3 + $0x48] sm:$0xff]   ;;  %v1413_v29 = vld [vmem:[%s1695_s3 + $0x40] sm:$0xff]   ;;  %v1423_v37 = vld [vmem:[%s1695_s3 + $0x138] sm:$0xff]  }
  0x16   : > { %v1410_v26 = vld [vmem:[%s1695_s3 + $0x88] sm:$0xff]   ;;  %v1414_v30 = vld [vmem:[%s1695_s3 + $0x80] sm:$0xff]   ;;  %v1424_v38 = vld [vmem:[%s1695_s3 + $0x170] sm:$0xff]  }
  0x17   : > { %1299 = vmatpush3.bf16.msra.mxu0 %v1394_v10  ;;  %v1411_v27 = vld [vmem:[%s1695_s3 + $0x8] sm:$0xff]   ;;  %v1415_v31 = vld [vmem:[%s1695_s3] sm:$0xff]   ;;  %v1425_v39 = vld [vmem:[%s1695_s3 + $0x130] sm:$0xff]  }
  0x18   : > { %1321 = vmatpush3.bf16.msra.mxu1 %v1395_v11  ;;  %1300 = vmatprep.subr.bf16.mxu0 %v1396_v12  ;;  %v1416_v32 = vld [vmem:[%s359_s8] ss:$8 sps:$4 sm:$0xff]   ;;  %v1418_v33 = vld [vmem:[%s359_s8 + $0x4] ss:$8 sps:$4 sm:$0xff]   ;;  %v1430_v44 = vld [vmem:[%s1695_s3 + $0x158] sm:$0xff]  }
  0x19   : > { %1322 = vmatprep.subr.bf16.mxu1 %v1397_v13  ;;  %v1419_v34 = vld [vmem:[%s349_s7] ss:$8 sps:$4 sm:$0xff]   ;;  %v1421_v35 = vld [vmem:[%s349_s7 + $0x4] ss:$8 sps:$4 sm:$0xff]   ;;  %600 = vmatprep.mubr.bf16.mxu0 %v1418_v33  ;;  %v1431_v45 = vld [vmem:[%s1695_s3 + $0x118] sm:$0xff]   ;;  %s1286_s7 = sshll.u32 %s1707_s18, 3 }
  0x1a   : > { %747 = vmatprep.mubr.bf16.mxu1 %v1421_v35  ;;  %v1426_v40 = vld [vmem:[%s1695_s3 + $0x168] sm:$0xff]   ;;  %v1428_v42 = vld [vmem:[%s1695_s3 + $0x160] sm:$0xff]   ;;  %v1432_v46 = vld [vmem:[%s1695_s3 + $0x150] sm:$0xff]   ;;  %s391_s12 = scalar_lea.vmem %s1697_s5, %s1286_s7 }
  0x1b   : > { %1301 = vmatpush3.bf16.msra.mxu0 %v1398_v14  ;;  %v1427_v41 = vld [vmem:[%s1695_s3 + $0x128] sm:$0xff]   ;;  %v1429_v43 = vld [vmem:[%s1695_s3 + $0x120] sm:$0xff]   ;;  %v1433_v48 = vld [vmem:[%s1695_s3 + $0x110] sm:$0xff]  }
  0x1c   : > { %1323 = vmatpush3.bf16.msra.mxu1 %v1399_v15  ;;  %1302 = vmatprep.subr.bf16.mxu0 %v1400_v16  ;;  %v1440_v47 = vld [vmem:[%s370_s11 + $0x4] ss:$8 sps:$4 sm:$0xff]   ;;  %v1438_v53 = vld [vmem:[%s370_s11] ss:$8 sps:$4 sm:$0xff]  }
  0x1d   : > { %1324 = vmatprep.subr.bf16.mxu1 %v1401_v17  ;;  %v1434_v49 = vld [vmem:[%s1695_s3 + $0x148] sm:$0xff]   ;;  %v1436_v51 = vld [vmem:[%s1695_s3 + $0x140] sm:$0xff]  }
  0x1e   : > { %v1435_v50 = vld [vmem:[%s1695_s3 + $0x108] sm:$0xff]   ;;  %v1437_v52 = vld [vmem:[%s1695_s3 + $0x100] sm:$0xff]  }
  0x1f   : > { %1303 = vmatpush3.bf16.msra.mxu0 %v1402_v18  ;;  %v1277_v6 = vld [vmem:[%s1696_s4] ss:$0 sm:$0xff]  ;;  %v1278_v13 = vld [vmem:[%s1696_s4 + $0x1] ss:$0 sm:$0xff] }
  0x20   : > { %1325 = vmatpush3.bf16.msra.mxu1 %v1403_v19  ;;  %1304 = vmatprep.subr.bf16.mxu0 %v1404_v20 }
  0x21   : > { %1326 = vmatprep.subr.bf16.mxu1 %v1405_v21 }
  0x23   : > { %1305 = vmatpush3.bf16.msra.mxu0 %v1406_v22 }
  0x24   : > { %1327 = vmatpush3.bf16.msra.mxu1 %v1407_v23  ;;  %1306 = vmatprep.subr.bf16.mxu0 %v1408_v24 }
  0x25   : > { %1328 = vmatprep.subr.bf16.mxu1 %v1409_v25 }
  0x27   : > { %1307 = vmatpush3.bf16.msra.mxu0 %v1410_v26 }
  0x28   : > { %1329 = vmatpush3.bf16.msra.mxu1 %v1411_v27  ;;  %1308 = vmatprep.subr.bf16.mxu0 %v1412_v28 }
  0x29   : > { %1330 = vmatprep.subr.bf16.mxu1 %v1413_v29 }
  0x2b   : > { %1309 = vmatpush3.bf16.msra.mxu0 %v1414_v30 }
  0x2c   : > { %1331 = vmatpush3.bf16.msra.mxu1 %v1415_v31  ;;  %1338 = vmatprep.subr.bf16.mxu0 %v1422_v36 }
  0x2e   : > { %601 = vmatmul.mubr.bf16.vlgmr.msra.gmra.mxu0 %v1416_v32 }
  0x2f   : > { %748 = vmatmul.mubr.bf16.vlgmr.msra.gmra.mxu1 %v1419_v34  ;;  %1339 = vmatpush3.bf16.msra.mxu0 %v1423_v37 }
  0x30   : > { %1340 = vmatprep.subr.bf16.mxu0 %v1424_v38  ;;  %929 = vmatprep.mubr.bf16.mxu0 %v1440_v47 }
  0x33   : > { %1341 = vmatpush3.bf16.msra.mxu0 %v1425_v39 }
  0x34   : > { %1342 = vmatprep.subr.bf16.mxu0 %v1426_v40 }
  0x37   : > { %1343 = vmatpush3.bf16.msra.mxu0 %v1427_v41 }
  0x38   : > { %1344 = vmatprep.subr.bf16.mxu0 %v1428_v42 }
  0x3b   : > { %1345 = vmatpush3.bf16.msra.mxu0 %v1429_v43 }
  0x3c   : > { %1346 = vmatprep.subr.bf16.mxu0 %v1430_v44 }
  0x3f   : > { %1347 = vmatpush3.bf16.msra.mxu0 %v1431_v45 }
  0x40   : > { %1348 = vmatprep.subr.bf16.mxu0 %v1432_v46 }
  0x43   : > { %1349 = vmatpush3.bf16.msra.mxu0 %v1433_v48 }
  0x44   : > { %1350 = vmatprep.subr.bf16.mxu0 %v1434_v49 }
  0x47   : > { %1351 = vmatpush3.bf16.msra.mxu0 %v1435_v50 }
  0x48   : > { %1352 = vmatprep.subr.bf16.mxu0 %v1436_v51 }
  0x4b   : > { %1353 = vmatpush3.bf16.msra.mxu0 %v1437_v52 }
  0x4e   : > { %930 = vmatmul.mubr.bf16.vlgmr.msra.gmra.mxu0 %v1438_v53 }
  0xee   : > { %v1310_v54 = vpop.f32.mrf.mxu0 }
  0xef   : > { %v1332_v55 = vpop.f32.mrf.mxu1 }
  0xf0   : > { %v1311_v56 = vpop.f32.mrf.mxu0 }
  0xf1   : > { %v1333_v57 = vpop.f32.mrf.mxu1  ;;  %v1312_v61 = vadd.f32 %v1311_v56, %v1310_v54 }
  0xf2   : > { %v1313_v58 = vpop.f32.mrf.mxu0  ;;  %v1334_v62 = vadd.f32 %v1333_v57, %v1332_v55 }
  0xf3   : > { %v1335_v59 = vpop.f32.mrf.mxu1 }
  0xf4   : > { %v1314_v60 = vpop.f32.mrf.mxu0  ;;  %v750_v2 = vadd.f32 %v1334_v62, %v1312_v61 }
  0xf5   : > { %v1336_v63 = vpop.f32.mrf.mxu1  ;;  %v1315_v3 = vadd.f32 %v1314_v60, %v1313_v58 }
  0xf6   : > { %v1337_v4 = vadd.f32 %v1336_v63, %v1335_v59 }
  0xf8   : > { %v753_v10 = vadd.f32 %v1337_v4, %v1315_v3 }
 0x10e   : > { %v1354_v0 = vpop.f32.mrf.mxu0 }
 0x110   : > { %v1355_v1 = vpop.f32.mrf.mxu0 }
 0x111   : > { %v1356_v5 = vadd.f32 %v1355_v1, %v1354_v0 }
 0x112   : > { %v1357_v7 = vpop.f32.mrf.mxu0 }
 0x113   : > { %v938_v8 = vadd.f32 %v1356_v5, %v750_v2 }
 0x114   : > { %v1358_v9 = vpop.f32.mrf.mxu0 }
 0x115   : > { %v945_v11 = vmul.f32 %v1277_v6, %v938_v8  ;;  %v1359_v12 = vadd.f32 %v1358_v9, %v1357_v7 }
 0x117   : > { %v939_v14 = vadd.f32 %v1359_v12, %v753_v10  ;;  %v952_v15 = vadd.f32 %v1278_v13, %v945_v11 }
 0x119   : > { %v946_v16 = vmul.f32 %v1277_v6, %v939_v14  ;;  %v954_v18 = vmax.f32 %v952_v15, 0.0 }
 0x11b   : > { %v953_v17 = vadd.f32 %v1278_v13, %v946_v16 }
 0x11d   : > { %v955_v19 = vmax.f32 %v953_v17, 0.0 }
 0x11f   : > { %v1292_v20 = vpack.c.bf16 %v955_v19, %v954_v18 }
 0x121   : > { %1293 = vst [vmem:[%s391_s12] sm:$0xff] %v1292_v20  }
 0x122 PF: > { %s15_s20 = sadd.s32 1, %s1463_s20   ;;  %s1698_s18 = smov %s1459_s19 }
 0x123   : > { %p12_p8 = scmp.ge.s32.totalorder %s15_s20, 4   ;;  %s1699_s19 = smov %s1701_s21 }
 0x125   :  { %14 = sbr.rel (!%p12_p8) target bundleno = 2 (0x2), region = 84 }

// kernel: forward.35
= control target key start
LH: loop header
LB: loop body
LE: loop exit
PB: predicated region body
PF: predicated region fallthrough
CT: control target
= control target key end

     0   :  { %s936_s12 = smov 0   ;;  %s938_s13 = smov 0   ;;  %s1109_s0 = inlined_call_operand.vmem [shape: bf16[1,2,16,128], index: 0, kind: input, shape index: {}]   ;;  %s1110_s1 = inlined_call_operand.vmem [shape: bf16[1,128,2048], index: 1, kind: input, shape index: {}]   ;;  %s1111_s2 = inlined_call_operand.vmem [shape: f32[2,2048], index: 2, kind: input, shape index: {}]   ;;  %s1112_s3 = inlined_call_operand.vmem [shape: bf16[1,2,16,2048], index: 3, kind: output, shape index: {}]  }
   0x1   :  { %s940_s14 = smov 0   ;;  %s942_s15 = smov 0  }
   0x2   :  { %s944_s16 = smov 0   ;;  %s946_s17 = smov 0  }
   0x3   :  { %s948_s18 = smov 0   ;;  %s950_s19 = smov 0  }
   0x4   :  { %s952_s20 = smov 0  }
   0x5 LB: > { %s25_s21 = sadd.s32 1, %s905_s18  ;;  %s32_s22 = sadd.s32 1, %s909_s19  ;;  %s913_s20 = sphi %s952_s20, %s13_s20   ;;  %s909_s19 = sphi %s950_s19, %s1122_s19   ;;  %s905_s18 = sphi %s948_s18, %s1121_s18   ;;  %s901_s17 = sphi %s946_s17, %s1120_s17   ;;  %s897_s16 = sphi %s944_s16, %s1119_s16   ;;  %s893_s15 = sphi %s942_s15, %s1118_s15   ;;  %s889_s14 = sphi %s940_s14, %s1117_s14   ;;  %s885_s13 = sphi %s938_s13, %s1116_s13   ;;  %s881_s12 = sphi %s936_s12, %s1115_s12  }
   0x6   : > { %p26_p0 = scmp.ge.s32.totalorder %s25_s21, 2  ;;  %p74_p1 = scmp.ne.s32.totalorder %s893_s15, %s889_s14 }
   0x7   : > { %s701_s23 = sadd.s32 4294967295, %s913_s20   ;;  %p75_p2 = scmp.eq.s32.totalorder %s913_s20, 0 }
   0x8   : > { %s1124_s21 = smov (%p26_p0, %s25_s21), 0  ;;  %s1126_s22 = smov (!%p26_p0, %s32_s22), %s909_s19 }
   0x9   : > { %p34_p3 = scmp.ge.s32.totalorder %s1126_s22, 8  ;;  %s117_s24 = ssub.s32 %s905_s18, %s1124_s21 }
   0xa   : > { %p992_p4 = por %p75_p2, %p74_p1  ;;  %p133_p5 = scmp.ne.s32.totalorder %s885_s13, %s881_s12 }
   0xb   : > { %s1128_s22 = smov (%p34_p3, %s1126_s22), 0  ;;  %s67_s26 = sadd.s32 1, %s893_s15 }
   0xc   : > { %p134_p6 = scmp.eq.s32.totalorder %s701_s23, 15  ;;  %s64_s27 = ssub.s32 %s909_s19, %s1128_s22 }
   0xd   : > { %s123_s28 = sadd.s32 1, %s885_s13  ;;  %p65_p7 = scmp.eq.s32.totalorder %s64_s27, 0 }
   0xe   : > { %s120_s29 = sor.u32 %s117_s24, %s64_s27  ;;  %p1004_p9 = por %p134_p6, %p133_p5 }
   0xf   : > { %p121_p8 = scmp.eq.s32.totalorder %s120_s29, 0  ;;  %p704_p10 = scmp.ge.s32.totalorder %s913_s20, 16 }
  0x10   : > { %s1009_s4 = scalar_select %p65_p7, %s893_s15, %s67_s26  }
  0x11   : > { %s1012_s5 = scalar_select %p121_p8, %s885_s13, %s123_s28  }
  0x12   : > { %156 = sbr.rel (%p704_p10) target bundleno = 43 (0x2b), region = 16 }
  0x17   : > { %171 = sbr.rel (!%p992_p4) target bundleno = 43 (0x2b), region = 24  ;;  %s173_s6 = sand.u32 (%p992_p4), 1, %s893_s15  }
  0x18   : > { %s741_s7 = sshll.u32 (%p992_p4), %s909_s19, 3  ;;  %s705_s8 = sshll.u32 (%p992_p4), %s173_s6, 7 }
  0x19   : > { %s1022_s11 = scalar_lea.vmem (%p992_p4), %s1110_s1, %s741_s7  ;;  %s175_s23 = scalar_lea.vmem (%p992_p4), [#allocation2], %s705_s8 }
  0x1a   : > { %v237_v0 = vld [vmem:[%s1022_s11] sm:$0xff] (%p992_p4) }
  0x1b   : > { %v239_v1 = vld [vmem:[%s1022_s11 + $0x40] sm:$0xff] (%p992_p4)  ;;  %238 = vst [vmem:[%s175_s23] sm:$0xff] (%p992_p4), %v237_v0 }
  0x1c   : > { %v241_v2 = vld [vmem:[%s1022_s11 + $0x80] sm:$0xff]  ;;  %240 = vst [vmem:[%s175_s23 + $0x8] sm:$0xff] %v239_v1 }
  0x1d   : > { %242 = vst [vmem:[%s175_s23 + $0x10] sm:$0xff] %v241_v2  ;;  %v243_v3 = vld [vmem:[%s1022_s11 + $0xc0] sm:$0xff] }
  0x1e   : > { %v245_v4 = vld [vmem:[%s1022_s11 + $0x100] sm:$0xff]  ;;  %244 = vst [vmem:[%s175_s23 + $0x18] sm:$0xff] %v243_v3 }
  0x1f   : > { %v247_v5 = vld [vmem:[%s1022_s11 + $0x140] sm:$0xff]  ;;  %246 = vst [vmem:[%s175_s23 + $0x20] sm:$0xff] %v245_v4 }
  0x20   : > { %248 = vst [vmem:[%s175_s23 + $0x28] sm:$0xff] %v247_v5  ;;  %v249_v6 = vld [vmem:[%s1022_s11 + $0x180] sm:$0xff] }
  0x21   : > { %v251_v7 = vld [vmem:[%s1022_s11 + $0x1c0] sm:$0xff]  ;;  %250 = vst [vmem:[%s175_s23 + $0x30] sm:$0xff] %v249_v6 }
  0x22   : > { %v253_v8 = vld [vmem:[%s1022_s11 + $0x200] sm:$0xff]  ;;  %252 = vst [vmem:[%s175_s23 + $0x38] sm:$0xff] %v251_v7 }
  0x23   : > { %254 = vst [vmem:[%s175_s23 + $0x40] sm:$0xff] %v253_v8  ;;  %v255_v9 = vld [vmem:[%s1022_s11 + $0x240] sm:$0xff] }
  0x24   : > { %v257_v10 = vld [vmem:[%s1022_s11 + $0x280] sm:$0xff]  ;;  %256 = vst [vmem:[%s175_s23 + $0x48] sm:$0xff] %v255_v9 }
  0x25   : > { %v259_v11 = vld [vmem:[%s1022_s11 + $0x2c0] sm:$0xff]  ;;  %258 = vst [vmem:[%s175_s23 + $0x50] sm:$0xff] %v257_v10 }
  0x26   : > { %260 = vst [vmem:[%s175_s23 + $0x58] sm:$0xff] %v259_v11  ;;  %v261_v12 = vld [vmem:[%s1022_s11 + $0x300] sm:$0xff] }
  0x27   : > { %v263_v13 = vld [vmem:[%s1022_s11 + $0x340] sm:$0xff]  ;;  %262 = vst [vmem:[%s175_s23 + $0x60] sm:$0xff] %v261_v12 }
  0x28   : > { %v265_v14 = vld [vmem:[%s1022_s11 + $0x380] sm:$0xff]  ;;  %264 = vst [vmem:[%s175_s23 + $0x68] sm:$0xff] %v263_v13 }
  0x29   : > { %266 = vst [vmem:[%s175_s23 + $0x70] sm:$0xff] %v265_v14  ;;  %v267_v15 = vld [vmem:[%s1022_s11 + $0x3c0] sm:$0xff] }
  0x2a   : > { %268 = vst [vmem:[%s175_s23 + $0x78] sm:$0xff] %v267_v15 }
  0x2b PF: > { %p708_p11 = scmp.ge.s32.totalorder %s913_s20, 1  ;;  %p282_p12 = scmp.lt.s32.totalorder %s913_s20, 17 }
  0x2d   : > { %p283_p13 = pnand %p708_p11, %p282_p12 }
  0x2e   : > { %s289_s24 = sand.u32 (!%p283_p13), 1, %s889_s14   ;;  %p327_p0 = scmp.lt.s32.totalorder (!%p283_p13), %s897_s16, 1 }
  0x2f   : > { %286 = sbr.rel (%p283_p13) target bundleno = 301 (0x12d), region = 66  ;;  %s709_s25 = sshll.u32 (!%p283_p13), %s289_s24, 7 }
  0x30   : > { %s1044_s26 = scalar_lea.vmem (!%p283_p13), [#allocation2], %s709_s25  ;;  %s1067_s7 = sshll.u32 (!%p283_p13), %s901_s17, 1 }
  0x31   : > { %p336_p1 = scmp.lt.s32.totalorder (!%p283_p13), %s1067_s7, 15  ;;  %s322_s17 = sand.u32 (!%p283_p13), 1, %s881_s12  }
  0x32   : > { %s710_s24 = sshll.u32 (!%p283_p13), %s322_s17, 4 }
  0x33   : > { %s324_s25 = scalar_lea.vmem (!%p283_p13), [#allocation3], %s710_s24 }
  0x34   : > { %v915_v16 = vmov 0   ;;  %v818_v17 = vld [vmem:[%s1044_s26 + $0x74] ss:$8 sps:$4 sm:$0xff]   ;;  %v820_v18 = vld [vmem:[%s1044_s26 + $0x70] ss:$8 sps:$4 sm:$0xff]   ;;  %s328_s14 = scalar_select %p327_p0, %s897_s16, 1  ;;  %v492_v34 = vlaneseq }
  0x35   : > { %479 = vmatprep.mubr.bf16.mxu0 %v915_v16  ;;  %447 = vmatprep.subr.bf16.mxu0 %v818_v17  ;;  %v821_v19 = vld [vmem:[%s1044_s26 + $0x64] ss:$8 sps:$4 sm:$0xff]   ;;  %v823_v20 = vld [vmem:[%s1044_s26 + $0x60] ss:$8 sps:$4 sm:$0xff]   ;;  %v824_v21 = vld [vmem:[%s1044_s26 + $0x54] ss:$8 sps:$4 sm:$0xff]  }
  0x36   : > { %448 = vmatpush1.bf16.msra.mxu0 %v820_v18  ;;  %s742_s27 = sshll.u32 %s328_s14, 3  ;;  %v826_v22 = vld [vmem:[%s1044_s26 + $0x50] ss:$8 sps:$4 sm:$0xff]   ;;  %v827_v23 = vld [vmem:[%s1044_s26 + $0x44] ss:$8 sps:$4 sm:$0xff]   ;;  %v493_v35 = vshrl.u32 %v492_v34, 7 }
  0x37   : > { %449 = vmatprep.subr.bf16.mxu0 %v821_v19  ;;  %s333_s6 = scalar_lea.vmem %s1109_s0, %s742_s27  ;;  %v829_v24 = vld [vmem:[%s1044_s26 + $0x40] ss:$8 sps:$4 sm:$0xff]   ;;  %v830_v25 = vld [vmem:[%s1044_s26 + $0x34] ss:$8 sps:$4 sm:$0xff]   ;;  %v832_v26 = vld [vmem:[%s1044_s26 + $0x30] ss:$8 sps:$4 sm:$0xff]  }
  0x38   : > { %v833_v27 = vld [vmem:[%s1044_s26 + $0x24] ss:$8 sps:$4 sm:$0xff]   ;;  %v835_v28 = vld [vmem:[%s1044_s26 + $0x20] ss:$8 sps:$4 sm:$0xff]   ;;  %v836_v29 = vld [vmem:[%s1044_s26 + $0x14] ss:$8 sps:$4 sm:$0xff]  }
  0x39   : > { %v838_v30 = vld [vmem:[%s1044_s26 + $0x10] ss:$8 sps:$4 sm:$0xff]   ;;  %v839_v31 = vld [vmem:[%s1044_s26 + $0x4] ss:$8 sps:$4 sm:$0xff]   ;;  %v841_v32 = vld [vmem:[%s1044_s26] ss:$8 sps:$4 sm:$0xff]  }
  0x3a   : > { %450 = vmatpush1.bf16.msra.mxu0 %v823_v20  ;;  %v842_v33 = vld [vmem:[%s333_s6] sm:$0xff]   ;;  %s337_s8 = scalar_select %p336_p1, %s1067_s7, 15  ;;  %v494_v36 = vsub.s32 0, %v493_v35  ;;  %v498_v38 = vsub.s32 1, %v493_v35 }
  0x3b   : > { %451 = vmatprep.subr.bf16.mxu0 %v824_v21  ;;  %s737_s12 = sshll.u32 (%p1004_p9), %s897_s16, 5 }
  0x3c   : > { %s714_s9 = sshll.u32 %s337_s8, 1  ;;  %s550_s26 = sadd.s32 (%p1004_p9), %s737_s12, %s1067_s7 }
  0x3d   : > { %s339_s23 = scalar_lea.vmem %s1111_s2, %s714_s9  ;;  %s738_s14 = sshll.u32 (%p1004_p9), %s550_s26, 2 }
  0x3e   : > { %452 = vmatpush1.bf16.msra.mxu0 %v826_v22  ;;  %v490_v37 = vld [vmem:[%s339_s23] ss:$2 sm:$0x3]  ;;  %v732_v39 = vld [vmem:[%s339_s23 + $0x1] ss:$2 sm:$0x3]  ;;  %s554_s29 = scalar_lea.vmem (%p1004_p9), %s1112_s3, %s738_s14 }
  0x3f   : > { %453 = vmatprep.subr.bf16.mxu0 %v827_v23  ;;  %v495_v40 = vrot.slane %v490_v37, %v494_v36  ;;  %v512_v41 = vrot.slane %v732_v39, %v494_v36  ;;  %v499_v42 = vrot.slane %v490_v37, %v498_v38  ;;  %v516_v45 = vrot.slane %v732_v39, %v498_v38 }
  0x42   : > { %454 = vmatpush1.bf16.msra.mxu0 %v829_v24 }
  0x43   : > { %455 = vmatprep.subr.bf16.mxu0 %v830_v25 }
  0x46   : > { %456 = vmatpush1.bf16.msra.mxu0 %v832_v26 }
  0x47   : > { %457 = vmatprep.subr.bf16.mxu0 %v833_v27 }
  0x4a   : > { %458 = vmatpush1.bf16.msra.mxu0 %v835_v28 }
  0x4b   : > { %459 = vmatprep.subr.bf16.mxu0 %v836_v29 }
  0x4e   : > { %460 = vmatpush1.bf16.msra.mxu0 %v838_v30 }
  0x4f   : > { %461 = vmatprep.subr.bf16.mxu0 %v839_v31 }
  0x52   : > { %462 = vmatpush1.bf16.msra.mxu0 %v841_v32 }
  0x55   : > { %480 = vmatmul.mubr.bf16.vlgmr.msra.gmra.mxu0 %v842_v33 }
 0x115   : > { %v481_v43 = vpop.f32.mrf.mxu0 }
 0x116   : > { %v502_v44 = vmul.f32 %v495_v40, %v481_v43 }
 0x117   : > { %v483_v46 = vpop.f32.mrf.mxu0 }
 0x118   : > { %v519_v47 = vadd.f32 %v512_v41, %v502_v44  ;;  %v503_v48 = vmul.f32 %v499_v42, %v483_v46 }
 0x119   : > { %v485_v49 = vpop.f32.mrf.mxu0 }
 0x11a   : > { %v520_v50 = vadd.f32 %v516_v45, %v503_v48  ;;  %v504_v51 = vmul.f32 %v495_v40, %v485_v49  ;;  %v523_v53 = vmax.f32 %v519_v47, 0.0 }
 0x11b   : > { %v487_v52 = vpop.f32.mrf.mxu0 }
 0x11c   : > { %v524_v54 = vmax.f32 %v520_v50, 0.0  ;;  %v521_v55 = vadd.f32 %v512_v41, %v504_v51  ;;  %v505_v56 = vmul.f32 %v499_v42, %v487_v52 }
 0x11e   : > { %v743_v57 = vpack.c.bf16 %v524_v54, %v523_v53  ;;  %v522_v58 = vadd.f32 %v516_v45, %v505_v56  ;;  %v525_v59 = vmax.f32 %v521_v55, 0.0 }
 0x120   : > { %539 = vst [vmem:[%s324_s25] sm:$0xff] %v743_v57  ;;  %v526_v60 = vmax.f32 %v522_v58, 0.0  ;;  %547 = sbr.rel (!%p1004_p9) target bundleno = 301 (0x12d), region = 74 }
 0x122   : > { %v744_v61 = vpack.c.bf16 %v526_v60, %v525_v59 }
 0x124   : > { %540 = vst [vmem:[%s324_s25 + $0x8] sm:$0xff] %v744_v61 }
 0x127   : > { %v585_v62 = vld [vmem:[%s324_s25] sm:$0xff] }
 0x128   : > { %586 = vst [vmem:[%s554_s29] sm:$0xff] %v585_v62 }
 0x12b   : > { %v587_v63 = vld [vmem:[%s324_s25 + $0x8] sm:$0xff] }
 0x12c   : > { %588 = vst [vmem:[%s554_s29 + $0x40] sm:$0xff] %v587_v63 }
 0x12d PF: > { %s13_s20 = sadd.s32 1, %s913_s20   ;;  %s1115_s12 = smov %s885_s13 }
 0x12e   : > { %p10_p2 = scmp.ge.s32.totalorder %s13_s20, 18   ;;  %s1116_s13 = smov %s1012_s5 }
 0x12f   : > { %s1117_s14 = smov %s893_s15  ;;  %s1118_s15 = smov %s1009_s4 }
 0x130   : > { %s1119_s16 = smov %s905_s18  ;;  %s1120_s17 = smov %s909_s19 }
 0x131   : > { %s1121_s18 = smov %s1124_s21  ;;  %s1122_s19 = smov %s1128_s22 }
 0x132   :  { %12 = sbr.rel (!%p10_p2) target bundleno = 5 (0x5), region = 150 }

</bundles_post_ra>
